<compile_context>
chip_gen: v7x
topology: tpu7x:2x2x1
jax: 0.10.0
libtpu: 0.0.40
codegen_flags: <defaults>
</compile_context>

<pallas_src>
import functools
import math

import jax
import jax.numpy as jnp
from jax.experimental import pallas as pl
from jax.experimental.pallas import tpu as pltpu


# ----------------------------------------------------------------------------
# In-kernel building blocks (all operate on a single batch element, values
# resident in VMEM/vregs; only dots, elementwise ops, iota and reductions).
# ----------------------------------------------------------------------------

def _zero_index_map(ndim, i):
    return (0,) * ndim


def _shift_mat(L_in, L_out, stride, off):
    """One-hot (L_out, L_in) gather matrix: out row l <- in row l*stride + off.

    Rows whose source position falls outside [0, L_in) are all-zero, which
    implements conv zero padding for free.
    """
    r = jax.lax.broadcasted_iota(jnp.int32, (L_out, L_in), 0)
    c = jax.lax.broadcasted_iota(jnp.int32, (L_out, L_in), 1)
    return jnp.where(c == r * stride + off, 1.0, 0.0)


def _conv_bn(x, w_ref, scale, bias, *, L_in, K, stride, pad, relu):
    """act(conv1d(x) * scale + bias).  x: (L_in, C_in); w_ref: (K, C_in, C_out)."""
    L_out = (L_in + 2 * pad - K) // stride + 1
    acc = None
    for k in range(K):
        tap = jnp.dot(_shift_mat(L_in, L_out, stride, k - pad), x,
                      preferred_element_type=jnp.float32)            # (L_out, C_in)
        part = jnp.dot(tap, w_ref[k], preferred_element_type=jnp.float32)
        acc = part if acc is None else acc + part
    y = acc * scale + bias
    if relu:
        y = jnp.maximum(y, 0.0)
    return y, L_out


def _maxpool_3_2_1(x, *, L_in):
    """MaxPool1d(kernel=3, stride=2, padding=1) on non-negative (post-ReLU) x."""
    L_out = (L_in + 2 - 3) // 2 + 1
    taps = [jnp.dot(_shift_mat(L_in, L_out, 2, k - 1), x,
                    preferred_element_type=jnp.float32) for k in range(3)]
    # x >= 0 (post-ReLU), so the all-zero rows produced for the padded tap are
    # equivalent to PyTorch's -inf padding under max.
    return jnp.maximum(jnp.maximum(taps[0], taps[1]), taps[2]), L_out


def _se_gate(x, w1, b1, w2, b2):
    """Squeeze-Excite gate: x * sigmoid(relu(mean_L(x) @ w1 + b1) @ w2 + b2)."""
    pooled = jnp.mean(x, axis=0, keepdims=True)                       # (1, C)
    h = jnp.maximum(
        jnp.dot(pooled, w1, preferred_element_type=jnp.float32) + b1, 0.0)
    z = jnp.dot(h, w2, preferred_element_type=jnp.float32) + b2       # (1, C)
    gate = 1.0 / (1.0 + jnp.exp(-z))   # exact sigmoid (exp on EUP); (1, C) => negligible
    return x * gate


# ----------------------------------------------------------------------------
# Fused forward pass (single pallas_call)
# ----------------------------------------------------------------------------

def resnet1d_se_forward(x_ncl, flat_params, *, block_cfg):
    """x_ncl: (B, C_in, L) PyTorch-layout input.  Returns (B, num_classes)."""
    B, C_in, L = x_ncl.shape
    c_in_pad = flat_params[0].shape[1]          # initial conv weight (K, C_in_pad, C0)
    num_classes = flat_params[-1].shape[-1]     # head b2: (1, num_classes)

    n_expected = 3 + sum(10 + (3 if has_ds else 0) for _, has_ds in block_cfg) + 4
    assert len(flat_params) == n_expected, (len(flat_params), n_expected)

    # NCL -> channels-last (B, L, C_in); zero-pad C_in up to a multiple of 8.
    x = jnp.transpose(x_ncl, (0, 2, 1)).astype(jnp.float32)
    if c_in_pad != C_in:
        x = jnp.pad(x, ((0, 0), (0, 0), (0, c_in_pad - C_in)))

    def kernel(*refs):
        x_ref, o_ref = refs[0], refs[-1]
        it = iter(refs[1:-1])

        def take(n):
            return tuple(next(it) for _ in range(n))

        xv = x_ref[...]                                   # (L, C_in_pad)
        Lc = L

        # ---- initial: Conv1d(k=7, s=2, p=3) + BN + ReLU, then MaxPool1d(3, 2, 1)
        w_ref, s_ref, b_ref = take(3)
        xv, Lc = _conv_bn(xv, w_ref, s_ref[...], b_ref[...],
                          L_in=Lc, K=7, stride=2, pad=3, relu=True)
        xv, Lc = _maxpool_3_2_1(xv, L_in=Lc)

        # ---- three SE residual blocks (all activations stay in VMEM/vregs)
        for stride, has_ds in block_cfg:
            identity, L_id = xv, Lc
            w_ref, s_ref, b_ref = take(3)
            xv, Lc = _conv_bn(xv, w_ref, s_ref[...], b_ref[...],
                              L_in=Lc, K=3, stride=stride, pad=1, relu=True)
            w_ref, s_ref, b_ref = take(3)
            xv, Lc = _conv_bn(xv, w_ref, s_ref[...], b_ref[...],
                              L_in=Lc, K=3, stride=1, pad=1, relu=False)
            if has_ds:
                w_ref, s_ref, b_ref = take(3)
                identity, _ = _conv_bn(identity, w_ref, s_ref[...], b_ref[...],
                                       L_in=L_id, K=1, stride=stride, pad=0,
                                       relu=False)
            w1_ref, b1_ref, w2_ref, b2_ref = take(4)
            xv = _se_gate(xv, w1_ref[...], b1_ref[...], w2_ref[...], b2_ref[...])
            xv = jnp.maximum(xv + identity, 0.0)

        # ---- head: global average pool + Linear + ReLU + (Dropout=id) + Linear
        w1_ref, b1_ref, w2_ref, b2_ref = take(4)
        pooled = jnp.mean(xv, axis=0, keepdims=True)                  # (1, C_final)
        h = jnp.maximum(
            jnp.dot(pooled, w1_ref[...], preferred_element_type=jnp.float32)
            + b1_ref[...], 0.0)
        # TODO(synk): Dropout(0.3) is identity in eval mode; training-mode RNG
        # dropout is not implemented.
        logits = (jnp.dot(h, w2_ref[...], preferred_element_type=jnp.float32)
                  + b2_ref[...])
        o_ref[...] = logits.astype(o_ref.dtype)

    in_specs = [pl.BlockSpec((None, L, c_in_pad), lambda i: (i, 0, 0))]
    for p in flat_params:
        in_specs.append(
            pl.BlockSpec(p.shape, functools.partial(_zero_index_map, p.ndim)))

    out = pl.pallas_call(
        kernel,
        out_shape=jax.ShapeDtypeStruct((B, 1, num_classes), jnp.float32),
        grid=(B,),
        in_specs=in_specs,
        out_specs=pl.BlockSpec((None, 1, num_classes), lambda i: (i, 0, 0)),
        compiler_params=pltpu.CompilerParams(dimension_semantics=("parallel",)),
    )(x, *flat_params)
    return out.reshape(B, num_classes)


# ----------------------------------------------------------------------------
# Parameter initialization / inference-time preparation
# ----------------------------------------------------------------------------

def init_conv_bn(key, c_in, c_out, k):
    ks = jax.random.split(key, 6)
    return dict(
        w=jax.random.normal(ks[0], (k, c_in, c_out), jnp.float32) / math.sqrt(c_in * k),
        b=0.1 * jax.random.normal(ks[1], (c_out,), jnp.float32),
        gamma=1.0 + 0.1 * jax.random.normal(ks[2], (c_out,), jnp.float32),
        beta=0.1 * jax.random.normal(ks[3], (c_out,), jnp.float32),
        mean=0.1 * jax.random.normal(ks[4], (c_out,), jnp.float32),
        var=1.0 + 0.1 * jax.random.uniform(ks[5], (c_out,), jnp.float32),
    )


def init_se(key, c, reduction=16):
    cr = max(c // reduction, 1)
    k1, k2, k3, k4 = jax.random.split(key, 4)
    return dict(
        w1=jax.random.normal(k1, (c, cr), jnp.float32) / math.sqrt(c),
        b1=0.1 * jax.random.normal(k2, (cr,), jnp.float32),
        w2=jax.random.normal(k3, (cr, c), jnp.float32) / math.sqrt(cr),
        b2=0.1 * jax.random.normal(k4, (c,), jnp.float32),
    )


def init_basic_block(key, c_in, c_out, stride):
    k1, k2, k3, k4 = jax.random.split(key, 4)
    p = dict(conv1=init_conv_bn(k1, c_in, c_out, 3),
             conv2=init_conv_bn(k2, c_out, c_out, 3),
             se=init_se(k3, c_out),
             downsample=None,
             stride=stride)
    if c_in != c_out or stride != 1:
        p["downsample"] = init_conv_bn(k4, c_in, c_out, 1)
    return p


def init_resnet(key, input_channels=1, num_classes=2, base_filters=16):
    ks = jax.random.split(key, 7)
    c_final = base_filters * 4
    return dict(
        initial=init_conv_bn(ks[0], input_channels, base_filters, 7),
        layer1=init_basic_block(ks[1], base_filters, base_filters, 1),
        layer2=init_basic_block(ks[2], base_filters, base_filters * 2, 2),
        layer3=init_basic_block(ks[3], base_filters * 2, base_filters * 4, 2),
        head=dict(
            w1=jax.random.normal(ks[4], (c_final, 64), jnp.float32) / math.sqrt(c_final),
            b1=0.1 * jax.random.normal(ks[5], (64,), jnp.float32),
            w2=jax.random.normal(ks[6], (64, num_classes), jnp.float32) / 8.0,
            b2=jnp.zeros((num_classes,), jnp.float32),
        ),
    )


def fold_bn(p, eps=1e-5, pad_cin_to=None):
    """Fold inference-mode BatchNorm1d (and conv bias) into per-channel scale/bias."""
    scale = p["gamma"] / jnp.sqrt(p["var"] + eps)
    bias = (p["b"] - p["mean"]) * scale + p["beta"]
    w = p["w"]
    if pad_cin_to is not None and w.shape[1] < pad_cin_to:
        w = jnp.pad(w, ((0, 0), (0, pad_cin_to - w.shape[1]), (0, 0)))
    return w, scale.reshape(1, -1), bias.reshape(1, -1)


def prepare_inference_params(params, c_in_pad):
    """Flatten parameters into the exact order the fused kernel consumes."""
    flat = list(fold_bn(params["initial"], pad_cin_to=c_in_pad))
    for name in ("layer1", "layer2", "layer3"):
        blk = params[name]
        flat += list(fold_bn(blk["conv1"]))
        flat += list(fold_bn(blk["conv2"]))
        if blk["downsample"] is not None:
            flat += list(fold_bn(blk["downsample"]))
        se = blk["se"]
        flat += [se["w1"], se["b1"].reshape(1, -1),
                 se["w2"], se["b2"].reshape(1, -1)]
    h = params["head"]
    flat += [h["w1"], h["b1"].reshape(1, -1), h["w2"], h["b2"].reshape(1, -1)]
    return tuple(flat)


# ----------------------------------------------------------------------------
# Pure-JAX (non-Pallas) reference for a parity check
# ----------------------------------------------------------------------------

def _ref_conv_bn_act(x, p, *, stride, pad, relu, eps=1e-5):
    K = p["w"].shape[0]
    B, L, _ = x.shape
    L_out = (L + 2 * pad - K) // stride + 1
    xp = jnp.pad(x, ((0, 0), (pad, pad), (0, 0)))
    cols = jnp.stack(
        [xp[:, k:k + stride * (L_out - 1) + 1:stride, :] for k in range(K)], axis=2)
    y = jnp.einsum("blkc,kcd->bld", cols, p["w"], precision="highest") + p["b"]
    y = (y - p["mean"]) / jnp.sqrt(p["var"] + eps) * p["gamma"] + p["beta"]
    return jnp.maximum(y, 0.0) if relu else y


def _ref_maxpool_3_2_1(x):
    B, L, C = x.shape
    L_out = (L + 2 - 3) // 2 + 1
    xp = jnp.pad(x, ((0, 0), (1, 1), (0, 0)), constant_values=-jnp.inf)
    cols = [xp[:, k:k + 2 * (L_out - 1) + 1:2, :] for k in range(3)]
    return jnp.maximum(jnp.maximum(cols[0], cols[1]), cols[2])


def _ref_block(x, p):
    identity = x
    out = _ref_conv_bn_act(x, p["conv1"], stride=p["stride"], pad=1, relu=True)
    out = _ref_conv_bn_act(out, p["conv2"], stride=1, pad=1, relu=False)
    se = p["se"]
    pooled = jnp.mean(out, axis=1)
    h = jnp.maximum(jnp.dot(pooled, se["w1"], precision="highest") + se["b1"], 0.0)
    gate = jax.nn.sigmoid(jnp.dot(h, se["w2"], precision="highest") + se["b2"])
    out = out * gate[:, None, :]
    if p["downsample"] is not None:
        identity = _ref_conv_bn_act(x, p["downsample"], stride=p["stride"],
                                    pad=0, relu=False)
    return jnp.maximum(out + identity, 0.0)


def ref_forward(x_ncl, params):
    x = jnp.transpose(x_ncl, (0, 2, 1)).astype(jnp.float32)
    x = _ref_conv_bn_act(x, params["initial"], stride=2, pad=3, relu=True)
    x = _ref_maxpool_3_2_1(x)
    for name in ("layer1", "layer2", "layer3"):
        x = _ref_block(x, params[name])
    pooled = jnp.mean(x, axis=1)
    h = params["head"]
    hid = jnp.maximum(jnp.dot(pooled, h["w1"], precision="highest") + h["b1"], 0.0)
    return jnp.dot(hid, h["w2"], precision="highest") + h["b2"]


# ----------------------------------------------------------------------------

if __name__ == "__main__":
    key = jax.random.PRNGKey(0)
    k_param, k_input = jax.random.split(key)

    B, C_IN, L, NUM_CLASSES = 2, 1, 64, 2
    params = init_resnet(k_param, input_channels=C_IN, num_classes=NUM_CLASSES,
                         base_filters=16)
    x = jax.random.normal(k_input, (B, C_IN, L), jnp.float32)

    c_in_pad = max(8, -(-C_IN // 8) * 8)            # pad contraction dim to 8 sublanes
    flat_params = prepare_inference_params(params, c_in_pad)
    block_cfg = tuple(
        (int(params[n]["stride"]), params[n]["downsample"] is not None)
        for n in ("layer1", "layer2", "layer3"))

    fwd = jax.jit(functools.partial(resnet1d_se_forward, block_cfg=block_cfg))
    logits = fwd(x, flat_params)
    jax.block_until_ready(logits)

    assert logits.shape == (B, NUM_CLASSES), logits.shape
    assert bool(jnp.all(jnp.isfinite(logits)))

    # Parity check against a straightforward (non-Pallas) reference.
    ref = ref_forward(x, params)
    max_err = float(jnp.max(jnp.abs(logits - ref)))
    assert max_err < 1e-1, f"max |pallas - reference| = {max_err}"

    print("KERNEL_OK")
</pallas_src>

<mosaic_0001>
module attributes {stable_mosaic.version = 11 : i64} {
  func.func @kernel(%arg0: i32, %arg1: memref<1x64x8xf32, #tpu.memory_space<vmem>>, %arg2: memref<7x8x16xf32, #tpu.memory_space<vmem>>, %arg3: memref<1x16xf32, #tpu.memory_space<vmem>>, %arg4: memref<1x16xf32, #tpu.memory_space<vmem>>, %arg5: memref<3x16x16xf32, #tpu.memory_space<vmem>>, %arg6: memref<1x16xf32, #tpu.memory_space<vmem>>, %arg7: memref<1x16xf32, #tpu.memory_space<vmem>>, %arg8: memref<3x16x16xf32, #tpu.memory_space<vmem>>, %arg9: memref<1x16xf32, #tpu.memory_space<vmem>>, %arg10: memref<1x16xf32, #tpu.memory_space<vmem>>, %arg11: memref<16x1xf32, #tpu.memory_space<vmem>>, %arg12: memref<1x1xf32, #tpu.memory_space<vmem>>, %arg13: memref<1x16xf32, #tpu.memory_space<vmem>>, %arg14: memref<1x16xf32, #tpu.memory_space<vmem>>, %arg15: memref<3x16x32xf32, #tpu.memory_space<vmem>>, %arg16: memref<1x32xf32, #tpu.memory_space<vmem>>, %arg17: memref<1x32xf32, #tpu.memory_space<vmem>>, %arg18: memref<3x32x32xf32, #tpu.memory_space<vmem>>, %arg19: memref<1x32xf32, #tpu.memory_space<vmem>>, %arg20: memref<1x32xf32, #tpu.memory_space<vmem>>, %arg21: memref<1x16x32xf32, #tpu.memory_space<vmem>>, %arg22: memref<1x32xf32, #tpu.memory_space<vmem>>, %arg23: memref<1x32xf32, #tpu.memory_space<vmem>>, %arg24: memref<32x2xf32, #tpu.memory_space<vmem>>, %arg25: memref<1x2xf32, #tpu.memory_space<vmem>>, %arg26: memref<2x32xf32, #tpu.memory_space<vmem>>, %arg27: memref<1x32xf32, #tpu.memory_space<vmem>>, %arg28: memref<3x32x64xf32, #tpu.memory_space<vmem>>, %arg29: memref<1x64xf32, #tpu.memory_space<vmem>>, %arg30: memref<1x64xf32, #tpu.memory_space<vmem>>, %arg31: memref<3x64x64xf32, #tpu.memory_space<vmem>>, %arg32: memref<1x64xf32, #tpu.memory_space<vmem>>, %arg33: memref<1x64xf32, #tpu.memory_space<vmem>>, %arg34: memref<1x32x64xf32, #tpu.memory_space<vmem>>, %arg35: memref<1x64xf32, #tpu.memory_space<vmem>>, %arg36: memref<1x64xf32, #tpu.memory_space<vmem>>, %arg37: memref<64x4xf32, #tpu.memory_space<vmem>>, %arg38: memref<1x4xf32, #tpu.memory_space<vmem>>, %arg39: memref<4x64xf32, #tpu.memory_space<vmem>>, %arg40: memref<1x64xf32, #tpu.memory_space<vmem>>, %arg41: memref<64x64xf32, #tpu.memory_space<vmem>>, %arg42: memref<1x64xf32, #tpu.memory_space<vmem>>, %arg43: memref<64x2xf32, #tpu.memory_space<vmem>>, %arg44: memref<1x2xf32, #tpu.memory_space<vmem>>, %arg45: memref<1x1x2xf32, #tpu.memory_space<vmem>>) attributes {dimension_semantics = [#tpu.dimension_semantics<parallel>], iteration_bounds = array<i64: 2>, scalar_prefetch = 0 : i64, scratch_operands = 0 : i64, tpu.core_type = #tpu.core_type<tc>, window_params = [{transform_indices = @transform_0, window_bounds = array<i64: 1, 64, 8>}, {pipeline_mode = #tpu.pipeline_mode<synchronous>, transform_indices = @transform_1, window_bounds = array<i64: 7, 8, 16>}, {pipeline_mode = #tpu.pipeline_mode<synchronous>, transform_indices = @transform_2, window_bounds = array<i64: 1, 16>}, {pipeline_mode = #tpu.pipeline_mode<synchronous>, transform_indices = @transform_3, window_bounds = array<i64: 1, 16>}, {pipeline_mode = #tpu.pipeline_mode<synchronous>, transform_indices = @transform_4, window_bounds = array<i64: 3, 16, 16>}, {pipeline_mode = #tpu.pipeline_mode<synchronous>, transform_indices = @transform_5, window_bounds = array<i64: 1, 16>}, {pipeline_mode = #tpu.pipeline_mode<synchronous>, transform_indices = @transform_6, window_bounds = array<i64: 1, 16>}, {pipeline_mode = #tpu.pipeline_mode<synchronous>, transform_indices = @transform_7, window_bounds = array<i64: 3, 16, 16>}, {pipeline_mode = #tpu.pipeline_mode<synchronous>, transform_indices = @transform_8, window_bounds = array<i64: 1, 16>}, {pipeline_mode = #tpu.pipeline_mode<synchronous>, transform_indices = @transform_9, window_bounds = array<i64: 1, 16>}, {pipeline_mode = #tpu.pipeline_mode<synchronous>, transform_indices = @transform_10, window_bounds = array<i64: 16, 1>}, {pipeline_mode = #tpu.pipeline_mode<synchronous>, transform_indices = @transform_11, window_bounds = array<i64: 1, 1>}, {pipeline_mode = #tpu.pipeline_mode<synchronous>, transform_indices = @transform_12, window_bounds = array<i64: 1, 16>}, {pipeline_mode = #tpu.pipeline_mode<synchronous>, transform_indices = @transform_13, window_bounds = array<i64: 1, 16>}, {pipeline_mode = #tpu.pipeline_mode<synchronous>, transform_indices = @transform_14, window_bounds = array<i64: 3, 16, 32>}, {pipeline_mode = #tpu.pipeline_mode<synchronous>, transform_indices = @transform_15, window_bounds = array<i64: 1, 32>}, {pipeline_mode = #tpu.pipeline_mode<synchronous>, transform_indices = @transform_16, window_bounds = array<i64: 1, 32>}, {pipeline_mode = #tpu.pipeline_mode<synchronous>, transform_indices = @transform_17, window_bounds = array<i64: 3, 32, 32>}, {pipeline_mode = #tpu.pipeline_mode<synchronous>, transform_indices = @transform_18, window_bounds = array<i64: 1, 32>}, {pipeline_mode = #tpu.pipeline_mode<synchronous>, transform_indices = @transform_19, window_bounds = array<i64: 1, 32>}, {pipeline_mode = #tpu.pipeline_mode<synchronous>, transform_indices = @transform_20, window_bounds = array<i64: 1, 16, 32>}, {pipeline_mode = #tpu.pipeline_mode<synchronous>, transform_indices = @transform_21, window_bounds = array<i64: 1, 32>}, {pipeline_mode = #tpu.pipeline_mode<synchronous>, transform_indices = @transform_22, window_bounds = array<i64: 1, 32>}, {pipeline_mode = #tpu.pipeline_mode<synchronous>, transform_indices = @transform_23, window_bounds = array<i64: 32, 2>}, {pipeline_mode = #tpu.pipeline_mode<synchronous>, transform_indices = @transform_24, window_bounds = array<i64: 1, 2>}, {pipeline_mode = #tpu.pipeline_mode<synchronous>, transform_indices = @transform_25, window_bounds = array<i64: 2, 32>}, {pipeline_mode = #tpu.pipeline_mode<synchronous>, transform_indices = @transform_26, window_bounds = array<i64: 1, 32>}, {pipeline_mode = #tpu.pipeline_mode<synchronous>, transform_indices = @transform_27, window_bounds = array<i64: 3, 32, 64>}, {pipeline_mode = #tpu.pipeline_mode<synchronous>, transform_indices = @transform_28, window_bounds = array<i64: 1, 64>}, {pipeline_mode = #tpu.pipeline_mode<synchronous>, transform_indices = @transform_29, window_bounds = array<i64: 1, 64>}, {pipeline_mode = #tpu.pipeline_mode<synchronous>, transform_indices = @transform_30, window_bounds = array<i64: 3, 64, 64>}, {pipeline_mode = #tpu.pipeline_mode<synchronous>, transform_indices = @transform_31, window_bounds = array<i64: 1, 64>}, {pipeline_mode = #tpu.pipeline_mode<synchronous>, transform_indices = @transform_32, window_bounds = array<i64: 1, 64>}, {pipeline_mode = #tpu.pipeline_mode<synchronous>, transform_indices = @transform_33, window_bounds = array<i64: 1, 32, 64>}, {pipeline_mode = #tpu.pipeline_mode<synchronous>, transform_indices = @transform_34, window_bounds = array<i64: 1, 64>}, {pipeline_mode = #tpu.pipeline_mode<synchronous>, transform_indices = @transform_35, window_bounds = array<i64: 1, 64>}, {pipeline_mode = #tpu.pipeline_mode<synchronous>, transform_indices = @transform_36, window_bounds = array<i64: 64, 4>}, {pipeline_mode = #tpu.pipeline_mode<synchronous>, transform_indices = @transform_37, window_bounds = array<i64: 1, 4>}, {pipeline_mode = #tpu.pipeline_mode<synchronous>, transform_indices = @transform_38, window_bounds = array<i64: 4, 64>}, {pipeline_mode = #tpu.pipeline_mode<synchronous>, transform_indices = @transform_39, window_bounds = array<i64: 1, 64>}, {pipeline_mode = #tpu.pipeline_mode<synchronous>, transform_indices = @transform_40, window_bounds = array<i64: 64, 64>}, {pipeline_mode = #tpu.pipeline_mode<synchronous>, transform_indices = @transform_41, window_bounds = array<i64: 1, 64>}, {pipeline_mode = #tpu.pipeline_mode<synchronous>, transform_indices = @transform_42, window_bounds = array<i64: 64, 2>}, {pipeline_mode = #tpu.pipeline_mode<synchronous>, transform_indices = @transform_43, window_bounds = array<i64: 1, 2>}, {transform_indices = @transform_44, window_bounds = array<i64: 1, 1, 2>}]} {
    %c0 = arith.constant 0 : index
    %c0_0 = arith.constant 0 : index
    %c0_1 = arith.constant 0 : index
    %0 = vector.load %arg1[%c0, %c0_0, %c0_1] : memref<1x64x8xf32, #tpu.memory_space<vmem>>, vector<1x64x8xf32>
    %1 = vector.shape_cast %0 : vector<1x64x8xf32> to vector<64x8xf32>
    %c0_2 = arith.constant 0 : index
    %c0_3 = arith.constant 0 : index
    %2 = vector.load %arg3[%c0_2, %c0_3] : memref<1x16xf32, #tpu.memory_space<vmem>>, vector<1x16xf32>
    %c0_4 = arith.constant 0 : index
    %c0_5 = arith.constant 0 : index
    %3 = vector.load %arg4[%c0_4, %c0_5] : memref<1x16xf32, #tpu.memory_space<vmem>>, vector<1x16xf32>
    %4 = tpu.iota {dimensions = array<i32: 0>} : vector<32x64xi32>
    %5 = tpu.iota {dimensions = array<i32: 1>} : vector<32x64xi32>
    %c2_i32 = arith.constant 2 : i32
    %6 = vector.broadcast %c2_i32 : i32 to vector<32x64xi32>
    %7 = arith.muli %4, %6 : vector<32x64xi32>
    %c-3_i32 = arith.constant -3 : i32
    %8 = vector.broadcast %c-3_i32 : i32 to vector<32x64xi32>
    %9 = arith.addi %7, %8 : vector<32x64xi32>
    %10 = arith.cmpi eq, %5, %9 : vector<32x64xi32>
    %cst = arith.constant 1.000000e+00 : f32
    %cst_6 = arith.constant 0.000000e+00 : f32
    %11 = vector.broadcast %cst : f32 to vector<32x64xf32>
    %12 = vector.broadcast %cst_6 : f32 to vector<32x64xf32>
    %13 = arith.select %10, %11, %12 : vector<32x64xi1>, vector<32x64xf32>
    %cst_7 = arith.constant dense<0.000000e+00> : vector<32x8xf32>
    %14 = tpu.matmul %13, %1, %cst_7 {dimension_numbers = #tpu.dot_dimension_numbers<[1], [0], [0], [1], [0, 0, 1, 1], [], []>} : vector<32x64xf32>, vector<64x8xf32>, vector<32x8xf32> -> vector<32x8xf32>
    %c0_8 = arith.constant 0 : index
    %c0_9 = arith.constant 0 : index
    %c0_10 = arith.constant 0 : index
    %15 = vector.load %arg2[%c0_8, %c0_9, %c0_10] : memref<7x8x16xf32, #tpu.memory_space<vmem>>, vector<1x8x16xf32>
    %16 = vector.shape_cast %15 : vector<1x8x16xf32> to vector<8x16xf32>
    %cst_11 = arith.constant dense<0.000000e+00> : vector<32x16xf32>
    %17 = tpu.matmul %14, %16, %cst_11 {dimension_numbers = #tpu.dot_dimension_numbers<[1], [0], [0], [1], [0, 0, 1, 1], [], []>} : vector<32x8xf32>, vector<8x16xf32>, vector<32x16xf32> -> vector<32x16xf32>
    %18 = tpu.iota {dimensions = array<i32: 0>} : vector<32x64xi32>
    %19 = tpu.iota {dimensions = array<i32: 1>} : vector<32x64xi32>
    %c2_i32_12 = arith.constant 2 : i32
    %20 = vector.broadcast %c2_i32_12 : i32 to vector<32x64xi32>
    %21 = arith.muli %18, %20 : vector<32x64xi32>
    %c-2_i32 = arith.constant -2 : i32
    %22 = vector.broadcast %c-2_i32 : i32 to vector<32x64xi32>
    %23 = arith.addi %21, %22 : vector<32x64xi32>
    %24 = arith.cmpi eq, %19, %23 : vector<32x64xi32>
    %cst_13 = arith.constant 1.000000e+00 : f32
    %cst_14 = arith.constant 0.000000e+00 : f32
    %25 = vector.broadcast %cst_13 : f32 to vector<32x64xf32>
    %26 = vector.broadcast %cst_14 : f32 to vector<32x64xf32>
    %27 = arith.select %24, %25, %26 : vector<32x64xi1>, vector<32x64xf32>
    %cst_15 = arith.constant dense<0.000000e+00> : vector<32x8xf32>
    %28 = tpu.matmul %27, %1, %cst_15 {dimension_numbers = #tpu.dot_dimension_numbers<[1], [0], [0], [1], [0, 0, 1, 1], [], []>} : vector<32x64xf32>, vector<64x8xf32>, vector<32x8xf32> -> vector<32x8xf32>
    %c1 = arith.constant 1 : index
    %c0_16 = arith.constant 0 : index
    %c0_17 = arith.constant 0 : index
    %29 = vector.load %arg2[%c1, %c0_16, %c0_17] : memref<7x8x16xf32, #tpu.memory_space<vmem>>, vector<1x8x16xf32>
    %30 = vector.shape_cast %29 : vector<1x8x16xf32> to vector<8x16xf32>
    %cst_18 = arith.constant dense<0.000000e+00> : vector<32x16xf32>
    %31 = tpu.matmul %28, %30, %cst_18 {dimension_numbers = #tpu.dot_dimension_numbers<[1], [0], [0], [1], [0, 0, 1, 1], [], []>} : vector<32x8xf32>, vector<8x16xf32>, vector<32x16xf32> -> vector<32x16xf32>
    %32 = arith.addf %17, %31 : vector<32x16xf32>
    %33 = tpu.iota {dimensions = array<i32: 0>} : vector<32x64xi32>
    %34 = tpu.iota {dimensions = array<i32: 1>} : vector<32x64xi32>
    %c2_i32_19 = arith.constant 2 : i32
    %35 = vector.broadcast %c2_i32_19 : i32 to vector<32x64xi32>
    %36 = arith.muli %33, %35 : vector<32x64xi32>
    %c-1_i32 = arith.constant -1 : i32
    %37 = vector.broadcast %c-1_i32 : i32 to vector<32x64xi32>
    %38 = arith.addi %36, %37 : vector<32x64xi32>
    %39 = arith.cmpi eq, %34, %38 : vector<32x64xi32>
    %cst_20 = arith.constant 1.000000e+00 : f32
    %cst_21 = arith.constant 0.000000e+00 : f32
    %40 = vector.broadcast %cst_20 : f32 to vector<32x64xf32>
    %41 = vector.broadcast %cst_21 : f32 to vector<32x64xf32>
    %42 = arith.select %39, %40, %41 : vector<32x64xi1>, vector<32x64xf32>
    %cst_22 = arith.constant dense<0.000000e+00> : vector<32x8xf32>
    %43 = tpu.matmul %42, %1, %cst_22 {dimension_numbers = #tpu.dot_dimension_numbers<[1], [0], [0], [1], [0, 0, 1, 1], [], []>} : vector<32x64xf32>, vector<64x8xf32>, vector<32x8xf32> -> vector<32x8xf32>
    %c2 = arith.constant 2 : index
    %c0_23 = arith.constant 0 : index
    %c0_24 = arith.constant 0 : index
    %44 = vector.load %arg2[%c2, %c0_23, %c0_24] : memref<7x8x16xf32, #tpu.memory_space<vmem>>, vector<1x8x16xf32>
    %45 = vector.shape_cast %44 : vector<1x8x16xf32> to vector<8x16xf32>
    %cst_25 = arith.constant dense<0.000000e+00> : vector<32x16xf32>
    %46 = tpu.matmul %43, %45, %cst_25 {dimension_numbers = #tpu.dot_dimension_numbers<[1], [0], [0], [1], [0, 0, 1, 1], [], []>} : vector<32x8xf32>, vector<8x16xf32>, vector<32x16xf32> -> vector<32x16xf32>
    %47 = arith.addf %32, %46 : vector<32x16xf32>
    %48 = tpu.iota {dimensions = array<i32: 0>} : vector<32x64xi32>
    %49 = tpu.iota {dimensions = array<i32: 1>} : vector<32x64xi32>
    %c2_i32_26 = arith.constant 2 : i32
    %50 = vector.broadcast %c2_i32_26 : i32 to vector<32x64xi32>
    %51 = arith.muli %48, %50 : vector<32x64xi32>
    %c0_i32 = arith.constant 0 : i32
    %52 = vector.broadcast %c0_i32 : i32 to vector<32x64xi32>
    %53 = arith.addi %51, %52 : vector<32x64xi32>
    %54 = arith.cmpi eq, %49, %53 : vector<32x64xi32>
    %cst_27 = arith.constant 1.000000e+00 : f32
    %cst_28 = arith.constant 0.000000e+00 : f32
    %55 = vector.broadcast %cst_27 : f32 to vector<32x64xf32>
    %56 = vector.broadcast %cst_28 : f32 to vector<32x64xf32>
    %57 = arith.select %54, %55, %56 : vector<32x64xi1>, vector<32x64xf32>
    %cst_29 = arith.constant dense<0.000000e+00> : vector<32x8xf32>
    %58 = tpu.matmul %57, %1, %cst_29 {dimension_numbers = #tpu.dot_dimension_numbers<[1], [0], [0], [1], [0, 0, 1, 1], [], []>} : vector<32x64xf32>, vector<64x8xf32>, vector<32x8xf32> -> vector<32x8xf32>
    %c3 = arith.constant 3 : index
    %c0_30 = arith.constant 0 : index
    %c0_31 = arith.constant 0 : index
    %59 = vector.load %arg2[%c3, %c0_30, %c0_31] : memref<7x8x16xf32, #tpu.memory_space<vmem>>, vector<1x8x16xf32>
    %60 = vector.shape_cast %59 : vector<1x8x16xf32> to vector<8x16xf32>
    %cst_32 = arith.constant dense<0.000000e+00> : vector<32x16xf32>
    %61 = tpu.matmul %58, %60, %cst_32 {dimension_numbers = #tpu.dot_dimension_numbers<[1], [0], [0], [1], [0, 0, 1, 1], [], []>} : vector<32x8xf32>, vector<8x16xf32>, vector<32x16xf32> -> vector<32x16xf32>
    %62 = arith.addf %47, %61 : vector<32x16xf32>
    %63 = tpu.iota {dimensions = array<i32: 0>} : vector<32x64xi32>
    %64 = tpu.iota {dimensions = array<i32: 1>} : vector<32x64xi32>
    %c2_i32_33 = arith.constant 2 : i32
    %65 = vector.broadcast %c2_i32_33 : i32 to vector<32x64xi32>
    %66 = arith.muli %63, %65 : vector<32x64xi32>
    %c1_i32 = arith.constant 1 : i32
    %67 = vector.broadcast %c1_i32 : i32 to vector<32x64xi32>
    %68 = arith.addi %66, %67 : vector<32x64xi32>
    %69 = arith.cmpi eq, %64, %68 : vector<32x64xi32>
    %cst_34 = arith.constant 1.000000e+00 : f32
    %cst_35 = arith.constant 0.000000e+00 : f32
    %70 = vector.broadcast %cst_34 : f32 to vector<32x64xf32>
    %71 = vector.broadcast %cst_35 : f32 to vector<32x64xf32>
    %72 = arith.select %69, %70, %71 : vector<32x64xi1>, vector<32x64xf32>
    %cst_36 = arith.constant dense<0.000000e+00> : vector<32x8xf32>
    %73 = tpu.matmul %72, %1, %cst_36 {dimension_numbers = #tpu.dot_dimension_numbers<[1], [0], [0], [1], [0, 0, 1, 1], [], []>} : vector<32x64xf32>, vector<64x8xf32>, vector<32x8xf32> -> vector<32x8xf32>
    %c4 = arith.constant 4 : index
    %c0_37 = arith.constant 0 : index
    %c0_38 = arith.constant 0 : index
    %74 = vector.load %arg2[%c4, %c0_37, %c0_38] : memref<7x8x16xf32, #tpu.memory_space<vmem>>, vector<1x8x16xf32>
    %75 = vector.shape_cast %74 : vector<1x8x16xf32> to vector<8x16xf32>
    %cst_39 = arith.constant dense<0.000000e+00> : vector<32x16xf32>
    %76 = tpu.matmul %73, %75, %cst_39 {dimension_numbers = #tpu.dot_dimension_numbers<[1], [0], [0], [1], [0, 0, 1, 1], [], []>} : vector<32x8xf32>, vector<8x16xf32>, vector<32x16xf32> -> vector<32x16xf32>
    %77 = arith.addf %62, %76 : vector<32x16xf32>
    %78 = tpu.iota {dimensions = array<i32: 0>} : vector<32x64xi32>
    %79 = tpu.iota {dimensions = array<i32: 1>} : vector<32x64xi32>
    %c2_i32_40 = arith.constant 2 : i32
    %80 = vector.broadcast %c2_i32_40 : i32 to vector<32x64xi32>
    %81 = arith.muli %78, %80 : vector<32x64xi32>
    %c2_i32_41 = arith.constant 2 : i32
    %82 = vector.broadcast %c2_i32_41 : i32 to vector<32x64xi32>
    %83 = arith.addi %81, %82 : vector<32x64xi32>
    %84 = arith.cmpi eq, %79, %83 : vector<32x64xi32>
    %cst_42 = arith.constant 1.000000e+00 : f32
    %cst_43 = arith.constant 0.000000e+00 : f32
    %85 = vector.broadcast %cst_42 : f32 to vector<32x64xf32>
    %86 = vector.broadcast %cst_43 : f32 to vector<32x64xf32>
    %87 = arith.select %84, %85, %86 : vector<32x64xi1>, vector<32x64xf32>
    %cst_44 = arith.constant dense<0.000000e+00> : vector<32x8xf32>
    %88 = tpu.matmul %87, %1, %cst_44 {dimension_numbers = #tpu.dot_dimension_numbers<[1], [0], [0], [1], [0, 0, 1, 1], [], []>} : vector<32x64xf32>, vector<64x8xf32>, vector<32x8xf32> -> vector<32x8xf32>
    %c5 = arith.constant 5 : index
    %c0_45 = arith.constant 0 : index
    %c0_46 = arith.constant 0 : index
    %89 = vector.load %arg2[%c5, %c0_45, %c0_46] : memref<7x8x16xf32, #tpu.memory_space<vmem>>, vector<1x8x16xf32>
    %90 = vector.shape_cast %89 : vector<1x8x16xf32> to vector<8x16xf32>
    %cst_47 = arith.constant dense<0.000000e+00> : vector<32x16xf32>
    %91 = tpu.matmul %88, %90, %cst_47 {dimension_numbers = #tpu.dot_dimension_numbers<[1], [0], [0], [1], [0, 0, 1, 1], [], []>} : vector<32x8xf32>, vector<8x16xf32>, vector<32x16xf32> -> vector<32x16xf32>
    %92 = arith.addf %77, %91 : vector<32x16xf32>
    %93 = tpu.iota {dimensions = array<i32: 0>} : vector<32x64xi32>
    %94 = tpu.iota {dimensions = array<i32: 1>} : vector<32x64xi32>
    %c2_i32_48 = arith.constant 2 : i32
    %95 = vector.broadcast %c2_i32_48 : i32 to vector<32x64xi32>
    %96 = arith.muli %93, %95 : vector<32x64xi32>
    %c3_i32 = arith.constant 3 : i32
    %97 = vector.broadcast %c3_i32 : i32 to vector<32x64xi32>
    %98 = arith.addi %96, %97 : vector<32x64xi32>
    %99 = arith.cmpi eq, %94, %98 : vector<32x64xi32>
    %cst_49 = arith.constant 1.000000e+00 : f32
    %cst_50 = arith.constant 0.000000e+00 : f32
    %100 = vector.broadcast %cst_49 : f32 to vector<32x64xf32>
    %101 = vector.broadcast %cst_50 : f32 to vector<32x64xf32>
    %102 = arith.select %99, %100, %101 : vector<32x64xi1>, vector<32x64xf32>
    %cst_51 = arith.constant dense<0.000000e+00> : vector<32x8xf32>
    %103 = tpu.matmul %102, %1, %cst_51 {dimension_numbers = #tpu.dot_dimension_numbers<[1], [0], [0], [1], [0, 0, 1, 1], [], []>} : vector<32x64xf32>, vector<64x8xf32>, vector<32x8xf32> -> vector<32x8xf32>
    %c6 = arith.constant 6 : index
    %c0_52 = arith.constant 0 : index
    %c0_53 = arith.constant 0 : index
    %104 = vector.load %arg2[%c6, %c0_52, %c0_53] : memref<7x8x16xf32, #tpu.memory_space<vmem>>, vector<1x8x16xf32>
    %105 = vector.shape_cast %104 : vector<1x8x16xf32> to vector<8x16xf32>
    %cst_54 = arith.constant dense<0.000000e+00> : vector<32x16xf32>
    %106 = tpu.matmul %103, %105, %cst_54 {dimension_numbers = #tpu.dot_dimension_numbers<[1], [0], [0], [1], [0, 0, 1, 1], [], []>} : vector<32x8xf32>, vector<8x16xf32>, vector<32x16xf32> -> vector<32x16xf32>
    %107 = arith.addf %92, %106 : vector<32x16xf32>
    %108 = vector.broadcast %2 : vector<1x16xf32> to vector<32x16xf32>
    %109 = arith.mulf %107, %108 : vector<32x16xf32>
    %110 = vector.broadcast %3 : vector<1x16xf32> to vector<32x16xf32>
    %111 = arith.addf %109, %110 : vector<32x16xf32>
    %cst_55 = arith.constant 0.000000e+00 : f32
    %112 = vector.broadcast %cst_55 : f32 to vector<32x16xf32>
    %113 = arith.maximumf %111, %112 : vector<32x16xf32>
    %114 = tpu.iota {dimensions = array<i32: 0>} : vector<16x32xi32>
    %115 = tpu.iota {dimensions = array<i32: 1>} : vector<16x32xi32>
    %c2_i32_56 = arith.constant 2 : i32
    %116 = vector.broadcast %c2_i32_56 : i32 to vector<16x32xi32>
    %117 = arith.muli %114, %116 : vector<16x32xi32>
    %c-1_i32_57 = arith.constant -1 : i32
    %118 = vector.broadcast %c-1_i32_57 : i32 to vector<16x32xi32>
    %119 = arith.addi %117, %118 : vector<16x32xi32>
    %120 = arith.cmpi eq, %115, %119 : vector<16x32xi32>
    %cst_58 = arith.constant 1.000000e+00 : f32
    %cst_59 = arith.constant 0.000000e+00 : f32
    %121 = vector.broadcast %cst_58 : f32 to vector<16x32xf32>
    %122 = vector.broadcast %cst_59 : f32 to vector<16x32xf32>
    %123 = arith.select %120, %121, %122 : vector<16x32xi1>, vector<16x32xf32>
    %cst_60 = arith.constant dense<0.000000e+00> : vector<16x16xf32>
    %124 = tpu.matmul %123, %113, %cst_60 {dimension_numbers = #tpu.dot_dimension_numbers<[1], [0], [0], [1], [0, 0, 1, 1], [], []>} : vector<16x32xf32>, vector<32x16xf32>, vector<16x16xf32> -> vector<16x16xf32>
    %125 = tpu.iota {dimensions = array<i32: 0>} : vector<16x32xi32>
    %126 = tpu.iota {dimensions = array<i32: 1>} : vector<16x32xi32>
    %c2_i32_61 = arith.constant 2 : i32
    %127 = vector.broadcast %c2_i32_61 : i32 to vector<16x32xi32>
    %128 = arith.muli %125, %127 : vector<16x32xi32>
    %c0_i32_62 = arith.constant 0 : i32
    %129 = vector.broadcast %c0_i32_62 : i32 to vector<16x32xi32>
    %130 = arith.addi %128, %129 : vector<16x32xi32>
    %131 = arith.cmpi eq, %126, %130 : vector<16x32xi32>
    %cst_63 = arith.constant 1.000000e+00 : f32
    %cst_64 = arith.constant 0.000000e+00 : f32
    %132 = vector.broadcast %cst_63 : f32 to vector<16x32xf32>
    %133 = vector.broadcast %cst_64 : f32 to vector<16x32xf32>
    %134 = arith.select %131, %132, %133 : vector<16x32xi1>, vector<16x32xf32>
    %cst_65 = arith.constant dense<0.000000e+00> : vector<16x16xf32>
    %135 = tpu.matmul %134, %113, %cst_65 {dimension_numbers = #tpu.dot_dimension_numbers<[1], [0], [0], [1], [0, 0, 1, 1], [], []>} : vector<16x32xf32>, vector<32x16xf32>, vector<16x16xf32> -> vector<16x16xf32>
    %136 = tpu.iota {dimensions = array<i32: 0>} : vector<16x32xi32>
    %137 = tpu.iota {dimensions = array<i32: 1>} : vector<16x32xi32>
    %c2_i32_66 = arith.constant 2 : i32
    %138 = vector.broadcast %c2_i32_66 : i32 to vector<16x32xi32>
    %139 = arith.muli %136, %138 : vector<16x32xi32>
    %c1_i32_67 = arith.constant 1 : i32
    %140 = vector.broadcast %c1_i32_67 : i32 to vector<16x32xi32>
    %141 = arith.addi %139, %140 : vector<16x32xi32>
    %142 = arith.cmpi eq, %137, %141 : vector<16x32xi32>
    %cst_68 = arith.constant 1.000000e+00 : f32
    %cst_69 = arith.constant 0.000000e+00 : f32
    %143 = vector.broadcast %cst_68 : f32 to vector<16x32xf32>
    %144 = vector.broadcast %cst_69 : f32 to vector<16x32xf32>
    %145 = arith.select %142, %143, %144 : vector<16x32xi1>, vector<16x32xf32>
    %cst_70 = arith.constant dense<0.000000e+00> : vector<16x16xf32>
    %146 = tpu.matmul %145, %113, %cst_70 {dimension_numbers = #tpu.dot_dimension_numbers<[1], [0], [0], [1], [0, 0, 1, 1], [], []>} : vector<16x32xf32>, vector<32x16xf32>, vector<16x16xf32> -> vector<16x16xf32>
    %147 = arith.maximumf %124, %135 : vector<16x16xf32>
    %148 = arith.maximumf %147, %146 : vector<16x16xf32>
    %c0_71 = arith.constant 0 : index
    %c0_72 = arith.constant 0 : index
    %149 = vector.load %arg6[%c0_71, %c0_72] : memref<1x16xf32, #tpu.memory_space<vmem>>, vector<1x16xf32>
    %c0_73 = arith.constant 0 : index
    %c0_74 = arith.constant 0 : index
    %150 = vector.load %arg7[%c0_73, %c0_74] : memref<1x16xf32, #tpu.memory_space<vmem>>, vector<1x16xf32>
    %151 = tpu.iota {dimensions = array<i32: 0>} : vector<16x16xi32>
    %152 = tpu.iota {dimensions = array<i32: 1>} : vector<16x16xi32>
    %c1_i32_75 = arith.constant 1 : i32
    %153 = vector.broadcast %c1_i32_75 : i32 to vector<16x16xi32>
    %154 = arith.muli %151, %153 : vector<16x16xi32>
    %c-1_i32_76 = arith.constant -1 : i32
    %155 = vector.broadcast %c-1_i32_76 : i32 to vector<16x16xi32>
    %156 = arith.addi %154, %155 : vector<16x16xi32>
    %157 = arith.cmpi eq, %152, %156 : vector<16x16xi32>
    %cst_77 = arith.constant 1.000000e+00 : f32
    %cst_78 = arith.constant 0.000000e+00 : f32
    %158 = vector.broadcast %cst_77 : f32 to vector<16x16xf32>
    %159 = vector.broadcast %cst_78 : f32 to vector<16x16xf32>
    %160 = arith.select %157, %158, %159 : vector<16x16xi1>, vector<16x16xf32>
    %cst_79 = arith.constant dense<0.000000e+00> : vector<16x16xf32>
    %161 = tpu.matmul %160, %148, %cst_79 {dimension_numbers = #tpu.dot_dimension_numbers<[1], [0], [0], [1], [0, 0, 1, 1], [], []>} : vector<16x16xf32>, vector<16x16xf32>, vector<16x16xf32> -> vector<16x16xf32>
    %c0_80 = arith.constant 0 : index
    %c0_81 = arith.constant 0 : index
    %c0_82 = arith.constant 0 : index
    %162 = vector.load %arg5[%c0_80, %c0_81, %c0_82] : memref<3x16x16xf32, #tpu.memory_space<vmem>>, vector<1x16x16xf32>
    %163 = vector.shape_cast %162 : vector<1x16x16xf32> to vector<16x16xf32>
    %cst_83 = arith.constant dense<0.000000e+00> : vector<16x16xf32>
    %164 = tpu.matmul %161, %163, %cst_83 {dimension_numbers = #tpu.dot_dimension_numbers<[1], [0], [0], [1], [0, 0, 1, 1], [], []>} : vector<16x16xf32>, vector<16x16xf32>, vector<16x16xf32> -> vector<16x16xf32>
    %165 = tpu.iota {dimensions = array<i32: 0>} : vector<16x16xi32>
    %166 = tpu.iota {dimensions = array<i32: 1>} : vector<16x16xi32>
    %c1_i32_84 = arith.constant 1 : i32
    %167 = vector.broadcast %c1_i32_84 : i32 to vector<16x16xi32>
    %168 = arith.muli %165, %167 : vector<16x16xi32>
    %c0_i32_85 = arith.constant 0 : i32
    %169 = vector.broadcast %c0_i32_85 : i32 to vector<16x16xi32>
    %170 = arith.addi %168, %169 : vector<16x16xi32>
    %171 = arith.cmpi eq, %166, %170 : vector<16x16xi32>
    %cst_86 = arith.constant 1.000000e+00 : f32
    %cst_87 = arith.constant 0.000000e+00 : f32
    %172 = vector.broadcast %cst_86 : f32 to vector<16x16xf32>
    %173 = vector.broadcast %cst_87 : f32 to vector<16x16xf32>
    %174 = arith.select %171, %172, %173 : vector<16x16xi1>, vector<16x16xf32>
    %cst_88 = arith.constant dense<0.000000e+00> : vector<16x16xf32>
    %175 = tpu.matmul %174, %148, %cst_88 {dimension_numbers = #tpu.dot_dimension_numbers<[1], [0], [0], [1], [0, 0, 1, 1], [], []>} : vector<16x16xf32>, vector<16x16xf32>, vector<16x16xf32> -> vector<16x16xf32>
    %c1_89 = arith.constant 1 : index
    %c0_90 = arith.constant 0 : index
    %c0_91 = arith.constant 0 : index
    %176 = vector.load %arg5[%c1_89, %c0_90, %c0_91] : memref<3x16x16xf32, #tpu.memory_space<vmem>>, vector<1x16x16xf32>
    %177 = vector.shape_cast %176 : vector<1x16x16xf32> to vector<16x16xf32>
    %cst_92 = arith.constant dense<0.000000e+00> : vector<16x16xf32>
    %178 = tpu.matmul %175, %177, %cst_92 {dimension_numbers = #tpu.dot_dimension_numbers<[1], [0], [0], [1], [0, 0, 1, 1], [], []>} : vector<16x16xf32>, vector<16x16xf32>, vector<16x16xf32> -> vector<16x16xf32>
    %179 = arith.addf %164, %178 : vector<16x16xf32>
    %180 = tpu.iota {dimensions = array<i32: 0>} : vector<16x16xi32>
    %181 = tpu.iota {dimensions = array<i32: 1>} : vector<16x16xi32>
    %c1_i32_93 = arith.constant 1 : i32
    %182 = vector.broadcast %c1_i32_93 : i32 to vector<16x16xi32>
    %183 = arith.muli %180, %182 : vector<16x16xi32>
    %c1_i32_94 = arith.constant 1 : i32
    %184 = vector.broadcast %c1_i32_94 : i32 to vector<16x16xi32>
    %185 = arith.addi %183, %184 : vector<16x16xi32>
    %186 = arith.cmpi eq, %181, %185 : vector<16x16xi32>
    %cst_95 = arith.constant 1.000000e+00 : f32
    %cst_96 = arith.constant 0.000000e+00 : f32
    %187 = vector.broadcast %cst_95 : f32 to vector<16x16xf32>
    %188 = vector.broadcast %cst_96 : f32 to vector<16x16xf32>
    %189 = arith.select %186, %187, %188 : vector<16x16xi1>, vector<16x16xf32>
    %cst_97 = arith.constant dense<0.000000e+00> : vector<16x16xf32>
    %190 = tpu.matmul %189, %148, %cst_97 {dimension_numbers = #tpu.dot_dimension_numbers<[1], [0], [0], [1], [0, 0, 1, 1], [], []>} : vector<16x16xf32>, vector<16x16xf32>, vector<16x16xf32> -> vector<16x16xf32>
    %c2_98 = arith.constant 2 : index
    %c0_99 = arith.constant 0 : index
    %c0_100 = arith.constant 0 : index
    %191 = vector.load %arg5[%c2_98, %c0_99, %c0_100] : memref<3x16x16xf32, #tpu.memory_space<vmem>>, vector<1x16x16xf32>
    %192 = vector.shape_cast %191 : vector<1x16x16xf32> to vector<16x16xf32>
    %cst_101 = arith.constant dense<0.000000e+00> : vector<16x16xf32>
    %193 = tpu.matmul %190, %192, %cst_101 {dimension_numbers = #tpu.dot_dimension_numbers<[1], [0], [0], [1], [0, 0, 1, 1], [], []>} : vector<16x16xf32>, vector<16x16xf32>, vector<16x16xf32> -> vector<16x16xf32>
    %194 = arith.addf %179, %193 : vector<16x16xf32>
    %195 = vector.broadcast %149 : vector<1x16xf32> to vector<16x16xf32>
    %196 = arith.mulf %194, %195 : vector<16x16xf32>
    %197 = vector.broadcast %150 : vector<1x16xf32> to vector<16x16xf32>
    %198 = arith.addf %196, %197 : vector<16x16xf32>
    %cst_102 = arith.constant 0.000000e+00 : f32
    %199 = vector.broadcast %cst_102 : f32 to vector<16x16xf32>
    %200 = arith.maximumf %198, %199 : vector<16x16xf32>
    %c0_103 = arith.constant 0 : index
    %c0_104 = arith.constant 0 : index
    %201 = vector.load %arg9[%c0_103, %c0_104] : memref<1x16xf32, #tpu.memory_space<vmem>>, vector<1x16xf32>
    %c0_105 = arith.constant 0 : index
    %c0_106 = arith.constant 0 : index
    %202 = vector.load %arg10[%c0_105, %c0_106] : memref<1x16xf32, #tpu.memory_space<vmem>>, vector<1x16xf32>
    %203 = tpu.iota {dimensions = array<i32: 0>} : vector<16x16xi32>
    %204 = tpu.iota {dimensions = array<i32: 1>} : vector<16x16xi32>
    %c1_i32_107 = arith.constant 1 : i32
    %205 = vector.broadcast %c1_i32_107 : i32 to vector<16x16xi32>
    %206 = arith.muli %203, %205 : vector<16x16xi32>
    %c-1_i32_108 = arith.constant -1 : i32
    %207 = vector.broadcast %c-1_i32_108 : i32 to vector<16x16xi32>
    %208 = arith.addi %206, %207 : vector<16x16xi32>
    %209 = arith.cmpi eq, %204, %208 : vector<16x16xi32>
    %cst_109 = arith.constant 1.000000e+00 : f32
    %cst_110 = arith.constant 0.000000e+00 : f32
    %210 = vector.broadcast %cst_109 : f32 to vector<16x16xf32>
    %211 = vector.broadcast %cst_110 : f32 to vector<16x16xf32>
    %212 = arith.select %209, %210, %211 : vector<16x16xi1>, vector<16x16xf32>
    %cst_111 = arith.constant dense<0.000000e+00> : vector<16x16xf32>
    %213 = tpu.matmul %212, %200, %cst_111 {dimension_numbers = #tpu.dot_dimension_numbers<[1], [0], [0], [1], [0, 0, 1, 1], [], []>} : vector<16x16xf32>, vector<16x16xf32>, vector<16x16xf32> -> vector<16x16xf32>
    %c0_112 = arith.constant 0 : index
    %c0_113 = arith.constant 0 : index
    %c0_114 = arith.constant 0 : index
    %214 = vector.load %arg8[%c0_112, %c0_113, %c0_114] : memref<3x16x16xf32, #tpu.memory_space<vmem>>, vector<1x16x16xf32>
    %215 = vector.shape_cast %214 : vector<1x16x16xf32> to vector<16x16xf32>
    %cst_115 = arith.constant dense<0.000000e+00> : vector<16x16xf32>
    %216 = tpu.matmul %213, %215, %cst_115 {dimension_numbers = #tpu.dot_dimension_numbers<[1], [0], [0], [1], [0, 0, 1, 1], [], []>} : vector<16x16xf32>, vector<16x16xf32>, vector<16x16xf32> -> vector<16x16xf32>
    %217 = tpu.iota {dimensions = array<i32: 0>} : vector<16x16xi32>
    %218 = tpu.iota {dimensions = array<i32: 1>} : vector<16x16xi32>
    %c1_i32_116 = arith.constant 1 : i32
    %219 = vector.broadcast %c1_i32_116 : i32 to vector<16x16xi32>
    %220 = arith.muli %217, %219 : vector<16x16xi32>
    %c0_i32_117 = arith.constant 0 : i32
    %221 = vector.broadcast %c0_i32_117 : i32 to vector<16x16xi32>
    %222 = arith.addi %220, %221 : vector<16x16xi32>
    %223 = arith.cmpi eq, %218, %222 : vector<16x16xi32>
    %cst_118 = arith.constant 1.000000e+00 : f32
    %cst_119 = arith.constant 0.000000e+00 : f32
    %224 = vector.broadcast %cst_118 : f32 to vector<16x16xf32>
    %225 = vector.broadcast %cst_119 : f32 to vector<16x16xf32>
    %226 = arith.select %223, %224, %225 : vector<16x16xi1>, vector<16x16xf32>
    %cst_120 = arith.constant dense<0.000000e+00> : vector<16x16xf32>
    %227 = tpu.matmul %226, %200, %cst_120 {dimension_numbers = #tpu.dot_dimension_numbers<[1], [0], [0], [1], [0, 0, 1, 1], [], []>} : vector<16x16xf32>, vector<16x16xf32>, vector<16x16xf32> -> vector<16x16xf32>
    %c1_121 = arith.constant 1 : index
    %c0_122 = arith.constant 0 : index
    %c0_123 = arith.constant 0 : index
    %228 = vector.load %arg8[%c1_121, %c0_122, %c0_123] : memref<3x16x16xf32, #tpu.memory_space<vmem>>, vector<1x16x16xf32>
    %229 = vector.shape_cast %228 : vector<1x16x16xf32> to vector<16x16xf32>
    %cst_124 = arith.constant dense<0.000000e+00> : vector<16x16xf32>
    %230 = tpu.matmul %227, %229, %cst_124 {dimension_numbers = #tpu.dot_dimension_numbers<[1], [0], [0], [1], [0, 0, 1, 1], [], []>} : vector<16x16xf32>, vector<16x16xf32>, vector<16x16xf32> -> vector<16x16xf32>
    %231 = arith.addf %216, %230 : vector<16x16xf32>
    %232 = tpu.iota {dimensions = array<i32: 0>} : vector<16x16xi32>
    %233 = tpu.iota {dimensions = array<i32: 1>} : vector<16x16xi32>
    %c1_i32_125 = arith.constant 1 : i32
    %234 = vector.broadcast %c1_i32_125 : i32 to vector<16x16xi32>
    %235 = arith.muli %232, %234 : vector<16x16xi32>
    %c1_i32_126 = arith.constant 1 : i32
    %236 = vector.broadcast %c1_i32_126 : i32 to vector<16x16xi32>
    %237 = arith.addi %235, %236 : vector<16x16xi32>
    %238 = arith.cmpi eq, %233, %237 : vector<16x16xi32>
    %cst_127 = arith.constant 1.000000e+00 : f32
    %cst_128 = arith.constant 0.000000e+00 : f32
    %239 = vector.broadcast %cst_127 : f32 to vector<16x16xf32>
    %240 = vector.broadcast %cst_128 : f32 to vector<16x16xf32>
    %241 = arith.select %238, %239, %240 : vector<16x16xi1>, vector<16x16xf32>
    %cst_129 = arith.constant dense<0.000000e+00> : vector<16x16xf32>
    %242 = tpu.matmul %241, %200, %cst_129 {dimension_numbers = #tpu.dot_dimension_numbers<[1], [0], [0], [1], [0, 0, 1, 1], [], []>} : vector<16x16xf32>, vector<16x16xf32>, vector<16x16xf32> -> vector<16x16xf32>
    %c2_130 = arith.constant 2 : index
    %c0_131 = arith.constant 0 : index
    %c0_132 = arith.constant 0 : index
    %243 = vector.load %arg8[%c2_130, %c0_131, %c0_132] : memref<3x16x16xf32, #tpu.memory_space<vmem>>, vector<1x16x16xf32>
    %244 = vector.shape_cast %243 : vector<1x16x16xf32> to vector<16x16xf32>
    %cst_133 = arith.constant dense<0.000000e+00> : vector<16x16xf32>
    %245 = tpu.matmul %242, %244, %cst_133 {dimension_numbers = #tpu.dot_dimension_numbers<[1], [0], [0], [1], [0, 0, 1, 1], [], []>} : vector<16x16xf32>, vector<16x16xf32>, vector<16x16xf32> -> vector<16x16xf32>
    %246 = arith.addf %231, %245 : vector<16x16xf32>
    %247 = vector.broadcast %201 : vector<1x16xf32> to vector<16x16xf32>
    %248 = arith.mulf %246, %247 : vector<16x16xf32>
    %249 = vector.broadcast %202 : vector<1x16xf32> to vector<16x16xf32>
    %250 = arith.addf %248, %249 : vector<16x16xf32>
    %c0_134 = arith.constant 0 : index
    %c0_135 = arith.constant 0 : index
    %251 = vector.load %arg11[%c0_134, %c0_135] : memref<16x1xf32, #tpu.memory_space<vmem>>, vector<16x1xf32>
    %c0_136 = arith.constant 0 : index
    %c0_137 = arith.constant 0 : index
    %252 = vector.load %arg12[%c0_136, %c0_137] : memref<1x1xf32, #tpu.memory_space<vmem>>, vector<1x1xf32>
    %c0_138 = arith.constant 0 : index
    %c0_139 = arith.constant 0 : index
    %253 = vector.load %arg13[%c0_138, %c0_139] : memref<1x16xf32, #tpu.memory_space<vmem>>, vector<1x16xf32>
    %c0_140 = arith.constant 0 : index
    %c0_141 = arith.constant 0 : index
    %254 = vector.load %arg14[%c0_140, %c0_141] : memref<1x16xf32, #tpu.memory_space<vmem>>, vector<1x16xf32>
    %cst_142 = arith.constant dense<0.000000e+00> : vector<16xf32>
    %255 = vector.multi_reduction <add>, %250, %cst_142 [0] : vector<16x16xf32> to vector<16xf32>
    %256 = vector.shape_cast %255 : vector<16xf32> to vector<1x16xf32>
    %cst_143 = arith.constant 1.600000e+01 : f32
    %257 = vector.broadcast %cst_143 : f32 to vector<1x16xf32>
    %258 = arith.divf %256, %257 : vector<1x16xf32>
    %cst_144 = arith.constant dense<0.000000e+00> : vector<1x1xf32>
    %259 = tpu.matmul %258, %251, %cst_144 {dimension_numbers = #tpu.dot_dimension_numbers<[1], [0], [0], [1], [0, 0, 1, 1], [], []>} : vector<1x16xf32>, vector<16x1xf32>, vector<1x1xf32> -> vector<1x1xf32>
    %260 = arith.addf %259, %252 : vector<1x1xf32>
    %cst_145 = arith.constant 0.000000e+00 : f32
    %261 = vector.broadcast %cst_145 : f32 to vector<1x1xf32>
    %262 = arith.maximumf %260, %261 : vector<1x1xf32>
    %cst_146 = arith.constant dense<0.000000e+00> : vector<1x16xf32>
    %263 = tpu.matmul %262, %253, %cst_146 {dimension_numbers = #tpu.dot_dimension_numbers<[1], [0], [0], [1], [0, 0, 1, 1], [], []>} : vector<1x1xf32>, vector<1x16xf32>, vector<1x16xf32> -> vector<1x16xf32>
    %264 = arith.addf %263, %254 : vector<1x16xf32>
    %cst_147 = arith.constant 0.000000e+00 : f32
    %265 = vector.broadcast %cst_147 : f32 to vector<1x16xf32>
    %266 = arith.subf %265, %264 : vector<1x16xf32>
    %267 = math.exp %266 : vector<1x16xf32>
    %cst_148 = arith.constant 1.000000e+00 : f32
    %268 = vector.broadcast %cst_148 : f32 to vector<1x16xf32>
    %269 = arith.addf %268, %267 : vector<1x16xf32>
    %cst_149 = arith.constant 1.000000e+00 : f32
    %270 = vector.broadcast %cst_149 : f32 to vector<1x16xf32>
    %271 = arith.divf %270, %269 : vector<1x16xf32>
    %272 = vector.broadcast %271 : vector<1x16xf32> to vector<16x16xf32>
    %273 = arith.mulf %250, %272 : vector<16x16xf32>
    %274 = arith.addf %273, %148 : vector<16x16xf32>
    %cst_150 = arith.constant 0.000000e+00 : f32
    %275 = vector.broadcast %cst_150 : f32 to vector<16x16xf32>
    %276 = arith.maximumf %274, %275 : vector<16x16xf32>
    %c0_151 = arith.constant 0 : index
    %c0_152 = arith.constant 0 : index
    %277 = vector.load %arg16[%c0_151, %c0_152] : memref<1x32xf32, #tpu.memory_space<vmem>>, vector<1x32xf32>
    %c0_153 = arith.constant 0 : index
    %c0_154 = arith.constant 0 : index
    %278 = vector.load %arg17[%c0_153, %c0_154] : memref<1x32xf32, #tpu.memory_space<vmem>>, vector<1x32xf32>
    %279 = tpu.iota {dimensions = array<i32: 0>} : vector<8x16xi32>
    %280 = tpu.iota {dimensions = array<i32: 1>} : vector<8x16xi32>
    %c2_i32_155 = arith.constant 2 : i32
    %281 = vector.broadcast %c2_i32_155 : i32 to vector<8x16xi32>
    %282 = arith.muli %279, %281 : vector<8x16xi32>
    %c-1_i32_156 = arith.constant -1 : i32
    %283 = vector.broadcast %c-1_i32_156 : i32 to vector<8x16xi32>
    %284 = arith.addi %282, %283 : vector<8x16xi32>
    %285 = arith.cmpi eq, %280, %284 : vector<8x16xi32>
    %cst_157 = arith.constant 1.000000e+00 : f32
    %cst_158 = arith.constant 0.000000e+00 : f32
    %286 = vector.broadcast %cst_157 : f32 to vector<8x16xf32>
    %287 = vector.broadcast %cst_158 : f32 to vector<8x16xf32>
    %288 = arith.select %285, %286, %287 : vector<8x16xi1>, vector<8x16xf32>
    %cst_159 = arith.constant dense<0.000000e+00> : vector<8x16xf32>
    %289 = tpu.matmul %288, %276, %cst_159 {dimension_numbers = #tpu.dot_dimension_numbers<[1], [0], [0], [1], [0, 0, 1, 1], [], []>} : vector<8x16xf32>, vector<16x16xf32>, vector<8x16xf32> -> vector<8x16xf32>
    %c0_160 = arith.constant 0 : index
    %c0_161 = arith.constant 0 : index
    %c0_162 = arith.constant 0 : index
    %290 = vector.load %arg15[%c0_160, %c0_161, %c0_162] : memref<3x16x32xf32, #tpu.memory_space<vmem>>, vector<1x16x32xf32>
    %291 = vector.shape_cast %290 : vector<1x16x32xf32> to vector<16x32xf32>
    %cst_163 = arith.constant dense<0.000000e+00> : vector<8x32xf32>
    %292 = tpu.matmul %289, %291, %cst_163 {dimension_numbers = #tpu.dot_dimension_numbers<[1], [0], [0], [1], [0, 0, 1, 1], [], []>} : vector<8x16xf32>, vector<16x32xf32>, vector<8x32xf32> -> vector<8x32xf32>
    %293 = tpu.iota {dimensions = array<i32: 0>} : vector<8x16xi32>
    %294 = tpu.iota {dimensions = array<i32: 1>} : vector<8x16xi32>
    %c2_i32_164 = arith.constant 2 : i32
    %295 = vector.broadcast %c2_i32_164 : i32 to vector<8x16xi32>
    %296 = arith.muli %293, %295 : vector<8x16xi32>
    %c0_i32_165 = arith.constant 0 : i32
    %297 = vector.broadcast %c0_i32_165 : i32 to vector<8x16xi32>
    %298 = arith.addi %296, %297 : vector<8x16xi32>
    %299 = arith.cmpi eq, %294, %298 : vector<8x16xi32>
    %cst_166 = arith.constant 1.000000e+00 : f32
    %cst_167 = arith.constant 0.000000e+00 : f32
    %300 = vector.broadcast %cst_166 : f32 to vector<8x16xf32>
    %301 = vector.broadcast %cst_167 : f32 to vector<8x16xf32>
    %302 = arith.select %299, %300, %301 : vector<8x16xi1>, vector<8x16xf32>
    %cst_168 = arith.constant dense<0.000000e+00> : vector<8x16xf32>
    %303 = tpu.matmul %302, %276, %cst_168 {dimension_numbers = #tpu.dot_dimension_numbers<[1], [0], [0], [1], [0, 0, 1, 1], [], []>} : vector<8x16xf32>, vector<16x16xf32>, vector<8x16xf32> -> vector<8x16xf32>
    %c1_169 = arith.constant 1 : index
    %c0_170 = arith.constant 0 : index
    %c0_171 = arith.constant 0 : index
    %304 = vector.load %arg15[%c1_169, %c0_170, %c0_171] : memref<3x16x32xf32, #tpu.memory_space<vmem>>, vector<1x16x32xf32>
    %305 = vector.shape_cast %304 : vector<1x16x32xf32> to vector<16x32xf32>
    %cst_172 = arith.constant dense<0.000000e+00> : vector<8x32xf32>
    %306 = tpu.matmul %303, %305, %cst_172 {dimension_numbers = #tpu.dot_dimension_numbers<[1], [0], [0], [1], [0, 0, 1, 1], [], []>} : vector<8x16xf32>, vector<16x32xf32>, vector<8x32xf32> -> vector<8x32xf32>
    %307 = arith.addf %292, %306 : vector<8x32xf32>
    %308 = tpu.iota {dimensions = array<i32: 0>} : vector<8x16xi32>
    %309 = tpu.iota {dimensions = array<i32: 1>} : vector<8x16xi32>
    %c2_i32_173 = arith.constant 2 : i32
    %310 = vector.broadcast %c2_i32_173 : i32 to vector<8x16xi32>
    %311 = arith.muli %308, %310 : vector<8x16xi32>
    %c1_i32_174 = arith.constant 1 : i32
    %312 = vector.broadcast %c1_i32_174 : i32 to vector<8x16xi32>
    %313 = arith.addi %311, %312 : vector<8x16xi32>
    %314 = arith.cmpi eq, %309, %313 : vector<8x16xi32>
    %cst_175 = arith.constant 1.000000e+00 : f32
    %cst_176 = arith.constant 0.000000e+00 : f32
    %315 = vector.broadcast %cst_175 : f32 to vector<8x16xf32>
    %316 = vector.broadcast %cst_176 : f32 to vector<8x16xf32>
    %317 = arith.select %314, %315, %316 : vector<8x16xi1>, vector<8x16xf32>
    %cst_177 = arith.constant dense<0.000000e+00> : vector<8x16xf32>
    %318 = tpu.matmul %317, %276, %cst_177 {dimension_numbers = #tpu.dot_dimension_numbers<[1], [0], [0], [1], [0, 0, 1, 1], [], []>} : vector<8x16xf32>, vector<16x16xf32>, vector<8x16xf32> -> vector<8x16xf32>
    %c2_178 = arith.constant 2 : index
    %c0_179 = arith.constant 0 : index
    %c0_180 = arith.constant 0 : index
    %319 = vector.load %arg15[%c2_178, %c0_179, %c0_180] : memref<3x16x32xf32, #tpu.memory_space<vmem>>, vector<1x16x32xf32>
    %320 = vector.shape_cast %319 : vector<1x16x32xf32> to vector<16x32xf32>
    %cst_181 = arith.constant dense<0.000000e+00> : vector<8x32xf32>
    %321 = tpu.matmul %318, %320, %cst_181 {dimension_numbers = #tpu.dot_dimension_numbers<[1], [0], [0], [1], [0, 0, 1, 1], [], []>} : vector<8x16xf32>, vector<16x32xf32>, vector<8x32xf32> -> vector<8x32xf32>
    %322 = arith.addf %307, %321 : vector<8x32xf32>
    %323 = vector.broadcast %277 : vector<1x32xf32> to vector<8x32xf32>
    %324 = arith.mulf %322, %323 : vector<8x32xf32>
    %325 = vector.broadcast %278 : vector<1x32xf32> to vector<8x32xf32>
    %326 = arith.addf %324, %325 : vector<8x32xf32>
    %cst_182 = arith.constant 0.000000e+00 : f32
    %327 = vector.broadcast %cst_182 : f32 to vector<8x32xf32>
    %328 = arith.maximumf %326, %327 : vector<8x32xf32>
    %c0_183 = arith.constant 0 : index
    %c0_184 = arith.constant 0 : index
    %329 = vector.load %arg19[%c0_183, %c0_184] : memref<1x32xf32, #tpu.memory_space<vmem>>, vector<1x32xf32>
    %c0_185 = arith.constant 0 : index
    %c0_186 = arith.constant 0 : index
    %330 = vector.load %arg20[%c0_185, %c0_186] : memref<1x32xf32, #tpu.memory_space<vmem>>, vector<1x32xf32>
    %331 = tpu.iota {dimensions = array<i32: 0>} : vector<8x8xi32>
    %332 = tpu.iota {dimensions = array<i32: 1>} : vector<8x8xi32>
    %c1_i32_187 = arith.constant 1 : i32
    %333 = vector.broadcast %c1_i32_187 : i32 to vector<8x8xi32>
    %334 = arith.muli %331, %333 : vector<8x8xi32>
    %c-1_i32_188 = arith.constant -1 : i32
    %335 = vector.broadcast %c-1_i32_188 : i32 to vector<8x8xi32>
    %336 = arith.addi %334, %335 : vector<8x8xi32>
    %337 = arith.cmpi eq, %332, %336 : vector<8x8xi32>
    %cst_189 = arith.constant 1.000000e+00 : f32
    %cst_190 = arith.constant 0.000000e+00 : f32
    %338 = vector.broadcast %cst_189 : f32 to vector<8x8xf32>
    %339 = vector.broadcast %cst_190 : f32 to vector<8x8xf32>
    %340 = arith.select %337, %338, %339 : vector<8x8xi1>, vector<8x8xf32>
    %cst_191 = arith.constant dense<0.000000e+00> : vector<8x32xf32>
    %341 = tpu.matmul %340, %328, %cst_191 {dimension_numbers = #tpu.dot_dimension_numbers<[1], [0], [0], [1], [0, 0, 1, 1], [], []>} : vector<8x8xf32>, vector<8x32xf32>, vector<8x32xf32> -> vector<8x32xf32>
    %c0_192 = arith.constant 0 : index
    %c0_193 = arith.constant 0 : index
    %c0_194 = arith.constant 0 : index
    %342 = vector.load %arg18[%c0_192, %c0_193, %c0_194] : memref<3x32x32xf32, #tpu.memory_space<vmem>>, vector<1x32x32xf32>
    %343 = vector.shape_cast %342 : vector<1x32x32xf32> to vector<32x32xf32>
    %cst_195 = arith.constant dense<0.000000e+00> : vector<8x32xf32>
    %344 = tpu.matmul %341, %343, %cst_195 {dimension_numbers = #tpu.dot_dimension_numbers<[1], [0], [0], [1], [0, 0, 1, 1], [], []>} : vector<8x32xf32>, vector<32x32xf32>, vector<8x32xf32> -> vector<8x32xf32>
    %345 = tpu.iota {dimensions = array<i32: 0>} : vector<8x8xi32>
    %346 = tpu.iota {dimensions = array<i32: 1>} : vector<8x8xi32>
    %c1_i32_196 = arith.constant 1 : i32
    %347 = vector.broadcast %c1_i32_196 : i32 to vector<8x8xi32>
    %348 = arith.muli %345, %347 : vector<8x8xi32>
    %c0_i32_197 = arith.constant 0 : i32
    %349 = vector.broadcast %c0_i32_197 : i32 to vector<8x8xi32>
    %350 = arith.addi %348, %349 : vector<8x8xi32>
    %351 = arith.cmpi eq, %346, %350 : vector<8x8xi32>
    %cst_198 = arith.constant 1.000000e+00 : f32
    %cst_199 = arith.constant 0.000000e+00 : f32
    %352 = vector.broadcast %cst_198 : f32 to vector<8x8xf32>
    %353 = vector.broadcast %cst_199 : f32 to vector<8x8xf32>
    %354 = arith.select %351, %352, %353 : vector<8x8xi1>, vector<8x8xf32>
    %cst_200 = arith.constant dense<0.000000e+00> : vector<8x32xf32>
    %355 = tpu.matmul %354, %328, %cst_200 {dimension_numbers = #tpu.dot_dimension_numbers<[1], [0], [0], [1], [0, 0, 1, 1], [], []>} : vector<8x8xf32>, vector<8x32xf32>, vector<8x32xf32> -> vector<8x32xf32>
    %c1_201 = arith.constant 1 : index
    %c0_202 = arith.constant 0 : index
    %c0_203 = arith.constant 0 : index
    %356 = vector.load %arg18[%c1_201, %c0_202, %c0_203] : memref<3x32x32xf32, #tpu.memory_space<vmem>>, vector<1x32x32xf32>
    %357 = vector.shape_cast %356 : vector<1x32x32xf32> to vector<32x32xf32>
    %cst_204 = arith.constant dense<0.000000e+00> : vector<8x32xf32>
    %358 = tpu.matmul %355, %357, %cst_204 {dimension_numbers = #tpu.dot_dimension_numbers<[1], [0], [0], [1], [0, 0, 1, 1], [], []>} : vector<8x32xf32>, vector<32x32xf32>, vector<8x32xf32> -> vector<8x32xf32>
    %359 = arith.addf %344, %358 : vector<8x32xf32>
    %360 = tpu.iota {dimensions = array<i32: 0>} : vector<8x8xi32>
    %361 = tpu.iota {dimensions = array<i32: 1>} : vector<8x8xi32>
    %c1_i32_205 = arith.constant 1 : i32
    %362 = vector.broadcast %c1_i32_205 : i32 to vector<8x8xi32>
    %363 = arith.muli %360, %362 : vector<8x8xi32>
    %c1_i32_206 = arith.constant 1 : i32
    %364 = vector.broadcast %c1_i32_206 : i32 to vector<8x8xi32>
    %365 = arith.addi %363, %364 : vector<8x8xi32>
    %366 = arith.cmpi eq, %361, %365 : vector<8x8xi32>
    %cst_207 = arith.constant 1.000000e+00 : f32
    %cst_208 = arith.constant 0.000000e+00 : f32
    %367 = vector.broadcast %cst_207 : f32 to vector<8x8xf32>
    %368 = vector.broadcast %cst_208 : f32 to vector<8x8xf32>
    %369 = arith.select %366, %367, %368 : vector<8x8xi1>, vector<8x8xf32>
    %cst_209 = arith.constant dense<0.000000e+00> : vector<8x32xf32>
    %370 = tpu.matmul %369, %328, %cst_209 {dimension_numbers = #tpu.dot_dimension_numbers<[1], [0], [0], [1], [0, 0, 1, 1], [], []>} : vector<8x8xf32>, vector<8x32xf32>, vector<8x32xf32> -> vector<8x32xf32>
    %c2_210 = arith.constant 2 : index
    %c0_211 = arith.constant 0 : index
    %c0_212 = arith.constant 0 : index
    %371 = vector.load %arg18[%c2_210, %c0_211, %c0_212] : memref<3x32x32xf32, #tpu.memory_space<vmem>>, vector<1x32x32xf32>
    %372 = vector.shape_cast %371 : vector<1x32x32xf32> to vector<32x32xf32>
    %cst_213 = arith.constant dense<0.000000e+00> : vector<8x32xf32>
    %373 = tpu.matmul %370, %372, %cst_213 {dimension_numbers = #tpu.dot_dimension_numbers<[1], [0], [0], [1], [0, 0, 1, 1], [], []>} : vector<8x32xf32>, vector<32x32xf32>, vector<8x32xf32> -> vector<8x32xf32>
    %374 = arith.addf %359, %373 : vector<8x32xf32>
    %375 = vector.broadcast %329 : vector<1x32xf32> to vector<8x32xf32>
    %376 = arith.mulf %374, %375 : vector<8x32xf32>
    %377 = vector.broadcast %330 : vector<1x32xf32> to vector<8x32xf32>
    %378 = arith.addf %376, %377 : vector<8x32xf32>
    %c0_214 = arith.constant 0 : index
    %c0_215 = arith.constant 0 : index
    %379 = vector.load %arg22[%c0_214, %c0_215] : memref<1x32xf32, #tpu.memory_space<vmem>>, vector<1x32xf32>
    %c0_216 = arith.constant 0 : index
    %c0_217 = arith.constant 0 : index
    %380 = vector.load %arg23[%c0_216, %c0_217] : memref<1x32xf32, #tpu.memory_space<vmem>>, vector<1x32xf32>
    %381 = tpu.iota {dimensions = array<i32: 0>} : vector<8x16xi32>
    %382 = tpu.iota {dimensions = array<i32: 1>} : vector<8x16xi32>
    %c2_i32_218 = arith.constant 2 : i32
    %383 = vector.broadcast %c2_i32_218 : i32 to vector<8x16xi32>
    %384 = arith.muli %381, %383 : vector<8x16xi32>
    %c0_i32_219 = arith.constant 0 : i32
    %385 = vector.broadcast %c0_i32_219 : i32 to vector<8x16xi32>
    %386 = arith.addi %384, %385 : vector<8x16xi32>
    %387 = arith.cmpi eq, %382, %386 : vector<8x16xi32>
    %cst_220 = arith.constant 1.000000e+00 : f32
    %cst_221 = arith.constant 0.000000e+00 : f32
    %388 = vector.broadcast %cst_220 : f32 to vector<8x16xf32>
    %389 = vector.broadcast %cst_221 : f32 to vector<8x16xf32>
    %390 = arith.select %387, %388, %389 : vector<8x16xi1>, vector<8x16xf32>
    %cst_222 = arith.constant dense<0.000000e+00> : vector<8x16xf32>
    %391 = tpu.matmul %390, %276, %cst_222 {dimension_numbers = #tpu.dot_dimension_numbers<[1], [0], [0], [1], [0, 0, 1, 1], [], []>} : vector<8x16xf32>, vector<16x16xf32>, vector<8x16xf32> -> vector<8x16xf32>
    %c0_223 = arith.constant 0 : index
    %c0_224 = arith.constant 0 : index
    %c0_225 = arith.constant 0 : index
    %392 = vector.load %arg21[%c0_223, %c0_224, %c0_225] : memref<1x16x32xf32, #tpu.memory_space<vmem>>, vector<1x16x32xf32>
    %393 = vector.shape_cast %392 : vector<1x16x32xf32> to vector<16x32xf32>
    %cst_226 = arith.constant dense<0.000000e+00> : vector<8x32xf32>
    %394 = tpu.matmul %391, %393, %cst_226 {dimension_numbers = #tpu.dot_dimension_numbers<[1], [0], [0], [1], [0, 0, 1, 1], [], []>} : vector<8x16xf32>, vector<16x32xf32>, vector<8x32xf32> -> vector<8x32xf32>
    %395 = vector.broadcast %379 : vector<1x32xf32> to vector<8x32xf32>
    %396 = arith.mulf %394, %395 : vector<8x32xf32>
    %397 = vector.broadcast %380 : vector<1x32xf32> to vector<8x32xf32>
    %398 = arith.addf %396, %397 : vector<8x32xf32>
    %c0_227 = arith.constant 0 : index
    %c0_228 = arith.constant 0 : index
    %399 = vector.load %arg24[%c0_227, %c0_228] : memref<32x2xf32, #tpu.memory_space<vmem>>, vector<32x2xf32>
    %c0_229 = arith.constant 0 : index
    %c0_230 = arith.constant 0 : index
    %400 = vector.load %arg25[%c0_229, %c0_230] : memref<1x2xf32, #tpu.memory_space<vmem>>, vector<1x2xf32>
    %c0_231 = arith.constant 0 : index
    %c0_232 = arith.constant 0 : index
    %401 = vector.load %arg26[%c0_231, %c0_232] : memref<2x32xf32, #tpu.memory_space<vmem>>, vector<2x32xf32>
    %c0_233 = arith.constant 0 : index
    %c0_234 = arith.constant 0 : index
    %402 = vector.load %arg27[%c0_233, %c0_234] : memref<1x32xf32, #tpu.memory_space<vmem>>, vector<1x32xf32>
    %cst_235 = arith.constant dense<0.000000e+00> : vector<32xf32>
    %403 = vector.multi_reduction <add>, %378, %cst_235 [0] : vector<8x32xf32> to vector<32xf32>
    %404 = vector.shape_cast %403 : vector<32xf32> to vector<1x32xf32>
    %cst_236 = arith.constant 8.000000e+00 : f32
    %405 = vector.broadcast %cst_236 : f32 to vector<1x32xf32>
    %406 = arith.divf %404, %405 : vector<1x32xf32>
    %cst_237 = arith.constant dense<0.000000e+00> : vector<1x2xf32>
    %407 = tpu.matmul %406, %399, %cst_237 {dimension_numbers = #tpu.dot_dimension_numbers<[1], [0], [0], [1], [0, 0, 1, 1], [], []>} : vector<1x32xf32>, vector<32x2xf32>, vector<1x2xf32> -> vector<1x2xf32>
    %408 = arith.addf %407, %400 : vector<1x2xf32>
    %cst_238 = arith.constant 0.000000e+00 : f32
    %409 = vector.broadcast %cst_238 : f32 to vector<1x2xf32>
    %410 = arith.maximumf %408, %409 : vector<1x2xf32>
    %cst_239 = arith.constant dense<0.000000e+00> : vector<1x32xf32>
    %411 = tpu.matmul %410, %401, %cst_239 {dimension_numbers = #tpu.dot_dimension_numbers<[1], [0], [0], [1], [0, 0, 1, 1], [], []>} : vector<1x2xf32>, vector<2x32xf32>, vector<1x32xf32> -> vector<1x32xf32>
    %412 = arith.addf %411, %402 : vector<1x32xf32>
    %cst_240 = arith.constant 0.000000e+00 : f32
    %413 = vector.broadcast %cst_240 : f32 to vector<1x32xf32>
    %414 = arith.subf %413, %412 : vector<1x32xf32>
    %415 = math.exp %414 : vector<1x32xf32>
    %cst_241 = arith.constant 1.000000e+00 : f32
    %416 = vector.broadcast %cst_241 : f32 to vector<1x32xf32>
    %417 = arith.addf %416, %415 : vector<1x32xf32>
    %cst_242 = arith.constant 1.000000e+00 : f32
    %418 = vector.broadcast %cst_242 : f32 to vector<1x32xf32>
    %419 = arith.divf %418, %417 : vector<1x32xf32>
    %420 = vector.broadcast %419 : vector<1x32xf32> to vector<8x32xf32>
    %421 = arith.mulf %378, %420 : vector<8x32xf32>
    %422 = arith.addf %421, %398 : vector<8x32xf32>
    %cst_243 = arith.constant 0.000000e+00 : f32
    %423 = vector.broadcast %cst_243 : f32 to vector<8x32xf32>
    %424 = arith.maximumf %422, %423 : vector<8x32xf32>
    %c0_244 = arith.constant 0 : index
    %c0_245 = arith.constant 0 : index
    %425 = vector.load %arg29[%c0_244, %c0_245] : memref<1x64xf32, #tpu.memory_space<vmem>>, vector<1x64xf32>
    %c0_246 = arith.constant 0 : index
    %c0_247 = arith.constant 0 : index
    %426 = vector.load %arg30[%c0_246, %c0_247] : memref<1x64xf32, #tpu.memory_space<vmem>>, vector<1x64xf32>
    %427 = tpu.iota {dimensions = array<i32: 0>} : vector<4x8xi32>
    %428 = tpu.iota {dimensions = array<i32: 1>} : vector<4x8xi32>
    %c2_i32_248 = arith.constant 2 : i32
    %429 = vector.broadcast %c2_i32_248 : i32 to vector<4x8xi32>
    %430 = arith.muli %427, %429 : vector<4x8xi32>
    %c-1_i32_249 = arith.constant -1 : i32
    %431 = vector.broadcast %c-1_i32_249 : i32 to vector<4x8xi32>
    %432 = arith.addi %430, %431 : vector<4x8xi32>
    %433 = arith.cmpi eq, %428, %432 : vector<4x8xi32>
    %cst_250 = arith.constant 1.000000e+00 : f32
    %cst_251 = arith.constant 0.000000e+00 : f32
    %434 = vector.broadcast %cst_250 : f32 to vector<4x8xf32>
    %435 = vector.broadcast %cst_251 : f32 to vector<4x8xf32>
    %436 = arith.select %433, %434, %435 : vector<4x8xi1>, vector<4x8xf32>
    %cst_252 = arith.constant dense<0.000000e+00> : vector<4x32xf32>
    %437 = tpu.matmul %436, %424, %cst_252 {dimension_numbers = #tpu.dot_dimension_numbers<[1], [0], [0], [1], [0, 0, 1, 1], [], []>} : vector<4x8xf32>, vector<8x32xf32>, vector<4x32xf32> -> vector<4x32xf32>
    %c0_253 = arith.constant 0 : index
    %c0_254 = arith.constant 0 : index
    %c0_255 = arith.constant 0 : index
    %438 = vector.load %arg28[%c0_253, %c0_254, %c0_255] : memref<3x32x64xf32, #tpu.memory_space<vmem>>, vector<1x32x64xf32>
    %439 = vector.shape_cast %438 : vector<1x32x64xf32> to vector<32x64xf32>
    %cst_256 = arith.constant dense<0.000000e+00> : vector<4x64xf32>
    %440 = tpu.matmul %437, %439, %cst_256 {dimension_numbers = #tpu.dot_dimension_numbers<[1], [0], [0], [1], [0, 0, 1, 1], [], []>} : vector<4x32xf32>, vector<32x64xf32>, vector<4x64xf32> -> vector<4x64xf32>
    %441 = tpu.iota {dimensions = array<i32: 0>} : vector<4x8xi32>
    %442 = tpu.iota {dimensions = array<i32: 1>} : vector<4x8xi32>
    %c2_i32_257 = arith.constant 2 : i32
    %443 = vector.broadcast %c2_i32_257 : i32 to vector<4x8xi32>
    %444 = arith.muli %441, %443 : vector<4x8xi32>
    %c0_i32_258 = arith.constant 0 : i32
    %445 = vector.broadcast %c0_i32_258 : i32 to vector<4x8xi32>
    %446 = arith.addi %444, %445 : vector<4x8xi32>
    %447 = arith.cmpi eq, %442, %446 : vector<4x8xi32>
    %cst_259 = arith.constant 1.000000e+00 : f32
    %cst_260 = arith.constant 0.000000e+00 : f32
    %448 = vector.broadcast %cst_259 : f32 to vector<4x8xf32>
    %449 = vector.broadcast %cst_260 : f32 to vector<4x8xf32>
    %450 = arith.select %447, %448, %449 : vector<4x8xi1>, vector<4x8xf32>
    %cst_261 = arith.constant dense<0.000000e+00> : vector<4x32xf32>
    %451 = tpu.matmul %450, %424, %cst_261 {dimension_numbers = #tpu.dot_dimension_numbers<[1], [0], [0], [1], [0, 0, 1, 1], [], []>} : vector<4x8xf32>, vector<8x32xf32>, vector<4x32xf32> -> vector<4x32xf32>
    %c1_262 = arith.constant 1 : index
    %c0_263 = arith.constant 0 : index
    %c0_264 = arith.constant 0 : index
    %452 = vector.load %arg28[%c1_262, %c0_263, %c0_264] : memref<3x32x64xf32, #tpu.memory_space<vmem>>, vector<1x32x64xf32>
    %453 = vector.shape_cast %452 : vector<1x32x64xf32> to vector<32x64xf32>
    %cst_265 = arith.constant dense<0.000000e+00> : vector<4x64xf32>
    %454 = tpu.matmul %451, %453, %cst_265 {dimension_numbers = #tpu.dot_dimension_numbers<[1], [0], [0], [1], [0, 0, 1, 1], [], []>} : vector<4x32xf32>, vector<32x64xf32>, vector<4x64xf32> -> vector<4x64xf32>
    %455 = arith.addf %440, %454 : vector<4x64xf32>
    %456 = tpu.iota {dimensions = array<i32: 0>} : vector<4x8xi32>
    %457 = tpu.iota {dimensions = array<i32: 1>} : vector<4x8xi32>
    %c2_i32_266 = arith.constant 2 : i32
    %458 = vector.broadcast %c2_i32_266 : i32 to vector<4x8xi32>
    %459 = arith.muli %456, %458 : vector<4x8xi32>
    %c1_i32_267 = arith.constant 1 : i32
    %460 = vector.broadcast %c1_i32_267 : i32 to vector<4x8xi32>
    %461 = arith.addi %459, %460 : vector<4x8xi32>
    %462 = arith.cmpi eq, %457, %461 : vector<4x8xi32>
    %cst_268 = arith.constant 1.000000e+00 : f32
    %cst_269 = arith.constant 0.000000e+00 : f32
    %463 = vector.broadcast %cst_268 : f32 to vector<4x8xf32>
    %464 = vector.broadcast %cst_269 : f32 to vector<4x8xf32>
    %465 = arith.select %462, %463, %464 : vector<4x8xi1>, vector<4x8xf32>
    %cst_270 = arith.constant dense<0.000000e+00> : vector<4x32xf32>
    %466 = tpu.matmul %465, %424, %cst_270 {dimension_numbers = #tpu.dot_dimension_numbers<[1], [0], [0], [1], [0, 0, 1, 1], [], []>} : vector<4x8xf32>, vector<8x32xf32>, vector<4x32xf32> -> vector<4x32xf32>
    %c2_271 = arith.constant 2 : index
    %c0_272 = arith.constant 0 : index
    %c0_273 = arith.constant 0 : index
    %467 = vector.load %arg28[%c2_271, %c0_272, %c0_273] : memref<3x32x64xf32, #tpu.memory_space<vmem>>, vector<1x32x64xf32>
    %468 = vector.shape_cast %467 : vector<1x32x64xf32> to vector<32x64xf32>
    %cst_274 = arith.constant dense<0.000000e+00> : vector<4x64xf32>
    %469 = tpu.matmul %466, %468, %cst_274 {dimension_numbers = #tpu.dot_dimension_numbers<[1], [0], [0], [1], [0, 0, 1, 1], [], []>} : vector<4x32xf32>, vector<32x64xf32>, vector<4x64xf32> -> vector<4x64xf32>
    %470 = arith.addf %455, %469 : vector<4x64xf32>
    %471 = vector.broadcast %425 : vector<1x64xf32> to vector<4x64xf32>
    %472 = arith.mulf %470, %471 : vector<4x64xf32>
    %473 = vector.broadcast %426 : vector<1x64xf32> to vector<4x64xf32>
    %474 = arith.addf %472, %473 : vector<4x64xf32>
    %cst_275 = arith.constant 0.000000e+00 : f32
    %475 = vector.broadcast %cst_275 : f32 to vector<4x64xf32>
    %476 = arith.maximumf %474, %475 : vector<4x64xf32>
    %c0_276 = arith.constant 0 : index
    %c0_277 = arith.constant 0 : index
    %477 = vector.load %arg32[%c0_276, %c0_277] : memref<1x64xf32, #tpu.memory_space<vmem>>, vector<1x64xf32>
    %c0_278 = arith.constant 0 : index
    %c0_279 = arith.constant 0 : index
    %478 = vector.load %arg33[%c0_278, %c0_279] : memref<1x64xf32, #tpu.memory_space<vmem>>, vector<1x64xf32>
    %479 = tpu.iota {dimensions = array<i32: 0>} : vector<4x4xi32>
    %480 = tpu.iota {dimensions = array<i32: 1>} : vector<4x4xi32>
    %c1_i32_280 = arith.constant 1 : i32
    %481 = vector.broadcast %c1_i32_280 : i32 to vector<4x4xi32>
    %482 = arith.muli %479, %481 : vector<4x4xi32>
    %c-1_i32_281 = arith.constant -1 : i32
    %483 = vector.broadcast %c-1_i32_281 : i32 to vector<4x4xi32>
    %484 = arith.addi %482, %483 : vector<4x4xi32>
    %485 = arith.cmpi eq, %480, %484 : vector<4x4xi32>
    %cst_282 = arith.constant 1.000000e+00 : f32
    %cst_283 = arith.constant 0.000000e+00 : f32
    %486 = vector.broadcast %cst_282 : f32 to vector<4x4xf32>
    %487 = vector.broadcast %cst_283 : f32 to vector<4x4xf32>
    %488 = arith.select %485, %486, %487 : vector<4x4xi1>, vector<4x4xf32>
    %cst_284 = arith.constant dense<0.000000e+00> : vector<4x64xf32>
    %489 = tpu.matmul %488, %476, %cst_284 {dimension_numbers = #tpu.dot_dimension_numbers<[1], [0], [0], [1], [0, 0, 1, 1], [], []>} : vector<4x4xf32>, vector<4x64xf32>, vector<4x64xf32> -> vector<4x64xf32>
    %c0_285 = arith.constant 0 : index
    %c0_286 = arith.constant 0 : index
    %c0_287 = arith.constant 0 : index
    %490 = vector.load %arg31[%c0_285, %c0_286, %c0_287] : memref<3x64x64xf32, #tpu.memory_space<vmem>>, vector<1x64x64xf32>
    %491 = vector.shape_cast %490 : vector<1x64x64xf32> to vector<64x64xf32>
    %cst_288 = arith.constant dense<0.000000e+00> : vector<4x64xf32>
    %492 = tpu.matmul %489, %491, %cst_288 {dimension_numbers = #tpu.dot_dimension_numbers<[1], [0], [0], [1], [0, 0, 1, 1], [], []>} : vector<4x64xf32>, vector<64x64xf32>, vector<4x64xf32> -> vector<4x64xf32>
    %493 = tpu.iota {dimensions = array<i32: 0>} : vector<4x4xi32>
    %494 = tpu.iota {dimensions = array<i32: 1>} : vector<4x4xi32>
    %c1_i32_289 = arith.constant 1 : i32
    %495 = vector.broadcast %c1_i32_289 : i32 to vector<4x4xi32>
    %496 = arith.muli %493, %495 : vector<4x4xi32>
    %c0_i32_290 = arith.constant 0 : i32
    %497 = vector.broadcast %c0_i32_290 : i32 to vector<4x4xi32>
    %498 = arith.addi %496, %497 : vector<4x4xi32>
    %499 = arith.cmpi eq, %494, %498 : vector<4x4xi32>
    %cst_291 = arith.constant 1.000000e+00 : f32
    %cst_292 = arith.constant 0.000000e+00 : f32
    %500 = vector.broadcast %cst_291 : f32 to vector<4x4xf32>
    %501 = vector.broadcast %cst_292 : f32 to vector<4x4xf32>
    %502 = arith.select %499, %500, %501 : vector<4x4xi1>, vector<4x4xf32>
    %cst_293 = arith.constant dense<0.000000e+00> : vector<4x64xf32>
    %503 = tpu.matmul %502, %476, %cst_293 {dimension_numbers = #tpu.dot_dimension_numbers<[1], [0], [0], [1], [0, 0, 1, 1], [], []>} : vector<4x4xf32>, vector<4x64xf32>, vector<4x64xf32> -> vector<4x64xf32>
    %c1_294 = arith.constant 1 : index
    %c0_295 = arith.constant 0 : index
    %c0_296 = arith.constant 0 : index
    %504 = vector.load %arg31[%c1_294, %c0_295, %c0_296] : memref<3x64x64xf32, #tpu.memory_space<vmem>>, vector<1x64x64xf32>
    %505 = vector.shape_cast %504 : vector<1x64x64xf32> to vector<64x64xf32>
    %cst_297 = arith.constant dense<0.000000e+00> : vector<4x64xf32>
    %506 = tpu.matmul %503, %505, %cst_297 {dimension_numbers = #tpu.dot_dimension_numbers<[1], [0], [0], [1], [0, 0, 1, 1], [], []>} : vector<4x64xf32>, vector<64x64xf32>, vector<4x64xf32> -> vector<4x64xf32>
    %507 = arith.addf %492, %506 : vector<4x64xf32>
    %508 = tpu.iota {dimensions = array<i32: 0>} : vector<4x4xi32>
    %509 = tpu.iota {dimensions = array<i32: 1>} : vector<4x4xi32>
    %c1_i32_298 = arith.constant 1 : i32
    %510 = vector.broadcast %c1_i32_298 : i32 to vector<4x4xi32>
    %511 = arith.muli %508, %510 : vector<4x4xi32>
    %c1_i32_299 = arith.constant 1 : i32
    %512 = vector.broadcast %c1_i32_299 : i32 to vector<4x4xi32>
    %513 = arith.addi %511, %512 : vector<4x4xi32>
    %514 = arith.cmpi eq, %509, %513 : vector<4x4xi32>
    %cst_300 = arith.constant 1.000000e+00 : f32
    %cst_301 = arith.constant 0.000000e+00 : f32
    %515 = vector.broadcast %cst_300 : f32 to vector<4x4xf32>
    %516 = vector.broadcast %cst_301 : f32 to vector<4x4xf32>
    %517 = arith.select %514, %515, %516 : vector<4x4xi1>, vector<4x4xf32>
    %cst_302 = arith.constant dense<0.000000e+00> : vector<4x64xf32>
    %518 = tpu.matmul %517, %476, %cst_302 {dimension_numbers = #tpu.dot_dimension_numbers<[1], [0], [0], [1], [0, 0, 1, 1], [], []>} : vector<4x4xf32>, vector<4x64xf32>, vector<4x64xf32> -> vector<4x64xf32>
    %c2_303 = arith.constant 2 : index
    %c0_304 = arith.constant 0 : index
    %c0_305 = arith.constant 0 : index
    %519 = vector.load %arg31[%c2_303, %c0_304, %c0_305] : memref<3x64x64xf32, #tpu.memory_space<vmem>>, vector<1x64x64xf32>
    %520 = vector.shape_cast %519 : vector<1x64x64xf32> to vector<64x64xf32>
    %cst_306 = arith.constant dense<0.000000e+00> : vector<4x64xf32>
    %521 = tpu.matmul %518, %520, %cst_306 {dimension_numbers = #tpu.dot_dimension_numbers<[1], [0], [0], [1], [0, 0, 1, 1], [], []>} : vector<4x64xf32>, vector<64x64xf32>, vector<4x64xf32> -> vector<4x64xf32>
    %522 = arith.addf %507, %521 : vector<4x64xf32>
    %523 = vector.broadcast %477 : vector<1x64xf32> to vector<4x64xf32>
    %524 = arith.mulf %522, %523 : vector<4x64xf32>
    %525 = vector.broadcast %478 : vector<1x64xf32> to vector<4x64xf32>
    %526 = arith.addf %524, %525 : vector<4x64xf32>
    %c0_307 = arith.constant 0 : index
    %c0_308 = arith.constant 0 : index
    %527 = vector.load %arg35[%c0_307, %c0_308] : memref<1x64xf32, #tpu.memory_space<vmem>>, vector<1x64xf32>
    %c0_309 = arith.constant 0 : index
    %c0_310 = arith.constant 0 : index
    %528 = vector.load %arg36[%c0_309, %c0_310] : memref<1x64xf32, #tpu.memory_space<vmem>>, vector<1x64xf32>
    %529 = tpu.iota {dimensions = array<i32: 0>} : vector<4x8xi32>
    %530 = tpu.iota {dimensions = array<i32: 1>} : vector<4x8xi32>
    %c2_i32_311 = arith.constant 2 : i32
    %531 = vector.broadcast %c2_i32_311 : i32 to vector<4x8xi32>
    %532 = arith.muli %529, %531 : vector<4x8xi32>
    %c0_i32_312 = arith.constant 0 : i32
    %533 = vector.broadcast %c0_i32_312 : i32 to vector<4x8xi32>
    %534 = arith.addi %532, %533 : vector<4x8xi32>
    %535 = arith.cmpi eq, %530, %534 : vector<4x8xi32>
    %cst_313 = arith.constant 1.000000e+00 : f32
    %cst_314 = arith.constant 0.000000e+00 : f32
    %536 = vector.broadcast %cst_313 : f32 to vector<4x8xf32>
    %537 = vector.broadcast %cst_314 : f32 to vector<4x8xf32>
    %538 = arith.select %535, %536, %537 : vector<4x8xi1>, vector<4x8xf32>
    %cst_315 = arith.constant dense<0.000000e+00> : vector<4x32xf32>
    %539 = tpu.matmul %538, %424, %cst_315 {dimension_numbers = #tpu.dot_dimension_numbers<[1], [0], [0], [1], [0, 0, 1, 1], [], []>} : vector<4x8xf32>, vector<8x32xf32>, vector<4x32xf32> -> vector<4x32xf32>
    %c0_316 = arith.constant 0 : index
    %c0_317 = arith.constant 0 : index
    %c0_318 = arith.constant 0 : index
    %540 = vector.load %arg34[%c0_316, %c0_317, %c0_318] : memref<1x32x64xf32, #tpu.memory_space<vmem>>, vector<1x32x64xf32>
    %541 = vector.shape_cast %540 : vector<1x32x64xf32> to vector<32x64xf32>
    %cst_319 = arith.constant dense<0.000000e+00> : vector<4x64xf32>
    %542 = tpu.matmul %539, %541, %cst_319 {dimension_numbers = #tpu.dot_dimension_numbers<[1], [0], [0], [1], [0, 0, 1, 1], [], []>} : vector<4x32xf32>, vector<32x64xf32>, vector<4x64xf32> -> vector<4x64xf32>
    %543 = vector.broadcast %527 : vector<1x64xf32> to vector<4x64xf32>
    %544 = arith.mulf %542, %543 : vector<4x64xf32>
    %545 = vector.broadcast %528 : vector<1x64xf32> to vector<4x64xf32>
    %546 = arith.addf %544, %545 : vector<4x64xf32>
    %c0_320 = arith.constant 0 : index
    %c0_321 = arith.constant 0 : index
    %547 = vector.load %arg37[%c0_320, %c0_321] : memref<64x4xf32, #tpu.memory_space<vmem>>, vector<64x4xf32>
    %c0_322 = arith.constant 0 : index
    %c0_323 = arith.constant 0 : index
    %548 = vector.load %arg38[%c0_322, %c0_323] : memref<1x4xf32, #tpu.memory_space<vmem>>, vector<1x4xf32>
    %c0_324 = arith.constant 0 : index
    %c0_325 = arith.constant 0 : index
    %549 = vector.load %arg39[%c0_324, %c0_325] : memref<4x64xf32, #tpu.memory_space<vmem>>, vector<4x64xf32>
    %c0_326 = arith.constant 0 : index
    %c0_327 = arith.constant 0 : index
    %550 = vector.load %arg40[%c0_326, %c0_327] : memref<1x64xf32, #tpu.memory_space<vmem>>, vector<1x64xf32>
    %cst_328 = arith.constant dense<0.000000e+00> : vector<64xf32>
    %551 = vector.multi_reduction <add>, %526, %cst_328 [0] : vector<4x64xf32> to vector<64xf32>
    %552 = vector.shape_cast %551 : vector<64xf32> to vector<1x64xf32>
    %cst_329 = arith.constant 4.000000e+00 : f32
    %553 = vector.broadcast %cst_329 : f32 to vector<1x64xf32>
    %554 = arith.divf %552, %553 : vector<1x64xf32>
    %cst_330 = arith.constant dense<0.000000e+00> : vector<1x4xf32>
    %555 = tpu.matmul %554, %547, %cst_330 {dimension_numbers = #tpu.dot_dimension_numbers<[1], [0], [0], [1], [0, 0, 1, 1], [], []>} : vector<1x64xf32>, vector<64x4xf32>, vector<1x4xf32> -> vector<1x4xf32>
    %556 = arith.addf %555, %548 : vector<1x4xf32>
    %cst_331 = arith.constant 0.000000e+00 : f32
    %557 = vector.broadcast %cst_331 : f32 to vector<1x4xf32>
    %558 = arith.maximumf %556, %557 : vector<1x4xf32>
    %cst_332 = arith.constant dense<0.000000e+00> : vector<1x64xf32>
    %559 = tpu.matmul %558, %549, %cst_332 {dimension_numbers = #tpu.dot_dimension_numbers<[1], [0], [0], [1], [0, 0, 1, 1], [], []>} : vector<1x4xf32>, vector<4x64xf32>, vector<1x64xf32> -> vector<1x64xf32>
    %560 = arith.addf %559, %550 : vector<1x64xf32>
    %cst_333 = arith.constant 0.000000e+00 : f32
    %561 = vector.broadcast %cst_333 : f32 to vector<1x64xf32>
    %562 = arith.subf %561, %560 : vector<1x64xf32>
    %563 = math.exp %562 : vector<1x64xf32>
    %cst_334 = arith.constant 1.000000e+00 : f32
    %564 = vector.broadcast %cst_334 : f32 to vector<1x64xf32>
    %565 = arith.addf %564, %563 : vector<1x64xf32>
    %cst_335 = arith.constant 1.000000e+00 : f32
    %566 = vector.broadcast %cst_335 : f32 to vector<1x64xf32>
    %567 = arith.divf %566, %565 : vector<1x64xf32>
    %568 = vector.broadcast %567 : vector<1x64xf32> to vector<4x64xf32>
    %569 = arith.mulf %526, %568 : vector<4x64xf32>
    %570 = arith.addf %569, %546 : vector<4x64xf32>
    %cst_336 = arith.constant 0.000000e+00 : f32
    %571 = vector.broadcast %cst_336 : f32 to vector<4x64xf32>
    %572 = arith.maximumf %570, %571 : vector<4x64xf32>
    %cst_337 = arith.constant dense<0.000000e+00> : vector<64xf32>
    %573 = vector.multi_reduction <add>, %572, %cst_337 [0] : vector<4x64xf32> to vector<64xf32>
    %574 = vector.shape_cast %573 : vector<64xf32> to vector<1x64xf32>
    %cst_338 = arith.constant 4.000000e+00 : f32
    %575 = vector.broadcast %cst_338 : f32 to vector<1x64xf32>
    %576 = arith.divf %574, %575 : vector<1x64xf32>
    %c0_339 = arith.constant 0 : index
    %c0_340 = arith.constant 0 : index
    %577 = vector.load %arg41[%c0_339, %c0_340] : memref<64x64xf32, #tpu.memory_space<vmem>>, vector<64x64xf32>
    %cst_341 = arith.constant dense<0.000000e+00> : vector<1x64xf32>
    %578 = tpu.matmul %576, %577, %cst_341 {dimension_numbers = #tpu.dot_dimension_numbers<[1], [0], [0], [1], [0, 0, 1, 1], [], []>} : vector<1x64xf32>, vector<64x64xf32>, vector<1x64xf32> -> vector<1x64xf32>
    %c0_342 = arith.constant 0 : index
    %c0_343 = arith.constant 0 : index
    %579 = vector.load %arg42[%c0_342, %c0_343] : memref<1x64xf32, #tpu.memory_space<vmem>>, vector<1x64xf32>
    %580 = arith.addf %578, %579 : vector<1x64xf32>
    %cst_344 = arith.constant 0.000000e+00 : f32
    %581 = vector.broadcast %cst_344 : f32 to vector<1x64xf32>
    %582 = arith.maximumf %580, %581 : vector<1x64xf32>
    %c0_345 = arith.constant 0 : index
    %c0_346 = arith.constant 0 : index
    %583 = vector.load %arg43[%c0_345, %c0_346] : memref<64x2xf32, #tpu.memory_space<vmem>>, vector<64x2xf32>
    %cst_347 = arith.constant dense<0.000000e+00> : vector<1x2xf32>
    %584 = tpu.matmul %582, %583, %cst_347 {dimension_numbers = #tpu.dot_dimension_numbers<[1], [0], [0], [1], [0, 0, 1, 1], [], []>} : vector<1x64xf32>, vector<64x2xf32>, vector<1x2xf32> -> vector<1x2xf32>
    %c0_348 = arith.constant 0 : index
    %c0_349 = arith.constant 0 : index
    %585 = vector.load %arg44[%c0_348, %c0_349] : memref<1x2xf32, #tpu.memory_space<vmem>>, vector<1x2xf32>
    %586 = arith.addf %584, %585 : vector<1x2xf32>
    %c0_350 = arith.constant 0 : index
    %c0_351 = arith.constant 0 : index
    %c0_352 = arith.constant 0 : index
    %587 = vector.load %arg45[%c0_350, %c0_351, %c0_352] : memref<1x1x2xf32, #tpu.memory_space<vmem>>, vector<1x1x2xf32>
    %588 = vector.shape_cast %587 : vector<1x1x2xf32> to vector<1x2xf32>
    %589 = vector.shape_cast %586 : vector<1x2xf32> to vector<1x1x2xf32>
    tpu.vector_store %arg45[%c0_350, %c0_351, %c0_352], %589 {strides = array<i32>} : memref<1x1x2xf32, #tpu.memory_space<vmem>>, vector<1x1x2xf32>,
    return
  }
  func.func @transform_0(%arg0: i32) -> (i32, i32, i32) {
    %c0_i32 = arith.constant 0 : i32
    %c0_i32_0 = arith.constant 0 : i32
    %c0_i32_1 = arith.constant 0 : i32
    return %arg0, %c0_i32, %c0_i32_0 : i32, i32, i32
  }
  func.func @transform_1(%arg0: i32) -> (i32, i32, i32) {
    %c0_i32 = arith.constant 0 : i32
    %c0_i32_0 = arith.constant 0 : i32
    %c0_i32_1 = arith.constant 0 : i32
    %c0_i32_2 = arith.constant 0 : i32
    return %c0_i32, %c0_i32_0, %c0_i32_1 : i32, i32, i32
  }
  func.func @transform_2(%arg0: i32) -> (i32, i32) {
    %c0_i32 = arith.constant 0 : i32
    %c0_i32_0 = arith.constant 0 : i32
    %c0_i32_1 = arith.constant 0 : i32
    return %c0_i32, %c0_i32_0 : i32, i32
  }
  func.func @transform_3(%arg0: i32) -> (i32, i32) {
    %c0_i32 = arith.constant 0 : i32
    %c0_i32_0 = arith.constant 0 : i32
    %c0_i32_1 = arith.constant 0 : i32
    return %c0_i32, %c0_i32_0 : i32, i32
  }
  func.func @transform_4(%arg0: i32) -> (i32, i32, i32) {
    %c0_i32 = arith.constant 0 : i32
    %c0_i32_0 = arith.constant 0 : i32
    %c0_i32_1 = arith.constant 0 : i32
    %c0_i32_2 = arith.constant 0 : i32
    return %c0_i32, %c0_i32_0, %c0_i32_1 : i32, i32, i32
  }
  func.func @transform_5(%arg0: i32) -> (i32, i32) {
    %c0_i32 = arith.constant 0 : i32
    %c0_i32_0 = arith.constant 0 : i32
    %c0_i32_1 = arith.constant 0 : i32
    return %c0_i32, %c0_i32_0 : i32, i32
  }
  func.func @transform_6(%arg0: i32) -> (i32, i32) {
    %c0_i32 = arith.constant 0 : i32
    %c0_i32_0 = arith.constant 0 : i32
    %c0_i32_1 = arith.constant 0 : i32
    return %c0_i32, %c0_i32_0 : i32, i32
  }
  func.func @transform_7(%arg0: i32) -> (i32, i32, i32) {
    %c0_i32 = arith.constant 0 : i32
    %c0_i32_0 = arith.constant 0 : i32
    %c0_i32_1 = arith.constant 0 : i32
    %c0_i32_2 = arith.constant 0 : i32
    return %c0_i32, %c0_i32_0, %c0_i32_1 : i32, i32, i32
  }
  func.func @transform_8(%arg0: i32) -> (i32, i32) {
    %c0_i32 = arith.constant 0 : i32
    %c0_i32_0 = arith.constant 0 : i32
    %c0_i32_1 = arith.constant 0 : i32
    return %c0_i32, %c0_i32_0 : i32, i32
  }
  func.func @transform_9(%arg0: i32) -> (i32, i32) {
    %c0_i32 = arith.constant 0 : i32
    %c0_i32_0 = arith.constant 0 : i32
    %c0_i32_1 = arith.constant 0 : i32
    return %c0_i32, %c0_i32_0 : i32, i32
  }
  func.func @transform_10(%arg0: i32) -> (i32, i32) {
    %c0_i32 = arith.constant 0 : i32
    %c0_i32_0 = arith.constant 0 : i32
    %c0_i32_1 = arith.constant 0 : i32
    return %c0_i32, %c0_i32_0 : i32, i32
  }
  func.func @transform_11(%arg0: i32) -> (i32, i32) {
    %c0_i32 = arith.constant 0 : i32
    %c0_i32_0 = arith.constant 0 : i32
    %c0_i32_1 = arith.constant 0 : i32
    return %c0_i32, %c0_i32_0 : i32, i32
  }
  func.func @transform_12(%arg0: i32) -> (i32, i32) {
    %c0_i32 = arith.constant 0 : i32
    %c0_i32_0 = arith.constant 0 : i32
    %c0_i32_1 = arith.constant 0 : i32
    return %c0_i32, %c0_i32_0 : i32, i32
  }
  func.func @transform_13(%arg0: i32) -> (i32, i32) {
    %c0_i32 = arith.constant 0 : i32
    %c0_i32_0 = arith.constant 0 : i32
    %c0_i32_1 = arith.constant 0 : i32
    return %c0_i32, %c0_i32_0 : i32, i32
  }
  func.func @transform_14(%arg0: i32) -> (i32, i32, i32) {
    %c0_i32 = arith.constant 0 : i32
    %c0_i32_0 = arith.constant 0 : i32
    %c0_i32_1 = arith.constant 0 : i32
    %c0_i32_2 = arith.constant 0 : i32
    return %c0_i32, %c0_i32_0, %c0_i32_1 : i32, i32, i32
  }
  func.func @transform_15(%arg0: i32) -> (i32, i32) {
    %c0_i32 = arith.constant 0 : i32
    %c0_i32_0 = arith.constant 0 : i32
    %c0_i32_1 = arith.constant 0 : i32
    return %c0_i32, %c0_i32_0 : i32, i32
  }
  func.func @transform_16(%arg0: i32) -> (i32, i32) {
    %c0_i32 = arith.constant 0 : i32
    %c0_i32_0 = arith.constant 0 : i32
    %c0_i32_1 = arith.constant 0 : i32
    return %c0_i32, %c0_i32_0 : i32, i32
  }
  func.func @transform_17(%arg0: i32) -> (i32, i32, i32) {
    %c0_i32 = arith.constant 0 : i32
    %c0_i32_0 = arith.constant 0 : i32
    %c0_i32_1 = arith.constant 0 : i32
    %c0_i32_2 = arith.constant 0 : i32
    return %c0_i32, %c0_i32_0, %c0_i32_1 : i32, i32, i32
  }
  func.func @transform_18(%arg0: i32) -> (i32, i32) {
    %c0_i32 = arith.constant 0 : i32
    %c0_i32_0 = arith.constant 0 : i32
    %c0_i32_1 = arith.constant 0 : i32
    return %c0_i32, %c0_i32_0 : i32, i32
  }
  func.func @transform_19(%arg0: i32) -> (i32, i32) {
    %c0_i32 = arith.constant 0 : i32
    %c0_i32_0 = arith.constant 0 : i32
    %c0_i32_1 = arith.constant 0 : i32
    return %c0_i32, %c0_i32_0 : i32, i32
  }
  func.func @transform_20(%arg0: i32) -> (i32, i32, i32) {
    %c0_i32 = arith.constant 0 : i32
    %c0_i32_0 = arith.constant 0 : i32
    %c0_i32_1 = arith.constant 0 : i32
    %c0_i32_2 = arith.constant 0 : i32
    return %c0_i32, %c0_i32_0, %c0_i32_1 : i32, i32, i32
  }
  func.func @transform_21(%arg0: i32) -> (i32, i32) {
    %c0_i32 = arith.constant 0 : i32
    %c0_i32_0 = arith.constant 0 : i32
    %c0_i32_1 = arith.constant 0 : i32
    return %c0_i32, %c0_i32_0 : i32, i32
  }
  func.func @transform_22(%arg0: i32) -> (i32, i32) {
    %c0_i32 = arith.constant 0 : i32
    %c0_i32_0 = arith.constant 0 : i32
    %c0_i32_1 = arith.constant 0 : i32
    return %c0_i32, %c0_i32_0 : i32, i32
  }
  func.func @transform_23(%arg0: i32) -> (i32, i32) {
    %c0_i32 = arith.constant 0 : i32
    %c0_i32_0 = arith.constant 0 : i32
    %c0_i32_1 = arith.constant 0 : i32
    return %c0_i32, %c0_i32_0 : i32, i32
  }
  func.func @transform_24(%arg0: i32) -> (i32, i32) {
    %c0_i32 = arith.constant 0 : i32
    %c0_i32_0 = arith.constant 0 : i32
    %c0_i32_1 = arith.constant 0 : i32
    return %c0_i32, %c0_i32_0 : i32, i32
  }
  func.func @transform_25(%arg0: i32) -> (i32, i32) {
    %c0_i32 = arith.constant 0 : i32
    %c0_i32_0 = arith.constant 0 : i32
    %c0_i32_1 = arith.constant 0 : i32
    return %c0_i32, %c0_i32_0 : i32, i32
  }
  func.func @transform_26(%arg0: i32) -> (i32, i32) {
    %c0_i32 = arith.constant 0 : i32
    %c0_i32_0 = arith.constant 0 : i32
    %c0_i32_1 = arith.constant 0 : i32
    return %c0_i32, %c0_i32_0 : i32, i32
  }
  func.func @transform_27(%arg0: i32) -> (i32, i32, i32) {
    %c0_i32 = arith.constant 0 : i32
    %c0_i32_0 = arith.constant 0 : i32
    %c0_i32_1 = arith.constant 0 : i32
    %c0_i32_2 = arith.constant 0 : i32
    return %c0_i32, %c0_i32_0, %c0_i32_1 : i32, i32, i32
  }
  func.func @transform_28(%arg0: i32) -> (i32, i32) {
    %c0_i32 = arith.constant 0 : i32
    %c0_i32_0 = arith.constant 0 : i32
    %c0_i32_1 = arith.constant 0 : i32
    return %c0_i32, %c0_i32_0 : i32, i32
  }
  func.func @transform_29(%arg0: i32) -> (i32, i32) {
    %c0_i32 = arith.constant 0 : i32
    %c0_i32_0 = arith.constant 0 : i32
    %c0_i32_1 = arith.constant 0 : i32
    return %c0_i32, %c0_i32_0 : i32, i32
  }
  func.func @transform_30(%arg0: i32) -> (i32, i32, i32) {
    %c0_i32 = arith.constant 0 : i32
    %c0_i32_0 = arith.constant 0 : i32
    %c0_i32_1 = arith.constant 0 : i32
    %c0_i32_2 = arith.constant 0 : i32
    return %c0_i32, %c0_i32_0, %c0_i32_1 : i32, i32, i32
  }
  func.func @transform_31(%arg0: i32) -> (i32, i32) {
    %c0_i32 = arith.constant 0 : i32
    %c0_i32_0 = arith.constant 0 : i32
    %c0_i32_1 = arith.constant 0 : i32
    return %c0_i32, %c0_i32_0 : i32, i32
  }
  func.func @transform_32(%arg0: i32) -> (i32, i32) {
    %c0_i32 = arith.constant 0 : i32
    %c0_i32_0 = arith.constant 0 : i32
    %c0_i32_1 = arith.constant 0 : i32
    return %c0_i32, %c0_i32_0 : i32, i32
  }
  func.func @transform_33(%arg0: i32) -> (i32, i32, i32) {
    %c0_i32 = arith.constant 0 : i32
    %c0_i32_0 = arith.constant 0 : i32
    %c0_i32_1 = arith.constant 0 : i32
    %c0_i32_2 = arith.constant 0 : i32
    return %c0_i32, %c0_i32_0, %c0_i32_1 : i32, i32, i32
  }
  func.func @transform_34(%arg0: i32) -> (i32, i32) {
    %c0_i32 = arith.constant 0 : i32
    %c0_i32_0 = arith.constant 0 : i32
    %c0_i32_1 = arith.constant 0 : i32
    return %c0_i32, %c0_i32_0 : i32, i32
  }
  func.func @transform_35(%arg0: i32) -> (i32, i32) {
    %c0_i32 = arith.constant 0 : i32
    %c0_i32_0 = arith.constant 0 : i32
    %c0_i32_1 = arith.constant 0 : i32
    return %c0_i32, %c0_i32_0 : i32, i32
  }
  func.func @transform_36(%arg0: i32) -> (i32, i32) {
    %c0_i32 = arith.constant 0 : i32
    %c0_i32_0 = arith.constant 0 : i32
    %c0_i32_1 = arith.constant 0 : i32
    return %c0_i32, %c0_i32_0 : i32, i32
  }
  func.func @transform_37(%arg0: i32) -> (i32, i32) {
    %c0_i32 = arith.constant 0 : i32
    %c0_i32_0 = arith.constant 0 : i32
    %c0_i32_1 = arith.constant 0 : i32
    return %c0_i32, %c0_i32_0 : i32, i32
  }
  func.func @transform_38(%arg0: i32) -> (i32, i32) {
    %c0_i32 = arith.constant 0 : i32
    %c0_i32_0 = arith.constant 0 : i32
    %c0_i32_1 = arith.constant 0 : i32
    return %c0_i32, %c0_i32_0 : i32, i32
  }
  func.func @transform_39(%arg0: i32) -> (i32, i32) {
    %c0_i32 = arith.constant 0 : i32
    %c0_i32_0 = arith.constant 0 : i32
    %c0_i32_1 = arith.constant 0 : i32
    return %c0_i32, %c0_i32_0 : i32, i32
  }
  func.func @transform_40(%arg0: i32) -> (i32, i32) {
    %c0_i32 = arith.constant 0 : i32
    %c0_i32_0 = arith.constant 0 : i32
    %c0_i32_1 = arith.constant 0 : i32
    return %c0_i32, %c0_i32_0 : i32, i32
  }
  func.func @transform_41(%arg0: i32) -> (i32, i32) {
    %c0_i32 = arith.constant 0 : i32
    %c0_i32_0 = arith.constant 0 : i32
    %c0_i32_1 = arith.constant 0 : i32
    return %c0_i32, %c0_i32_0 : i32, i32
  }
  func.func @transform_42(%arg0: i32) -> (i32, i32) {
    %c0_i32 = arith.constant 0 : i32
    %c0_i32_0 = arith.constant 0 : i32
    %c0_i32_1 = arith.constant 0 : i32
    return %c0_i32, %c0_i32_0 : i32, i32
  }
  func.func @transform_43(%arg0: i32) -> (i32, i32) {
    %c0_i32 = arith.constant 0 : i32
    %c0_i32_0 = arith.constant 0 : i32
    %c0_i32_1 = arith.constant 0 : i32
    return %c0_i32, %c0_i32_0 : i32, i32
  }
  func.func @transform_44(%arg0: i32) -> (i32, i32, i32) {
    %c0_i32 = arith.constant 0 : i32
    %c0_i32_0 = arith.constant 0 : i32
    %c0_i32_1 = arith.constant 0 : i32
    return %arg0, %c0_i32, %c0_i32_0 : i32, i32, i32
  }
}

</mosaic_0001>

<bundles_post_ra>
// kernel: resnet1d_se_forward.1
= control target key start
LH: loop header
LB: loop body
LE: loop exit
PB: predicated region body
PF: predicated region fallthrough
CT: control target
= control target key end

     0   :  { %s9623_s6 = smov 1   ;;  %s9624_s10 = smov 2   ;;  %s10850_s0 = inlined_call_operand.smem [shape: u32[45], index: -1, kind: input, shape index: {}] }
   0x1   :  { %s9695_s5 = sld [smem:[%s10850_s0]]   ;;  %s9625_s14 = smov 3  }
   0x2   :  { %s9700_s9 = sld [smem:[%s10850_s0 + %s9623_s6]]   ;;  %s9626_s18 = smov 4  }
   0x3   :  { %s9705_s13 = sld [smem:[%s10850_s0 + %s9624_s10]]   ;;  %s9627_s22 = smov 5  }
   0x4   :  { %s9710_s17 = sld [smem:[%s10850_s0 + %s9625_s14]]   ;;  %s9628_s26 = smov 6  }
   0x5   :  { %s9715_s21 = sld [smem:[%s10850_s0 + %s9626_s18]]   ;;  %s9629_s30 = smov 7  }
   0x6   :  { %s9720_s25 = sld [smem:[%s10850_s0 + %s9627_s22]]   ;;  %s9630_s4 = smov 8  }
   0x7   :  { %10880 = sst [smem:[#allocation36_spill]] %s9695_s5  ;;  %s9631_s10 = smov 9  }
   0x8   :  { %10881 = sst [smem:[#allocation37_spill]] %s9700_s9  ;;  %s9632_s15 = smov 10  }
   0x9   :  { %10882 = sst [smem:[#allocation38_spill]] %s9705_s13  ;;  %s9633_s20 = smov 11  }
   0xa   :  { %10883 = sst [smem:[#allocation39_spill]] %s9710_s17  ;;  %s9635_s1 = smov 13  }
   0xb   :  { %10884 = sst [smem:[#allocation40_spill]] %s9715_s21  ;;  %s9636_s7 = smov 14  }
   0xc   :  { %s9725_s29 = sld [smem:[%s10850_s0 + %s9628_s26]]   ;;  %s9634_s26 = smov 12  }
   0xd   :  { %s9730_s3 = sld [smem:[%s10850_s0 + %s9629_s30]]   ;;  %s9638_s22 = smov 16  }
   0xe   :  { %s9735_s8 = sld [smem:[%s10850_s0 + %s9630_s4]]   ;;  %s9639_s28 = smov 17  }
   0xf   :  { %s9740_s14 = sld [smem:[%s10850_s0 + %s9631_s10]]   ;;  %s9642_s23 = smov 20  }
  0x10   :  { %s9745_s19 = sld [smem:[%s10850_s0 + %s9632_s15]]   ;;  %s9637_s15 = smov 15  }
  0x11   :  { %s7283_s24 = sld [smem:[%s10850_s0 + %s9633_s20]]  }
  0x12   :  { %10885 = sst [smem:[#allocation41_spill]] %s9725_s29 }
  0x13   :  { %10886 = sst [smem:[#allocation42_spill]] %s9730_s3 }
  0x14   :  { %10887 = sst [smem:[#allocation43_spill]] %s9735_s8 }
  0x15   :  { %s9753_s30 = sld [smem:[%s10850_s0 + %s9634_s26]]  }
  0x16   :  { %10888 = sst [smem:[#allocation44_spill]] %s9745_s19 }
  0x17   :  { %s9758_s6 = sld [smem:[%s10850_s0 + %s9635_s1]]   ;;  %v94_v0 = vstv %s7283_s24  ;;  %s9643_s24 = smov 21  }
  0x18   :  { %s9763_s12 = sld [smem:[%s10850_s0 + %s9636_s7]]   ;;  %s9640_s7 = smov 18   ;;  %95 = vst [vmem:[#allocation2] sm:$0x1] %v94_v0 }
  0x19   :  { %s9768_s20 = sld [smem:[%s10850_s0 + %s9637_s15]]   ;;  %s9641_s15 = smov 19  }
  0x1a   :  { %s9773_s27 = sld [smem:[%s10850_s0 + %s9638_s22]]  }
  0x1b   :  { %10889 = sst [smem:[#allocation45_spill]] %s9753_s30 }
  0x1c   :  { %s9778_s4 = sld [smem:[%s10850_s0 + %s9639_s28]]  }
  0x1d   :  { %10890 = sst [smem:[#allocation46_spill]] %s9758_s6 }
  0x1e   :  { %10891 = sst [smem:[#allocation47_spill]] %s9763_s12 }
  0x1f   :  { %10892 = sst [smem:[#allocation48_spill]] %s9768_s20  ;;  %s9645_s20 = smov 23  }
  0x20   :  { %10893 = sst [smem:[#allocation49_spill]] %s9773_s27  ;;  %s9646_s27 = smov 24  }
  0x21   :  { %s9783_s16 = sld [smem:[%s10850_s0 + %s9640_s7]]   ;;  %s9644_s7 = smov 22  }
  0x22   :  { %10894 = sst [smem:[#allocation50_spill]] %s9778_s4 }
  0x23   :  { %s9788_s22 = sld [smem:[%s10850_s0 + %s9641_s15]]  }
  0x24   :  { %s9793_s28 = sld [smem:[%s10850_s0 + %s9642_s23]]  }
  0x25   :  { %s9798_s10 = sld [smem:[%s10850_s0 + %s9643_s24]]   ;;  %s9647_s24 = smov 25  }
  0x26   :  { %s9803_s4 = sld [smem:[%s10850_s0 + %s9644_s7]]  }
  0x27   :  { %10895 = sst [smem:[#allocation51_spill]] %s9783_s16  ;;  %s9648_s16 = smov 26  }
  0x29   :  { %10896 = sst [smem:[#allocation52_spill]] %s9788_s22 }
  0x2a   :  { %10897 = sst [smem:[#allocation53_spill]] %s9793_s28 }
  0x2b   :  { %10898 = sst [smem:[#allocation54_spill]] %s9798_s10 }
  0x2c   :  { %10899 = sst [smem:[#allocation55_spill]] %s9803_s4 }
  0x2d   :  { %s9808_s22 = sld [smem:[%s10850_s0 + %s9645_s20]]   ;;  %s9649_s20 = smov 27  }
  0x2e   :  { %s9813_s28 = sld [smem:[%s10850_s0 + %s9646_s27]]   ;;  %s9650_s27 = smov 28  }
  0x2f   :  { %s9818_s10 = sld [smem:[%s10850_s0 + %s9647_s24]]   ;;  %s9651_s24 = smov 29  }
  0x30   :  { %s9823_s4 = sld [smem:[%s10850_s0 + %s9648_s16]]   ;;  %s9652_s16 = smov 30  }
  0x33   :  { %10900 = sst [smem:[#allocation56_spill]] %s9808_s22 }
  0x34   :  { %10901 = sst [smem:[#allocation57_spill]] %s9813_s28 }
  0x35   :  { %10902 = sst [smem:[#allocation58_spill]] %s9818_s10 }
  0x36   :  { %10903 = sst [smem:[#allocation59_spill]] %s9823_s4 }
  0x37   :  { %s9828_s22 = sld [smem:[%s10850_s0 + %s9649_s20]]   ;;  %s9653_s20 = smov 31  }
  0x38   :  { %s9833_s28 = sld [smem:[%s10850_s0 + %s9650_s27]]   ;;  %s9654_s27 = smov 32  }
  0x39   :  { %s9838_s10 = sld [smem:[%s10850_s0 + %s9651_s24]]   ;;  %s9655_s24 = smov 33  }
  0x3a   :  { %s9843_s4 = sld [smem:[%s10850_s0 + %s9652_s16]]   ;;  %s9656_s16 = smov 34  }
  0x3d   :  { %10904 = sst [smem:[#allocation60_spill]] %s9828_s22 }
  0x3e   :  { %10905 = sst [smem:[#allocation61_spill]] %s9833_s28 }
  0x3f   :  { %10906 = sst [smem:[#allocation62_spill]] %s9838_s10 }
  0x40   :  { %10907 = sst [smem:[#allocation63_spill]] %s9843_s4 }
  0x41   :  { %s9848_s22 = sld [smem:[%s10850_s0 + %s9653_s20]]   ;;  %s9657_s20 = smov 35  }
  0x42   :  { %s9853_s28 = sld [smem:[%s10850_s0 + %s9654_s27]]   ;;  %s9658_s27 = smov 36  }
  0x43   :  { %s9858_s10 = sld [smem:[%s10850_s0 + %s9655_s24]]   ;;  %s9659_s24 = smov 37  }
  0x44   :  { %s9863_s4 = sld [smem:[%s10850_s0 + %s9656_s16]]   ;;  %s9660_s16 = smov 38  }
  0x45   :  { %s9868_s12 = sld [smem:[%s10850_s0 + %s9657_s20]]   ;;  %s9661_s20 = smov 39  }
  0x46   :  { %s9873_s6 = sld [smem:[%s10850_s0 + %s9658_s27]]   ;;  %s9662_s27 = smov 40  }
  0x47   :  { %s9878_s30 = sld [smem:[%s10850_s0 + %s9659_s24]]   ;;  %s9663_s24 = smov 41  }
  0x48   :  { %s9883_s19 = sld [smem:[%s10850_s0 + %s9660_s16]]   ;;  %s9664_s16 = smov 42  }
  0x49   :  { %10908 = sst [smem:[#allocation64_spill]] %s9858_s10 }
  0x4a   :  { %10909 = sst [smem:[#allocation65_spill]] %s9863_s4 }
  0x4b   :  { %s9888_s21 = sld [smem:[%s10850_s0 + %s9661_s20]]   ;;  %s9665_s20 = smov 43  }
  0x4c   :  { %10910 = sst [smem:[#allocation66_spill]] %s9873_s6 }
  0x4d   :  { %s9893_s6 = sld [smem:[%s10850_s0 + %s9662_s27]]   ;;  %s9666_s27 = smov 44  }
  0x4e   :  { %10911 = sst [smem:[#allocation67_spill]] %s9883_s19 }
  0x4f   :  { %s9898_s17 = sld [smem:[%s10850_s0 + %s9663_s24]]  }
  0x50   :  { %s9903_s19 = sld [smem:[%s10850_s0 + %s9664_s16]]  }
  0x51   :  { %s9908_s13 = sld [smem:[%s10850_s0 + %s9665_s20]]  }
  0x53   :  { %10912 = sst [smem:[#allocation68_spill]] %s9893_s6 }
  0x54   :  { %s9913_s6 = sld [smem:[%s10850_s0 + %s9666_s27]]  }
  0x55   :  { %96 = vsyncpa [#allocation4], 0 }
  0x56   :  { %97 = vsyncpa [#allocation7], 0 }
  0x57   :  { %98 = vsyncpa [#allocation10], 0 }
  0x58   :  { %99 = vsyncpa [#allocation13], 0 }
  0x59   :  { %100 = vsyncpa [#allocation16], 0 }
  0x5a   :  { %101 = vsyncpa [#allocation19], 0 }
  0x5b   :  { %102 = vsyncpa [#allocation22], 0 }
  0x5c   :  { %103 = vsyncpa [#allocation25], 0 }
  0x5d   :  { %104 = vsyncpa [#allocation5], 0 }
  0x5e   :  { %106 = vsyncpa [#allocation5 + $0x1], 0  ;;  %s9915_s24 = smov 0   ;;  %s9917_s1 = smov 0  }
  0x5f   :  { %s9919_s2 = smov 0   ;;  %s9921_s16 = smov 0  }
  0x60 LB: > { %s10913_s10 = sld [smem:[#allocation64_spill]]  ;;  %s10914_s9 = sld [smem:[#allocation37_spill]]  ;;  %s9613_s1 = sphi %s9917_s1, %s10988_s1   ;;  %s9609_s24 = sphi %s9915_s24, %s10987_s24   ;;  %s9621_s16 = sphi %s9921_s16, %s10984_s16   ;;  %s9617_s2 = sphi %s9919_s2, %s10986_s2  }
  0x61   : > { %s10915_s4 = sld [smem:[#allocation65_spill]]  ;;  %s10916_s3 = sld [smem:[#allocation42_spill]] }
  0x62   : > { %s10917_s29 = sld [smem:[#allocation41_spill]]  ;;  %s10918_s8 = sld [smem:[#allocation43_spill]] }
  0x63   : > { %10919 = sst [smem:[#allocation69_spill]] %s9609_s24  ;;  %s9936_s0 = sadd.s32 4294967295, %s9621_s16  }
  0x64   : > { %10920 = sst [smem:[#allocation70_spill]] %s9617_s2  ;;  %s7318_s7 = sadd.s32 4294967294, %s9621_s16  }
  0x65   : > { %s9940_s11 = sadd.s32 1, %s9621_s16   ;;  %s1048_s20 = sadd.s32 1, %s9617_s2 }
  0x66   : > { %10921 = sst [smem:[#allocation71_spill]] %s9940_s11  ;;  %s1045_s15 = ssub.s32 %s9621_s16, %s9940_s11 }
  0x67   : > { %p1058_p0 = scmp.ne.s32.totalorder %s9617_s2, %s9613_s1  ;;  %p1046_p1 = scmp.eq.s32.totalorder %s1045_s15, 0 }
  0x68   : > { %p1059_p2 = scmp.eq.s32.totalorder %s9936_s0, 1  ;;  %p1064_p3 = scmp.ne.s32.totalorder %s9613_s1, %s9609_s24 }
  0x69   : > { %p1065_p4 = scmp.eq.s32.totalorder %s7318_s7, 1  ;;  %p7319_p7 = scmp.ge.s32.totalorder %s9621_s16, 1 }
  0x6a   : > { %s9951_s18 = scalar_select %p1046_p1, %s9617_s2, %s1048_s20  }
  0x6b   : > { %p9953_p5 = por %p1059_p2, %p1058_p0  ;;  %p9957_p6 = por %p1065_p4, %p1064_p3 }
  0x6c   : > { %10922 = sst [smem:[#allocation72_spill]] %s9951_s18  ;;  %p1072_p8 = scmp.lt.s32.totalorder %s9621_s16, 3 }
  0x6d   : > { %s10923_s27 = scalar_select %p9953_p5, 1, 0 }
  0x6e   : > { %s10924_s23 = scalar_select %p9957_p6, 1, 0 }
  0x6f   : > { %p10866_p9 = scmp.eq.s32.totalorder %s9936_s0, 0  ;;  %p9964_p10 = pnand %p7319_p7, %p1072_p8 }
  0x70   : > { %10925 = sst [smem:[#allocation73_spill]] %s10924_s23  ;;  %s9667_s7 = smov [#allocation6]  }
  0x71   : > { %s10926_s26 = scalar_select %p9964_p10, 1, 0 }
  0x72   : > { %s1108_s20 = sshll.u32 %s9667_s7, 4  ;;  %p8952_p11 = pneg %p9964_p10  ;;  %s1109_s20 = int_to_ptr.vmem [resolvable:$true] %s1108_s20 }
  0x73   : > { %s9668_s15 = smov [#allocation9]   ;;  %s9669_s11 = smov [#allocation12]  }
  0x74   : > { %s1132_s18 = sshll.u32 %s9668_s15, 4  ;;  %p9972_p12 = pnand %p10866_p9, %p8952_p11  ;;  %s9976_s18 = int_to_ptr.vmem [resolvable:$true] %s1132_s18 }
  0x75   : > { %s1217_s23 = sshll.u32 %s9669_s11, 4  ;;  %s9135_s24 = scalar_lea.hbm %s10917_s29, 16  ;;  %s9978_s23 = int_to_ptr.vmem [resolvable:$true] %s1217_s23 }
  0x76   : > { %p9136_p13 = scmp.ne.s32.totalorder %s10917_s29, %s9135_s24  ;;  %p9984_p0 = pneg %p9972_p12 }
  0x77   : > { %p9142_p3 = scmp.lt.u32.totalorder %s9135_s24, %s10917_s29 }
  0x78   : > { %p9138_p1 = pnand %p9984_p0, %p9136_p13 }
  0x7a   : > { %p9139_p2 = pneg %p9138_p1 }
  0x7c   : > { %p9144_p4 = pnand %p9142_p3, %p9139_p2 }
  0x7e   : > { %9147 = shalt.err (!%p9144_p4)
}
  0x7f   : > { %s9148_s15 = scalar_lea.vmem %s1109_s20, 16  ;;  %s9155_s11 = scalar_lea.vmem %s1109_s20, 32 }
  0x80   : > { %p9149_p7 = scmp.ne.s32.totalorder %s1109_s20, %s9148_s15  ;;  %p9156_p9 = scmp.lt.s32.totalorder %s1109_s20, %s1109_s20 }
  0x81   : > { %p9157_p6 = scmp.lt.s32.totalorder %s9155_s11, %s9148_s15 }
  0x82   : > { %p9151_p8 = pnand %p9149_p7, %p9984_p0 }
  0x83   : > { %p9158_p5 = por %p9157_p6, %p9156_p9 }
  0x84   : > { %p9152_p11 = pneg %p9151_p8 }
  0x86   : > { %p9159_p10 = pnand %p9158_p5, %p9152_p11 }
  0x88   : > { %9162 = shalt.err (!%p9159_p10)
}
  0x89   : > { %8958 = dma.hbm_to_vmem [thread:$0]  (!%p9972_p12), %s10917_s29, 16, %s1109_s20, [#allocation7]  }
  0x8a   : > { %s9163_s24 = scalar_lea.hbm %s10918_s8, 16 }
  0x8b   : > { %p9164_p13 = scmp.ne.s32.totalorder %s10918_s8, %s9163_s24  ;;  %p9170_p3 = scmp.lt.u32.totalorder %s9163_s24, %s10918_s8 }
  0x8d   : > { %p9166_p1 = pnand %p9164_p13, %p9984_p0 }
  0x8f   : > { %p9167_p2 = pneg %p9166_p1 }
  0x91   : > { %p9172_p4 = pnand %p9170_p3, %p9167_p2 }
  0x93   : > { %9175 = shalt.err (!%p9172_p4)
}
  0x94   : > { %s9176_s15 = scalar_lea.vmem %s9976_s18, 16  ;;  %s9183_s11 = scalar_lea.vmem %s9976_s18, 32 }
  0x95   : > { %p9177_p5 = scmp.ne.s32.totalorder %s9976_s18, %s9176_s15  ;;  %p9184_p10 = scmp.lt.s32.totalorder %s9976_s18, %s9976_s18 }
  0x96   : > { %p9185_p7 = scmp.lt.s32.totalorder %s9183_s11, %s9176_s15 }
  0x97   : > { %p9179_p6 = pnand %p9177_p5, %p9984_p0 }
  0x98   : > { %p9186_p8 = por %p9185_p7, %p9184_p10 }
  0x99   : > { %p9180_p9 = pneg %p9179_p6 }
  0x9b   : > { %p9187_p11 = pnand %p9186_p8, %p9180_p9 }
  0x9d   : > { %9190 = shalt.err (!%p9187_p11)
}
  0x9e   : > { %8964 = dma.hbm_to_vmem [thread:$0]  (!%p9972_p12), %s10918_s8, 16, %s9976_s18, [#allocation10]  }
  0x9f   : > { %s9191_s20 = scalar_lea.hbm %s9848_s22, 16 }
  0xa0   : > { %p9192_p13 = scmp.ne.s32.totalorder %s9848_s22, %s9191_s20  ;;  %p9198_p3 = scmp.lt.u32.totalorder %s9191_s20, %s9848_s22 }
  0xa2   : > { %p9194_p1 = pnand %p9192_p13, %p9984_p0 }
  0xa4   : > { %p9195_p2 = pneg %p9194_p1 }
  0xa6   : > { %p9200_p4 = pnand %p9198_p3, %p9195_p2 }
  0xa8   : > { %9203 = shalt.err (!%p9200_p4)
}
  0xa9   : > { %s9204_s24 = scalar_lea.vmem %s9978_s23, 16  ;;  %s9211_s15 = scalar_lea.vmem %s9978_s23, 32 }
  0xaa   : > { %p9205_p5 = scmp.ne.s32.totalorder %s9978_s23, %s9204_s24  ;;  %p9212_p10 = scmp.lt.s32.totalorder %s9978_s23, %s9978_s23 }
  0xab   : > { %p9213_p7 = scmp.lt.s32.totalorder %s9211_s15, %s9204_s24 }
  0xac   : > { %p9207_p6 = pnand %p9205_p5, %p9984_p0 }
  0xad   : > { %p9214_p8 = por %p9213_p7, %p9212_p10 }
  0xae   : > { %p9208_p9 = pneg %p9207_p6 }
  0xb0   : > { %p9215_p11 = pnand %p9214_p8, %p9208_p9 }
  0xb2   : > { %9218 = shalt.err (!%p9215_p11)
}
  0xb3   : > { %8970 = dma.hbm_to_vmem [thread:$0]  (!%p9972_p12), %s9848_s22, 16, %s9978_s23, [#allocation13]  }
  0xb4   : > { %s9670_s18 = smov [#allocation15]   ;;  %s9671_s20 = smov [#allocation18]  }
  0xb5   : > { %s1238_s11 = sshll.u32 %s9670_s18, 4  ;;  %s1263_s8 = sshll.u32 %s9671_s20, 4  ;;  %s1239_s11 = int_to_ptr.vmem [resolvable:$true] %s1238_s11  ;;  %s1264_s8 = int_to_ptr.vmem [resolvable:$true] %s1263_s8 }
  0xb6   : > { %s9219_s29 = scalar_lea.hbm %s10913_s10, 512 }
  0xb7   : > { %p9220_p13 = scmp.ne.s32.totalorder %s10913_s10, %s9219_s29  ;;  %p9226_p3 = scmp.lt.u32.totalorder %s9219_s29, %s10913_s10 }
  0xb9   : > { %p9222_p1 = pnand %p9220_p13, %p9984_p0 }
  0xbb   : > { %p9223_p2 = pneg %p9222_p1 }
  0xbd   : > { %p9228_p4 = pnand %p9226_p3, %p9223_p2 }
  0xbf   : > { %9231 = shalt.err (!%p9228_p4)
}
  0xc0   : > { %s9232_s24 = scalar_lea.vmem %s1239_s11, 512  ;;  %p9240_p10 = scmp.lt.s32.totalorder %s1239_s11, %s1239_s11 }
  0xc1   : > { %p9233_p5 = scmp.ne.s32.totalorder %s1239_s11, %s9232_s24  ;;  %p9241_p7 = scmp.lt.s32.totalorder %s9232_s24, %s9232_s24 }
  0xc3   : > { %p9235_p6 = pnand %p9233_p5, %p9984_p0  ;;  %p9242_p8 = por %p9241_p7, %p9240_p10 }
  0xc5   : > { %p9236_p9 = pneg %p9235_p6 }
  0xc7   : > { %p9243_p11 = pnand %p9242_p8, %p9236_p9 }
  0xc9   : > { %9246 = shalt.err (!%p9243_p11)
}
  0xca   : > { %s10871_s23 = smov 128   ;;  %s10872_s29 = smov 8  }
  0xcb   : > { %8976 = dma.hbm_to_vmem [thread:$0]  (!%p9972_p12), %s10913_s10, 512, %s1239_s11, [#allocation16], %s10871_s23, %s10871_s23, %s10872_s29  }
  0xcc   : > { %s9247_s15 = scalar_lea.hbm %s9868_s12, 16 }
  0xcd   : > { %p9248_p13 = scmp.ne.s32.totalorder %s9868_s12, %s9247_s15  ;;  %p9254_p3 = scmp.lt.u32.totalorder %s9247_s15, %s9868_s12 }
  0xcf   : > { %p9250_p1 = pnand %p9248_p13, %p9984_p0 }
  0xd1   : > { %p9251_p2 = pneg %p9250_p1 }
  0xd3   : > { %p9256_p4 = pnand %p9254_p3, %p9251_p2 }
  0xd5   : > { %9259 = shalt.err (!%p9256_p4)
}
  0xd6   : > { %s9260_s18 = scalar_lea.vmem %s1264_s8, 16  ;;  %s9267_s20 = scalar_lea.vmem %s1264_s8, 32 }
  0xd7   : > { %p9261_p5 = scmp.ne.s32.totalorder %s1264_s8, %s9260_s18  ;;  %p9268_p10 = scmp.lt.s32.totalorder %s1264_s8, %s1264_s8 }
  0xd8   : > { %p9269_p7 = scmp.lt.s32.totalorder %s9267_s20, %s9260_s18 }
  0xd9   : > { %p9263_p6 = pnand %p9261_p5, %p9984_p0 }
  0xda   : > { %p9270_p8 = por %p9269_p7, %p9268_p10 }
  0xdb   : > { %p9264_p9 = pneg %p9263_p6 }
  0xdd   : > { %p9271_p11 = pnand %p9270_p8, %p9264_p9 }
  0xdf   : > { %9274 = shalt.err (!%p9271_p11)
}
  0xe0   : > { %8982 = dma.hbm_to_vmem [thread:$0]  (!%p9972_p12), %s9868_s12, 16, %s1264_s8, [#allocation19]  }
  0xe1   : > { %s9674_s11 = smov [#allocation21]   ;;  %s9675_s15 = smov [#allocation3]  }
  0xe2   : > { %s1291_s24 = sshll.u32 %s9674_s11, 4  ;;  %s1097_s23 = sshll.u32 %s9675_s15, 4  ;;  %s1292_s24 = int_to_ptr.vmem [resolvable:$true] %s1291_s24  ;;  %s1098_s23 = int_to_ptr.vmem [resolvable:$true] %s1097_s23 }
  0xe3   : > { %s9275_s29 = scalar_lea.hbm %s9888_s21, 16 }
  0xe4   : > { %p9276_p13 = scmp.ne.s32.totalorder %s9888_s21, %s9275_s29  ;;  %p9282_p3 = scmp.lt.u32.totalorder %s9275_s29, %s9888_s21 }
  0xe6   : > { %p9278_p1 = pnand %p9276_p13, %p9984_p0 }
  0xe8   : > { %p9279_p2 = pneg %p9278_p1 }
  0xea   : > { %p9284_p4 = pnand %p9282_p3, %p9279_p2 }
  0xec   : > { %9287 = shalt.err (!%p9284_p4)
}
  0xed   : > { %s9288_s18 = scalar_lea.vmem %s1292_s24, 16  ;;  %s9295_s8 = scalar_lea.vmem %s1292_s24, 32 }
  0xee   : > { %p9289_p5 = scmp.ne.s32.totalorder %s1292_s24, %s9288_s18  ;;  %p9296_p10 = scmp.lt.s32.totalorder %s1292_s24, %s1292_s24 }
  0xef   : > { %p9297_p7 = scmp.lt.s32.totalorder %s9295_s8, %s9288_s18 }
  0xf0   : > { %p9291_p6 = pnand %p9289_p5, %p9984_p0 }
  0xf1   : > { %p9298_p8 = por %p9297_p7, %p9296_p10 }
  0xf2   : > { %p9292_p9 = pneg %p9291_p6 }
  0xf4   : > { %p9299_p11 = pnand %p9298_p8, %p9292_p9 }
  0xf6   : > { %9302 = shalt.err (!%p9299_p11)
}
  0xf7   : > { %8988 = dma.hbm_to_vmem [thread:$0]  (!%p9972_p12), %s9888_s21, 16, %s1292_s24, [#allocation22]  }
  0xf8   : > { %s9303_s29 = scalar_lea.hbm %s9720_s25, 16 }
  0xf9   : > { %p9304_p13 = scmp.ne.s32.totalorder %s9720_s25, %s9303_s29  ;;  %p9310_p3 = scmp.lt.u32.totalorder %s9303_s29, %s9720_s25 }
  0xfb   : > { %p9306_p1 = pnand %p9304_p13, %p9984_p0 }
  0xfd   : > { %p9307_p2 = pneg %p9306_p1 }
  0xff   : > { %p9312_p4 = pnand %p9310_p3, %p9307_p2 }
 0x101   : > { %9315 = shalt.err (!%p9312_p4)
}
 0x102   : > { %s9316_s20 = scalar_lea.vmem %s1098_s23, 16  ;;  %s9323_s11 = scalar_lea.vmem %s1098_s23, 32 }
 0x103   : > { %p9317_p5 = scmp.ne.s32.totalorder %s1098_s23, %s9316_s20  ;;  %p9324_p10 = scmp.lt.s32.totalorder %s1098_s23, %s1098_s23 }
 0x104   : > { %p9325_p7 = scmp.lt.s32.totalorder %s9323_s11, %s9316_s20 }
 0x105   : > { %p9319_p6 = pnand %p9317_p5, %p9984_p0 }
 0x106   : > { %p9326_p8 = por %p9325_p7, %p9324_p10 }
 0x107   : > { %p9320_p9 = pneg %p9319_p6 }
 0x109   : > { %p9327_p11 = pnand %p9326_p8, %p9320_p9 }
 0x10b   : > { %9330 = shalt.err (!%p9327_p11)
}
 0x10c   : > { %8955 = dma.hbm_to_vmem [thread:$0]  (!%p9972_p12), %s9720_s25, 16, %s1098_s23, [#allocation4]  }
 0x10d   : > { %s9676_s24 = smov [#allocation8]   ;;  %s9677_s18 = smov [#allocation11]  }
 0x10e   : > { %s1118_s15 = sshll.u32 %s9676_s24, 4  ;;  %s1143_s8 = sshll.u32 %s9677_s18, 4  ;;  %s1119_s15 = int_to_ptr.vmem [resolvable:$true] %s1118_s15  ;;  %s1144_s8 = int_to_ptr.vmem [resolvable:$true] %s1143_s8 }
 0x10f   : > { %s9331_s29 = scalar_lea.hbm %s10916_s3, 768 }
 0x110   : > { %p9332_p13 = scmp.ne.s32.totalorder %s10916_s3, %s9331_s29  ;;  %p9338_p3 = scmp.lt.u32.totalorder %s9331_s29, %s10916_s3 }
 0x112   : > { %p9334_p1 = pnand %p9332_p13, %p9984_p0 }
 0x114   : > { %p9335_p2 = pneg %p9334_p1 }
 0x116   : > { %p9340_p4 = pnand %p9338_p3, %p9335_p2 }
 0x118   : > { %9343 = shalt.err (!%p9340_p4)
}
 0x119   : > { %s9344_s20 = scalar_lea.vmem %s1119_s15, 768  ;;  %p9352_p10 = scmp.lt.s32.totalorder %s1119_s15, %s1119_s15 }
 0x11a   : > { %p9345_p5 = scmp.ne.s32.totalorder %s1119_s15, %s9344_s20  ;;  %p9353_p7 = scmp.lt.s32.totalorder %s9344_s20, %s9344_s20 }
 0x11c   : > { %p9347_p6 = pnand %p9345_p5, %p9984_p0  ;;  %p9354_p8 = por %p9353_p7, %p9352_p10 }
 0x11e   : > { %p9348_p9 = pneg %p9347_p6 }
 0x120   : > { %p9355_p11 = pnand %p9354_p8, %p9348_p9 }
 0x122   : > { %9358 = shalt.err (!%p9355_p11)
}
 0x123   : > { %s10929_s23 = smov 8   ;;  %s10930_s11 = smov 128  }
 0x124   : > { %8961 = dma.hbm_to_vmem [thread:$0]  (!%p9972_p12), %s10916_s3, 768, %s1119_s15, [#allocation7], %s10930_s11, %s10930_s11, %s10929_s23  }
 0x125   : > { %s9359_s24 = scalar_lea.hbm %s9740_s14, 16 }
 0x126   : > { %p9360_p13 = scmp.ne.s32.totalorder %s9740_s14, %s9359_s24  ;;  %p9366_p3 = scmp.lt.u32.totalorder %s9359_s24, %s9740_s14 }
 0x128   : > { %p9362_p1 = pnand %p9360_p13, %p9984_p0 }
 0x12a   : > { %p9363_p2 = pneg %p9362_p1 }
 0x12c   : > { %p9368_p4 = pnand %p9366_p3, %p9363_p2 }
 0x12e   : > { %9371 = shalt.err (!%p9368_p4)
}
 0x12f   : > { %s9372_s18 = scalar_lea.vmem %s1144_s8, 16  ;;  %s9379_s29 = scalar_lea.vmem %s1144_s8, 32 }
 0x130   : > { %p9373_p5 = scmp.ne.s32.totalorder %s1144_s8, %s9372_s18  ;;  %p9380_p10 = scmp.lt.s32.totalorder %s1144_s8, %s1144_s8 }
 0x131   : > { %p9381_p7 = scmp.lt.s32.totalorder %s9379_s29, %s9372_s18 }
 0x132   : > { %p9375_p6 = pnand %p9373_p5, %p9984_p0 }
 0x133   : > { %p9382_p8 = por %p9381_p7, %p9380_p10 }
 0x134   : > { %p9376_p9 = pneg %p9375_p6 }
 0x136   : > { %p9383_p11 = pnand %p9382_p8, %p9376_p9 }
 0x138   : > { %9386 = shalt.err (!%p9383_p11)
}
 0x139   : > { %8967 = dma.hbm_to_vmem [thread:$0]  (!%p9972_p12), %s9740_s14, 16, %s1144_s8, [#allocation10]  }
 0x13a   : > { %s9678_s15 = smov [#allocation14]   ;;  %s9679_s23 = smov [#allocation17]  }
 0x13b   : > { %s1228_s20 = sshll.u32 %s9678_s15, 4  ;;  %s1252_s11 = sshll.u32 %s9679_s23, 4  ;;  %s1229_s20 = int_to_ptr.vmem [resolvable:$true] %s1228_s20  ;;  %s1253_s11 = int_to_ptr.vmem [resolvable:$true] %s1252_s11 }
 0x13c   : > { %s9387_s24 = scalar_lea.hbm %s9853_s28, 16 }
 0x13d   : > { %p9388_p13 = scmp.ne.s32.totalorder %s9853_s28, %s9387_s24  ;;  %p9394_p3 = scmp.lt.u32.totalorder %s9387_s24, %s9853_s28 }
 0x13f   : > { %p9390_p1 = pnand %p9388_p13, %p9984_p0 }
 0x141   : > { %p9391_p2 = pneg %p9390_p1 }
 0x143   : > { %p9396_p4 = pnand %p9394_p3, %p9391_p2 }
 0x145   : > { %9399 = shalt.err (!%p9396_p4)
}
 0x146   : > { %s9400_s18 = scalar_lea.vmem %s1229_s20, 16  ;;  %s9407_s8 = scalar_lea.vmem %s1229_s20, 32 }
 0x147   : > { %p9401_p5 = scmp.ne.s32.totalorder %s1229_s20, %s9400_s18  ;;  %p9408_p10 = scmp.lt.s32.totalorder %s1229_s20, %s1229_s20 }
 0x148   : > { %p9409_p7 = scmp.lt.s32.totalorder %s9407_s8, %s9400_s18 }
 0x149   : > { %p9403_p6 = pnand %p9401_p5, %p9984_p0 }
 0x14a   : > { %p9410_p8 = por %p9409_p7, %p9408_p10 }
 0x14b   : > { %p9404_p9 = pneg %p9403_p6 }
 0x14d   : > { %p9411_p11 = pnand %p9410_p8, %p9404_p9 }
 0x14f   : > { %9414 = shalt.err (!%p9411_p11)
}
 0x150   : > { %8973 = dma.hbm_to_vmem [thread:$0]  (!%p9972_p12), %s9853_s28, 16, %s1229_s20, [#allocation13]  }
 0x151   : > { %s9415_s29 = scalar_lea.hbm %s10915_s4, 16 }
 0x152   : > { %p9416_p13 = scmp.ne.s32.totalorder %s10915_s4, %s9415_s29  ;;  %p9422_p3 = scmp.lt.u32.totalorder %s9415_s29, %s10915_s4 }
 0x154   : > { %p9418_p1 = pnand %p9416_p13, %p9984_p0 }
 0x156   : > { %p9419_p2 = pneg %p9418_p1 }
 0x158   : > { %p9424_p4 = pnand %p9422_p3, %p9419_p2 }
 0x15a   : > { %9427 = shalt.err (!%p9424_p4)
}
 0x15b   : > { %s9428_s15 = scalar_lea.vmem %s1253_s11, 16  ;;  %s9435_s23 = scalar_lea.vmem %s1253_s11, 32 }
 0x15c   : > { %p9429_p5 = scmp.ne.s32.totalorder %s1253_s11, %s9428_s15  ;;  %p9436_p10 = scmp.lt.s32.totalorder %s1253_s11, %s1253_s11 }
 0x15d   : > { %p9437_p7 = scmp.lt.s32.totalorder %s9435_s23, %s9428_s15 }
 0x15e   : > { %p9431_p6 = pnand %p9429_p5, %p9984_p0 }
 0x15f   : > { %p9438_p8 = por %p9437_p7, %p9436_p10 }
 0x160   : > { %p9432_p9 = pneg %p9431_p6 }
 0x162   : > { %p9439_p11 = pnand %p9438_p8, %p9432_p9 }
 0x164   : > { %9442 = shalt.err (!%p9439_p11)
}
 0x165   : > { %8979 = dma.hbm_to_vmem [thread:$0]  (!%p9972_p12), %s10915_s4, 16, %s1253_s11, [#allocation16]  }
 0x166   : > { %s9680_s20 = smov [#allocation20]   ;;  %s9681_s18 = smov [#allocation23]  }
 0x167   : > { %s1277_s24 = sshll.u32 %s9680_s20, 4  ;;  %s1305_s8 = sshll.u32 %s9681_s18, 4  ;;  %s1278_s24 = int_to_ptr.vmem [resolvable:$true] %s1277_s24  ;;  %s1306_s8 = int_to_ptr.vmem [resolvable:$true] %s1305_s8 }
 0x168   : > { %s9443_s29 = scalar_lea.hbm %s9878_s30, 16 }
 0x169   : > { %p9444_p13 = scmp.ne.s32.totalorder %s9878_s30, %s9443_s29  ;;  %p9450_p3 = scmp.lt.u32.totalorder %s9443_s29, %s9878_s30 }
 0x16b   : > { %p9446_p1 = pnand %p9444_p13, %p9984_p0 }
 0x16d   : > { %p9447_p2 = pneg %p9446_p1 }
 0x16f   : > { %p9452_p4 = pnand %p9450_p3, %p9447_p2 }
 0x171   : > { %9455 = shalt.err (!%p9452_p4)
}
 0x172   : > { %s9456_s15 = scalar_lea.vmem %s1278_s24, 16  ;;  %s9463_s11 = scalar_lea.vmem %s1278_s24, 32 }
 0x173   : > { %p9457_p5 = scmp.ne.s32.totalorder %s1278_s24, %s9456_s15  ;;  %p9464_p10 = scmp.lt.s32.totalorder %s1278_s24, %s1278_s24 }
 0x174   : > { %p9465_p7 = scmp.lt.s32.totalorder %s9463_s11, %s9456_s15 }
 0x175   : > { %p9459_p6 = pnand %p9457_p5, %p9984_p0 }
 0x176   : > { %p9466_p8 = por %p9465_p7, %p9464_p10 }
 0x177   : > { %p9460_p9 = pneg %p9459_p6 }
 0x179   : > { %p9467_p11 = pnand %p9466_p8, %p9460_p9 }
 0x17b   : > { %9470 = shalt.err (!%p9467_p11)
}
 0x17c   : > { %8985 = dma.hbm_to_vmem [thread:$0]  (!%p9972_p12), %s9878_s30, 16, %s1278_s24, [#allocation19]  }
 0x17d   : > { %s9471_s23 = scalar_lea.hbm %s9898_s17, 16 }
 0x17e   : > { %p9472_p13 = scmp.ne.s32.totalorder %s9898_s17, %s9471_s23  ;;  %p9478_p3 = scmp.lt.u32.totalorder %s9471_s23, %s9898_s17 }
 0x180   : > { %p9474_p1 = pnand %p9472_p13, %p9984_p0 }
 0x182   : > { %p9475_p2 = pneg %p9474_p1 }
 0x184   : > { %p9480_p4 = pnand %p9478_p3, %p9475_p2 }
 0x186   : > { %9483 = shalt.err (!%p9480_p4)
}
 0x187   : > { %s9484_s20 = scalar_lea.vmem %s1306_s8, 16  ;;  %s9491_s18 = scalar_lea.vmem %s1306_s8, 32 }
 0x188   : > { %p9485_p5 = scmp.ne.s32.totalorder %s1306_s8, %s9484_s20  ;;  %p9492_p10 = scmp.lt.s32.totalorder %s1306_s8, %s1306_s8 }
 0x189   : > { %p9493_p7 = scmp.lt.s32.totalorder %s9491_s18, %s9484_s20 }
 0x18a   : > { %p9487_p6 = pnand %p9485_p5, %p9984_p0 }
 0x18b   : > { %p9494_p8 = por %p9493_p7, %p9492_p10 }
 0x18c   : > { %p9488_p9 = pneg %p9487_p6 }
 0x18e   : > { %p9495_p11 = pnand %p9494_p8, %p9488_p9 }
 0x190   : > { %9498 = shalt.err (!%p9495_p11)
}
 0x191   : > { %8991 = dma.hbm_to_vmem [thread:$0]  (!%p9972_p12), %s9898_s17, 16, %s1306_s8, [#allocation22]  }
 0x192   : > { %s9682_s24 = smov [#allocation24]   ;;  %s9499_s15 = scalar_lea.hbm %s9908_s13, 16 }
 0x193   : > { %s1319_s29 = sshll.u32 %s9682_s24, 4  ;;  %p9500_p13 = scmp.ne.s32.totalorder %s9908_s13, %s9499_s15  ;;  %s1320_s29 = int_to_ptr.vmem [resolvable:$true] %s1319_s29 }
 0x194   : > { %p9506_p3 = scmp.lt.u32.totalorder %s9499_s15, %s9908_s13 }
 0x195   : > { %p9502_p1 = pnand %p9500_p13, %p9984_p0 }
 0x197   : > { %p9503_p2 = pneg %p9502_p1 }
 0x199   : > { %p9508_p4 = pnand %p9506_p3, %p9503_p2 }
 0x19b   : > { %9511 = shalt.err (!%p9508_p4)
}
 0x19c   : > { %s9512_s11 = scalar_lea.vmem %s1320_s29, 16  ;;  %s9519_s23 = scalar_lea.vmem %s1320_s29, 32 }
 0x19d   : > { %p9513_p5 = scmp.ne.s32.totalorder %s1320_s29, %s9512_s11  ;;  %p9520_p10 = scmp.lt.s32.totalorder %s1320_s29, %s1320_s29 }
 0x19e   : > { %p9521_p7 = scmp.lt.s32.totalorder %s9519_s23, %s9512_s11 }
 0x19f   : > { %p9515_p6 = pnand %p9513_p5, %p9984_p0 }
 0x1a0   : > { %p9522_p8 = por %p9521_p7, %p9520_p10 }
 0x1a1   : > { %p9516_p9 = pneg %p9515_p6 }
 0x1a3   : > { %p9523_p11 = pnand %p9522_p8, %p9516_p9 }
 0x1a5   : > { %9526 = shalt.err (!%p9523_p11)
}
 0x1a6   : > { %8994 = dma.hbm_to_vmem [thread:$0]  (!%p9972_p12), %s9908_s13, 16, %s1320_s29, [#allocation25]  }
 0x1a7   : > { %p10931_p13 = scmp.ne.s32.totalorder %s10926_s26, 0 }
 0x1a8   : > { %p10932_p1 = scmp.eq.s32.totalorder (!%p10931_p13), %s9936_s0, 0 }
 0x1a9   : > { %1340 = sbr.rel (%p10931_p13) target bundleno = 6056 (0x17a8), region = 196 }
 0x1b0   : > { %9572 = dma.done.wait (%p10932_p1), [#allocation4], 16   ;;  %p10933_p2 = pmov %p10932_p1 }
 0x1b1   : > { %p10934_p0 = pmov %p10932_p1 }
 0x1b2   : > { %9574 = vsyncadd (%p10933_p2), [#allocation4], 4294967280 }
 0x1b3   : > { %9576 = dma.done.wait (%p10934_p0), [#allocation7], 784   ;;  %p10935_p3 = pmov %p10934_p0 }
 0x1b4   : > { %p10936_p4 = pmov %p10934_p0 }
 0x1b5   : > { %9578 = vsyncadd (%p10935_p3), [#allocation7], 4294966512 }
 0x1b6   : > { %9580 = dma.done.wait (%p10936_p4), [#allocation10], 32   ;;  %p10937_p12 = pmov %p10934_p0 }
 0x1b7   : > { %p10938_p5 = pmov %p10934_p0 }
 0x1b8   : > { %9582 = vsyncadd (%p10937_p12), [#allocation10], 4294967264 }
 0x1b9   : > { %9584 = dma.done.wait (%p10938_p5), [#allocation13], 32   ;;  %p10939_p6 = pmov %p10934_p0 }
 0x1ba   : > { %p10940_p9 = pmov %p10934_p0 }
 0x1bb   : > { %9586 = vsyncadd (%p10939_p6), [#allocation13], 4294967264 }
 0x1bc   : > { %9588 = dma.done.wait (%p10940_p9), [#allocation16], 528   ;;  %p10941_p10 = pmov %p10934_p0 }
 0x1bd   : > { %p10942_p7 = pmov %p10934_p0 }
 0x1be   : > { %9590 = vsyncadd (%p10941_p10), [#allocation16], 4294966768 }
 0x1bf   : > { %9592 = dma.done.wait (%p10942_p7), [#allocation19], 32   ;;  %p10943_p8 = pmov %p10934_p0 }
 0x1c0   : > { %p10944_p11 = pmov %p10934_p0 }
 0x1c1   : > { %9594 = vsyncadd (%p10943_p8), [#allocation19], 4294967264 }
 0x1c2   : > { %9596 = dma.done.wait (%p10944_p11), [#allocation22], 32   ;;  %p10945_p13 = pmov %p10934_p0 }
 0x1c3   : > { %p10946_p1 = pmov %p10934_p0 }
 0x1c4   : > { %9598 = vsyncadd (%p10945_p13), [#allocation22], 4294967264 }
 0x1c5   : > { %9600 = dma.done.wait (%p10946_p1), [#allocation25], 16   ;;  %p10947_p2 = pmov %p10934_p0 }
 0x1c6   : > { %s10948_s5 = sld [smem:[#allocation36_spill]]  ;;  %p1497_p0 = scmp.lt.s32.totalorder %s9936_s0, 1  ;;  %v1512_v1 = vlaneseq  ;;  %vm1535_vm1 = vcmask 523264   ;;  %v9683_v17 = vmov 0.0   ;;  %v7360_v52 = vld [vmem:[%s10914_s9 + $0x8] sm:$0xff]  ;;  %v1633_v53 = vld [vmem:[%s10914_s9] sm:$0xff] }
 0x1c7   : > { %9602 = vsyncadd (%p10947_p2), [#allocation25], 4294967280  ;;  %s10949_s8 = sld [smem:[#allocation38_spill]]  ;;  %s10950_s20 = sld [smem:[#allocation39_spill]] }
 0x1c8   : > { %s1498_s2 = scalar_select %p1497_p0, %s9936_s0, 1  ;;  %v10180_v2 = vshrl.u32 %v1512_v1, 7  ;;  %v10182_v3 = vand.u32 127, %v1512_v1 }
 0x1c9   : > { %s10951_s18 = sld [smem:[#allocation40_spill]]  ;;  %s10952_s24 = sld [smem:[#allocation44_spill]] }
 0x1ca   : > { %s7545_s26 = sshll.u32 %s1498_s2, 6  ;;  %v10185_v4 = vmul.u32 2, %v10180_v2  ;;  %v10194_v12 = vadd.s32 8, %v10180_v2  ;;  %v1515_v16 = vadd.s32 16, %v10180_v2  ;;  %v1516_v21 = vadd.s32 24, %v10180_v2  ;;  %s10954_s15 = sld [smem:[#allocation45_spill]] }
 0x1cb   : > { %s10955_s11 = sld [smem:[#allocation46_spill]]  ;;  %s10956_s23 = sld [smem:[#allocation47_spill]] }
 0x1cc   : > { %s1501_s7 = scalar_lea.vmem %s10948_s5, %s7545_s26  ;;  %v1634_v5 = vadd.s32 4294967294, %v10185_v4  ;;  %v1523_v9 = vadd.s32 4294967293, %v10185_v4  ;;  %v10210_v20 = vmul.u32 2, %v10194_v12  ;;  %v10215_v25 = vmul.u32 2, %v1515_v16  ;;  %v7373_v16 = vld [vmem:[%s10914_s9 + $0x10] sm:$0xff]  ;;  %s10957_s2 = sld [smem:[#allocation50_spill]] }
 0x1cd   : > { %v1502_v6 = vld [vmem:[%s1501_s7] sm:$0xff]  ;;  %v1503_v7 = vld [vmem:[%s1501_s7 + $0x8] sm:$0xff]  ;;  %v1504_v8 = vld [vmem:[%s1501_s7 + $0x10] sm:$0xff]  ;;  %v10225_v28 = vmul.u32 2, %v1516_v21  ;;  %v1940_v34 = vadd.s32 4294967295, %v10185_v4  ;;  %vm2152_vm13 = vcmp.eq.s32.totalorder %v10182_v3, %v10185_v4  ;;  %v2572_v54 = vadd.s32 2, %v10185_v4 }
 0x1ce   : > { %v10190_v10 = vpack.c.bf16 %v1503_v7, %v1502_v6  ;;  %v1505_v11 = vld [vmem:[%s1501_s7 + $0x18] sm:$0xff]  ;;  %vm1638_vm0 = vcmp.eq.s32.totalorder %v10182_v3, %v1634_v5  ;;  %v1506_v14 = vld [vmem:[%s1501_s7 + $0x20] sm:$0xff]  ;;  %v1507_v15 = vld [vmem:[%s1501_s7 + $0x28] sm:$0xff]  ;;  %vm1527_vm2 = vcmp.eq.s32.totalorder %v10182_v3, %v1523_v9  ;;  %v1635_v27 = vadd.s32 4294967294, %v10210_v20  ;;  %p10980_p4 = scmp.ne.s32.totalorder %s10923_s27, 0 }
 0x1cf   : > { %v10196_v13 = vpack.c.bf16 %v1505_v11, %v1504_v8  ;;  %v1642_v18 = vsel %vm1638_vm0, 1.0, %v9683_v17  ;;  %v10206_v19 = vpack.c.bf16 %v1507_v15, %v1506_v14  ;;  %v1531_v22 = vsel %vm1527_vm2, 1.0, %v9683_v17  ;;  %v1508_v23 = vld [vmem:[%s1501_s7 + $0x30] sm:$0xff]  ;;  %v1509_v24 = vld [vmem:[%s1501_s7 + $0x38] sm:$0xff]  ;;  %s10953_s29 = smov %s10952_s24  ;;  %s10959_s7 = sld [smem:[#allocation48_spill]] }
 0x1d0   : > { %8535 = vmatprep.subr.bf16.mxu1 %v10190_v10  ;;  %8519 = vmatprep.subr.bf16.mxu0 %v10190_v10  ;;  %v10221_v26 = vpack.c.bf16 %v1509_v24, %v1508_v23  ;;  %v1524_v29 = vadd.s32 4294967293, %v10210_v20  ;;  %v1636_v30 = vadd.s32 4294967294, %v10215_v25  ;;  %v1525_v31 = vadd.s32 4294967293, %v10215_v25  ;;  %v7382_v24 = vld [vmem:[%s10914_s9 + $0x18] sm:$0xff] }
 0x1d1   : > { %8537 = vmatpush3.bf16.msra.mxu1 %v10190_v10  ;;  %8521 = vmatpush3.bf16.msra.mxu0 %v10190_v10  ;;  %vm1639_vm3 = vcmp.eq.s32.totalorder %v10182_v3, %v1635_v27  ;;  %v1637_v32 = vadd.s32 4294967294, %v10225_v28  ;;  %v1526_v33 = vadd.s32 4294967293, %v10225_v28  ;;  %vm1944_vm9 = vcmp.eq.s32.totalorder %v10182_v3, %v1940_v34 }
 0x1d2   : > { %8539 = vmatprep.subr.bf16.mxu1 %v10196_v13  ;;  %8523 = vmatprep.subr.bf16.mxu0 %v10196_v13  ;;  %vm1528_vm4 = vcmp.eq.s32.totalorder %v10182_v3, %v1524_v29  ;;  %vm1640_vm5 = vcmp.eq.s32.totalorder %v10182_v3, %v1636_v30  ;;  %vm1529_vm6 = vcmp.eq.s32.totalorder %v10182_v3, %v1525_v31  ;;  %v1643_v35 = vsel %vm1639_vm3, 1.0, %v9683_v17  ;;  %s10958_s26 = smov %s10957_s2 }
 0x1d3   : > { %7911 = vmatprep.mubr.msk.f32.mxu1 %vm1535_vm1, %v1642_v18  ;;  %7889 = vmatprep.mubr.msk.f32.mxu0 %vm1535_vm1, %v1531_v22  ;;  %v1532_v36 = vsel %vm1528_vm4, 1.0, %v9683_v17  ;;  %v1644_v37 = vsel %vm1640_vm5, 1.0, %v9683_v17  ;;  %vm1641_vm7 = vcmp.eq.s32.totalorder %v10182_v3, %v1637_v32  ;;  %vm1530_vm8 = vcmp.eq.s32.totalorder %v10182_v3, %v1526_v33 }
 0x1d4   : > { %v1533_v38 = vsel %vm1529_vm6, 1.0, %v9683_v17  ;;  %v1645_v39 = vsel %vm1641_vm7, 1.0, %v9683_v17  ;;  %v1534_v40 = vsel %vm1530_vm8, 1.0, %v9683_v17  ;;  %v10260_v41 = vsel %vm1944_vm9, 1.0, %v9683_v17 }
 0x1d5   : > { %8541 = vmatpush3.bf16.msra.mxu1 %v10196_v13  ;;  %8525 = vmatpush3.bf16.msra.mxu0 %v10196_v13  ;;  %v1941_v42 = vadd.s32 4294967295, %v10210_v20  ;;  %v1942_v43 = vadd.s32 4294967295, %v10215_v25  ;;  %v1943_v44 = vadd.s32 4294967295, %v10225_v28  ;;  %v10291_v48 = vsel %vm2152_vm13, 1.0, %v9683_v17 }
 0x1d6   : > { %8543 = vmatprep.subr.bf16.mxu1 %v10206_v19  ;;  %8527 = vmatprep.subr.bf16.mxu0 %v10206_v19  ;;  %vm2153_vm14 = vcmp.eq.s32.totalorder %v10182_v3, %v10210_v20  ;;  %vm2154_vm15 = vcmp.eq.s32.totalorder %v10182_v3, %v10215_v25  ;;  %vm2155_vm0 = vcmp.eq.s32.totalorder %v10182_v3, %v10225_v28  ;;  %v2573_v55 = vadd.s32 2, %v10210_v20 }
 0x1d7   : > { %vm1945_vm10 = vcmp.eq.s32.totalorder %v10182_v3, %v1941_v42  ;;  %vm1946_vm11 = vcmp.eq.s32.totalorder %v10182_v3, %v1942_v43  ;;  %vm1947_vm12 = vcmp.eq.s32.totalorder %v10182_v3, %v1943_v44  ;;  %v10306_v49 = vsel %vm2153_vm14, 1.0, %v9683_v17 }
 0x1d8   : > { %v10277_v45 = vsel %vm1945_vm10, 1.0, %v9683_v17  ;;  %v1950_v46 = vsel %vm1946_vm11, 1.0, %v9683_v17  ;;  %v1951_v47 = vsel %vm1947_vm12, 1.0, %v9683_v17  ;;  %v2158_v50 = vsel %vm2154_vm15, 1.0, %v9683_v17 }
 0x1d9   : > { %8545 = vmatpush3.bf16.msra.mxu1 %v10206_v19  ;;  %8529 = vmatpush3.bf16.msra.mxu0 %v10206_v19  ;;  %v2159_v51 = vsel %vm2155_vm0, 1.0, %v9683_v17  ;;  %vm2576_vm2 = vcmp.eq.s32.totalorder %v10182_v3, %v2572_v54  ;;  %vm2577_vm3 = vcmp.eq.s32.totalorder %v10182_v3, %v2573_v55  ;;  %v2574_v58 = vadd.s32 2, %v10215_v25  ;;  %v7414_v55 = vld [vmem:[%s10949_s8] ss:$0 sm:$0xff]  ;;  %s10960_s8 = sld [smem:[#allocation49_spill]] }
 0x1da   : > { %8547 = vmatprep.subr.bf16.mxu1 %v10221_v26  ;;  %8531 = vmatprep.subr.bf16.mxu0 %v10221_v26  ;;  %v2580_v56 = vsel %vm2576_vm2, 1.0, %v9683_v17  ;;  %v2581_v57 = vsel %vm2577_vm3, 1.0, %v9683_v17  ;;  %v2575_v59 = vadd.s32 2, %v10225_v28  ;;  %v2784_v60 = vadd.s32 3, %v10185_v4 }
 0x1db   : > { %vm2578_vm4 = vcmp.eq.s32.totalorder %v10182_v3, %v2574_v58  ;;  %v2785_v61 = vadd.s32 3, %v10210_v20  ;;  %v2786_v0 = vadd.s32 3, %v10215_v25  ;;  %v2787_v5 = vadd.s32 3, %v10225_v28 }
 0x1dc   : > { %vm2579_vm5 = vcmp.eq.s32.totalorder %v10182_v3, %v2575_v59  ;;  %vm2788_vm6 = vcmp.eq.s32.totalorder %v10182_v3, %v2784_v60  ;;  %v2582_v62 = vsel %vm2578_vm4, 1.0, %v9683_v17  ;;  %vm1745_vm10 = vcmask 64512  }
 0x1dd   : > { %8549 = vmatpush3.bf16.msra.mxu1 %v10221_v26  ;;  %8533 = vmatpush3.bf16.msra.mxu0 %v10221_v26  ;;  %v2583_v63 = vsel %vm2579_vm5, 1.0, %v9683_v17  ;;  %v2792_v1 = vsel %vm2788_vm6, 1.0, %v9683_v17  ;;  %vm2789_vm7 = vcmp.eq.s32.totalorder %v10182_v3, %v2785_v61  ;;  %vm2790_vm8 = vcmp.eq.s32.totalorder %v10182_v3, %v2786_v0 }
 0x1de   : > { %8551 = vmatprep.subr.bf16.mxu1 %v10190_v10  ;;  %7917 = vmatprep.subr.mxu0 %v7360_v52  ;;  %v2793_v6 = vsel %vm2789_vm7, 1.0, %v9683_v17  ;;  %v2794_v7 = vsel %vm2790_vm8, 1.0, %v9683_v17  ;;  %vm2791_vm9 = vcmp.eq.s32.totalorder %v10182_v3, %v2787_v5  ;;  %v2360_v32 = vadd.s32 1, %v10185_v4 }
 0x1df   : > { %v2795_v8 = vsel %vm2791_vm9, 1.0, %v9683_v17  ;;  %v2361_v4 = vadd.s32 1, %v10210_v20  ;;  %vm3020_vm15 = vcmask 261120   ;;  %vm3270_vm2 = vcmask 130048  }
 0x1e0   : > { %7912 = vmatmul.mubr.msk.f32.vlgmr.msra.gmra.mrb[0].mxu1 %vm1535_vm1, %v1643_v35  ;;  %7890 = vmatmul.mubr.msk.f32.vlgmr.msra.gmra.mrb[0].mxu0 %vm1535_vm1, %v1532_v36  ;;  %vm2364_vm11 = vcmp.eq.s32.totalorder %v10182_v3, %v2360_v32  ;;  %vm3354_vm4 = vcmp.eq.s32.totalorder %v10182_v3, %v10180_v2  ;;  %vm3355_vm5 = vcmp.eq.s32.totalorder %v10182_v3, %v10194_v12  ;;  %vm9685_vm8 = vmmov 0  }
 0x1e1   : > { %8553 = vmatpush3.bf16.msra.mxu1 %v10190_v10  ;;  %7914 = vmatprep.mubr.msk.f32.mxu1 %vm1535_vm1, %v1644_v37  ;;  %v10388_v37 = vsel %vm2364_vm11, 1.0, %v9683_v17  ;;  %vm2365_vm12 = vcmp.eq.s32.totalorder %v10182_v3, %v2361_v4  ;;  %v10463_v4 = vsel %vm3354_vm4, 1.0, %v9683_v17  ;;  %vm4385_vm9 = vcmask 1040384  }
 0x1e2   : > { %8555 = vmatprep.subr.bf16.mxu1 %v10196_v13  ;;  %7892 = vmatprep.mubr.msk.f32.mxu0 %vm1535_vm1, %v1533_v38  ;;  %v2363_v38 = vadd.s32 1, %v10225_v28  ;;  %v7400_v28 = vld [vmem:[%s10914_s9 + $0x28] sm:$0xff]  ;;  %vm4381_vm11 = vcmask 7168  }
 0x1e3   : > { %7918 = vmatpush3.msra.mxu0 %v7360_v52  ;;  %v7409_v52 = vld [vmem:[%s10914_s9 + $0x30] sm:$0xff] }
 0x1e4   : > { %7915 = vmatmul.mubr.msk.f32.gmra.mrb[2].mxu1 %vm1535_vm1, %v1645_v39  ;;  %7893 = vmatmul.mubr.msk.f32.gmra.mrb[2].mxu0 %vm1535_vm1, %v1534_v40  ;;  %v10406_v39 = vsel %vm2365_vm12, 1.0, %v9683_v17  ;;  %vm2367_vm14 = vcmp.eq.s32.totalorder %v10182_v3, %v2363_v38  ;;  %v3357_v38 = vsel %vm3355_vm5, 1.0, %v9683_v17  ;;  %vm5584_vm12 = vcmask 1041408  }
 0x1e5   : > { %8557 = vmatpush3.bf16.msra.mxu1 %v10196_v13  ;;  %7949 = vmatprep.mubr.msk.f32.mxu1 %vm1535_vm1, %v10260_v41 }
 0x1e6   : > { %8559 = vmatprep.subr.bf16.mxu1 %v10206_v19  ;;  %7925 = vmatprep.subr.mxu0 %v1633_v53 }
 0x1e9   : > { %8561 = vmatpush3.bf16.msra.mxu1 %v10206_v19 }
 0x1ea   : > { %8563 = vmatprep.subr.bf16.mxu1 %v10221_v26 }
 0x1ed   : > { %8565 = vmatpush3.bf16.msra.mxu1 %v10221_v26 }
 0x1ee   : > { %8567 = vmatprep.subr.bf16.mxu1 %v10190_v10 }
 0x1f0   : > { %7950 = vmatmul.mubr.msk.f32.vlgmr.msra.gmra.mrb[4].mxu1 %vm1535_vm1, %v10277_v45 }
 0x1f1   : > { %8569 = vmatpush3.bf16.msra.mxu1 %v10190_v10  ;;  %7952 = vmatprep.mubr.msk.f32.mxu1 %vm1535_vm1, %v1950_v46 }
 0x1f2   : > { %8571 = vmatprep.subr.bf16.mxu1 %v10196_v13 }
 0x1f4   : > { %7953 = vmatmul.mubr.msk.f32.gmra.mrb[6].mxu1 %vm1535_vm1, %v1951_v47 }
 0x1f5   : > { %8573 = vmatpush3.bf16.msra.mxu1 %v10196_v13  ;;  %7979 = vmatprep.mubr.msk.f32.mxu1 %vm1535_vm1, %v10291_v48 }
 0x1f6   : > { %8575 = vmatprep.subr.bf16.mxu1 %v10206_v19 }
 0x1f9   : > { %8577 = vmatpush3.bf16.msra.mxu1 %v10206_v19 }
 0x1fa   : > { %8579 = vmatprep.subr.bf16.mxu1 %v10221_v26 }
 0x1fd   : > { %8581 = vmatpush3.bf16.msra.mxu1 %v10221_v26 }
 0x1fe   : > { %8599 = vmatprep.subr.bf16.mxu1 %v10190_v10 }
 0x200   : > { %7980 = vmatmul.mubr.msk.f32.vlgmr.msra.gmra.mrb[8].mxu1 %vm1535_vm1, %v10306_v49 }
 0x201   : > { %7982 = vmatprep.mubr.msk.f32.mxu1 %vm1535_vm1, %v2158_v50  ;;  %8601 = vmatpush3.bf16.msra.mxu1 %v10190_v10 }
 0x202   : > { %8603 = vmatprep.subr.bf16.mxu1 %v10196_v13 }
 0x204   : > { %7983 = vmatmul.mubr.msk.f32.gmra.mrb[10].mxu1 %vm1535_vm1, %v2159_v51 }
 0x205   : > { %8605 = vmatpush3.bf16.msra.mxu1 %v10196_v13  ;;  %8039 = vmatprep.mubr.msk.f32.mxu1 %vm1535_vm1, %v2580_v56  ;;  %v7415_v56 = vld [vmem:[%s10950_s20] ss:$0 sm:$0xff]  ;;  %s10961_s20 = sld [smem:[#allocation53_spill]] }
 0x206   : > { %8607 = vmatprep.subr.bf16.mxu1 %v10206_v19 }
 0x209   : > { %8609 = vmatpush3.bf16.msra.mxu1 %v10206_v19 }
 0x20a   : > { %8611 = vmatprep.subr.bf16.mxu1 %v10221_v26 }
 0x20d   : > { %8613 = vmatpush3.bf16.msra.mxu1 %v10221_v26 }
 0x20e   : > { %8615 = vmatprep.subr.bf16.mxu1 %v10190_v10 }
 0x210   : > { %8040 = vmatmul.mubr.msk.f32.vlgmr.msra.gmra.mrb[12].mxu1 %vm1535_vm1, %v2581_v57 }
 0x211   : > { %8617 = vmatpush3.bf16.msra.mxu1 %v10190_v10  ;;  %8042 = vmatprep.mubr.msk.f32.mxu1 %vm1535_vm1, %v2582_v62 }
 0x212   : > { %8619 = vmatprep.subr.bf16.mxu1 %v10196_v13 }
 0x214   : > { %8043 = vmatmul.mubr.msk.f32.gmra.mrb[14].mxu1 %vm1535_vm1, %v2583_v63 }
 0x215   : > { %8621 = vmatpush3.bf16.msra.mxu1 %v10196_v13  ;;  %8069 = vmatprep.mubr.msk.f32.mxu1 %vm1535_vm1, %v2792_v1 }
 0x216   : > { %8623 = vmatprep.subr.bf16.mxu1 %v10206_v19 }
 0x219   : > { %8625 = vmatpush3.bf16.msra.mxu1 %v10206_v19 }
 0x21a   : > { %8627 = vmatprep.subr.bf16.mxu1 %v10221_v26 }
 0x21d   : > { %8629 = vmatpush3.bf16.msra.mxu1 %v10221_v26 }
 0x220   : > { %8070 = vmatmul.mubr.msk.f32.vlgmr.msra.gmra.mrb[16].mxu1 %vm1535_vm1, %v2793_v6 }
 0x221   : > { %8072 = vmatprep.mubr.msk.f32.mxu1 %vm1535_vm1, %v2794_v7 }
 0x224   : > { %8073 = vmatmul.mubr.msk.f32.gmra.mrb[18].mxu1 %vm1535_vm1, %v2795_v8 }
 0x225   : > { %8091 = vmatprep.mubr.msk.f32.mxu1 %vm3020_vm15, %v10260_v41 }
 0x2b3   : > { %v7913_v9 = vpop.f32.mrb[0].mxu1  ;;  %v7891_v11 = vpop.f32.mrb[0].mxu0 }
 0x2b4   : > { %v1724_v14 = vpop.f32.mrb[1].mxu1  ;;  %v1614_v15 = vpop.f32.mrb[1].mxu0 }
 0x2b5   : > { %7919 = vmatprep.mubr.msk.f32.mxu0 %vm1745_vm10, %v1724_v14 }
 0x2b6   : > { %7920 = vmatmul.mubr.msk.f32.vlgmr.msra.gmra.mrb[4].mxu0 %vm1745_vm10, %v7913_v9 }
 0x2b7   : > { %v7916_v18 = vpop.f32.mrb[2].mxu1  ;;  %7926 = vmatpush3.msra.mxu0 %v1633_v53  ;;  %v7894_v21 = vpop.f32.mrb[2].mxu0 }
 0x2b8   : > { %v1734_v22 = vpop.f32.mrb[3].mxu1  ;;  %v1624_v23 = vpop.f32.mrb[3].mxu0  ;;  %7955 = vmatprep.subr.mxu0 %v7373_v16 }
 0x2b9   : > { %7922 = vmatprep.mubr.msk.f32.mxu0 %vm1745_vm10, %v1734_v22 }
 0x2ba   : > { %7923 = vmatmul.mubr.msk.f32.gmra.mrb[6].mxu0 %vm1745_vm10, %v7916_v18  ;;  %v3264_v18 = vadd.s32 4294967295, %v10180_v2 }
 0x2bb   : > { %7927 = vmatprep.mubr.msk.f32.mxu0 %vm1745_vm10, %v1614_v15 }
 0x2bc   : > { %vm3266_vm0 = vcmp.eq.s32.totalorder %v10182_v3, %v3264_v18 }
 0x2be   : > { %7928 = vmatmul.mubr.msk.f32.vlgmr.msra.gmra.mrb[4].mxu0 %vm1745_vm10, %v7891_v11 }
 0x2bf   : > { %7930 = vmatprep.mubr.msk.f32.mxu0 %vm1745_vm10, %v1624_v23  ;;  %7956 = vmatpush3.msra.mxu0 %v7373_v16 }
 0x2c0   : > { %7985 = vmatprep.subr.mxu0 %v7382_v24 }
 0x2c2   : > { %7931 = vmatmul.mubr.msk.f32.gmra.mrb[6].mxu0 %vm1745_vm10, %v7894_v21  ;;  %v10446_v21 = vsel %vm3266_vm0, 1.0, %v9683_v17  ;;  %vm7068_vm0 = vcmask 8192  }
 0x2c3   : > { %v7951_v27 = vpop.f32.mrb[4].mxu1 }
 0x2c4   : > { %v2030_v29 = vpop.f32.mrb[5].mxu1 }
 0x2c5   : > { %7957 = vmatprep.mubr.msk.f32.mxu0 %vm1745_vm10, %v2030_v29 }
 0x2c6   : > { %7958 = vmatmul.mubr.msk.f32.vlgmr.msra.gmra.mrb[4].mxu0 %vm1745_vm10, %v7951_v27 }
 0x2c7   : > { %v7954_v30 = vpop.f32.mrb[6].mxu1  ;;  %7986 = vmatpush3.msra.mxu0 %v7382_v24 }
 0x2c8   : > { %v2040_v31 = vpop.f32.mrb[7].mxu1  ;;  %8583 = vmatprep.subr.bf16.mxu0 %v10190_v10 }
 0x2c9   : > { %7960 = vmatprep.mubr.msk.f32.mxu0 %vm1745_vm10, %v2040_v31 }
 0x2ca   : > { %7961 = vmatmul.mubr.msk.f32.gmra.mrb[6].mxu0 %vm1745_vm10, %v7954_v30  ;;  %v3265_v30 = vadd.s32 4294967295, %v10194_v12 }
 0x2cc   : > { %vm3267_vm3 = vcmp.eq.s32.totalorder %v10182_v3, %v3265_v30  ;;  %v7453_v30 = vld [vmem:[#allocation11] ss:$0 sm:$0xff] }
 0x2d3   : > { %v7981_v33 = vpop.f32.mrb[8].mxu1 }
 0x2d4   : > { %v2238_v34 = vpop.f32.mrb[9].mxu1 }
 0x2d5   : > { %7987 = vmatprep.mubr.msk.f32.mxu0 %vm1745_vm10, %v2238_v34 }
 0x2d6   : > { %7988 = vmatmul.mubr.msk.f32.vlgmr.msra.gmra.mrb[4].mxu0 %vm1745_vm10, %v7981_v33 }
 0x2d7   : > { %8585 = vmatpush3.bf16.msra.mxu0 %v10190_v10  ;;  %v7984_v35 = vpop.f32.mrb[10].mxu1  ;;  %v2362_v10 = vadd.s32 1, %v10215_v25 }
 0x2d8   : > { %8587 = vmatprep.subr.bf16.mxu0 %v10196_v13  ;;  %v2248_v36 = vpop.f32.mrb[11].mxu1 }
 0x2d9   : > { %7990 = vmatprep.mubr.msk.f32.mxu0 %vm1745_vm10, %v2248_v36  ;;  %vm2366_vm13 = vcmp.eq.s32.totalorder %v10182_v3, %v2362_v10  ;;  %v3269_v36 = vsel %vm3267_vm3, 1.0, %v9683_v17  ;;  %v3605_v10 = vadd.s32 1, %v10194_v12 }
 0x2da   : > { %7991 = vmatmul.mubr.msk.f32.gmra.mrb[6].mxu0 %vm1745_vm10, %v7984_v35  ;;  %v2370_v20 = vsel %vm2366_vm13, 1.0, %v9683_v17  ;;  %v3604_v35 = vadd.s32 1, %v10180_v2  ;;  %vm5580_vm13 = vcmask 15360  }
 0x2db   : > { %8589 = vmatpush3.bf16.msra.mxu0 %v10196_v13  ;;  %8009 = vmatprep.mubr.msk.f32.mxu0 %vm1535_vm1, %v10388_v37  ;;  %v7391_v13 = vld [vmem:[%s10914_s9 + $0x20] sm:$0xff]  ;;  %vm3607_vm7 = vcmp.eq.s32.totalorder %v10182_v3, %v3605_v10 }
 0x2dc   : > { %8591 = vmatprep.subr.bf16.mxu0 %v10206_v19  ;;  %vm3606_vm6 = vcmp.eq.s32.totalorder %v10182_v3, %v3604_v35  ;;  %v3609_v12 = vsel %vm3607_vm7, 1.0, %v9683_v17  ;;  %v3352_v3 = vld [vmem:[%s10951_s18] sm:$0xff] }
 0x2df   : > { %8593 = vmatpush3.bf16.msra.mxu0 %v10206_v19  ;;  %v2371_v19 = vsel %vm2367_vm14, 1.0, %v9683_v17  ;;  %vm6140_vm14 = vcmask 31744  }
 0x2e0   : > { %8595 = vmatprep.subr.bf16.mxu0 %v10221_v26 }
 0x2e3   : > { %8597 = vmatpush3.bf16.msra.mxu0 %v10221_v26  ;;  %v8041_v25 = vpop.f32.mrb[12].mxu1 }
 0x2e4   : > { %8015 = vmatprep.subr.mxu0 %v7391_v13  ;;  %v2662_v26 = vpop.f32.mrb[13].mxu1 }
 0x2e6   : > { %8010 = vmatmul.mubr.msk.f32.vlgmr.msra.gmra.mrb[8].mxu0 %vm1535_vm1, %v10406_v39 }
 0x2e7   : > { %8012 = vmatprep.mubr.msk.f32.mxu0 %vm1535_vm1, %v2370_v20  ;;  %8016 = vmatpush3.msra.mxu0 %v7391_v13  ;;  %v8044_v40 = vpop.f32.mrb[14].mxu1  ;;  %v10474_v13 = vsel %vm3606_vm6, 1.0, %v9683_v17  ;;  %v7427_v20 = vld [vmem:[%s10951_s18 + $0x18] sm:$0xff] }
 0x2e8   : > { %8045 = vmatprep.subr.mxu0 %v7400_v28  ;;  %v2672_v42 = vpop.f32.mrb[15].mxu1 }
 0x2ea   : > { %8013 = vmatmul.mubr.msk.f32.gmra.mrb[10].mxu0 %vm1535_vm1, %v2371_v19 }
 0x2f3   : > { %v8071_v43 = vpop.f32.mrb[16].mxu1 }
 0x2f4   : > { %v2874_v44 = vpop.f32.mrb[17].mxu1 }
 0x2f7   : > { %v8074_v46 = vpop.f32.mrb[18].mxu1 }
 0x2f8   : > { %v2884_v47 = vpop.f32.mrb[19].mxu1 }
 0x3b9   : > { %v8011_v50 = vpop.f32.mrb[8].mxu0 }
 0x3ba   : > { %v2450_v51 = vpop.f32.mrb[9].mxu0 }
 0x3bb   : > { %8017 = vmatprep.mubr.msk.f32.mxu0 %vm1745_vm10, %v2450_v51 }
 0x3bc   : > { %8018 = vmatmul.mubr.msk.f32.vlgmr.msra.gmra.mrb[4].mxu0 %vm1745_vm10, %v8011_v50 }
 0x3bd   : > { %v8014_v53 = vpop.f32.mrb[10].mxu0  ;;  %8046 = vmatpush3.msra.mxu0 %v7400_v28 }
 0x3be   : > { %v2460_v54 = vpop.f32.mrb[11].mxu0  ;;  %8075 = vmatprep.subr.mxu0 %v7409_v52 }
 0x3bf   : > { %8020 = vmatprep.mubr.msk.f32.mxu0 %vm1745_vm10, %v2460_v54 }
 0x3c0   : > { %8021 = vmatmul.mubr.msk.f32.gmra.mrb[6].mxu0 %vm1745_vm10, %v8014_v53  ;;  %v7439_v53 = vld [vmem:[#allocation6] ss:$0 sm:$0xff] }
 0x3c1   : > { %8047 = vmatprep.mubr.msk.f32.mxu0 %vm1745_vm10, %v2662_v26 }
 0x3c4   : > { %8048 = vmatmul.mubr.msk.f32.vlgmr.msra.gmra.mrb[4].mxu0 %vm1745_vm10, %v8041_v25  ;;  %v3353_v25 = vld [vmem:[%s10951_s18 + $0x8] sm:$0xff] }
 0x3c5   : > { %8050 = vmatprep.mubr.msk.f32.mxu0 %vm1745_vm10, %v2672_v42  ;;  %8076 = vmatpush3.msra.mxu0 %v7409_v52  ;;  %v8666_v26 = vpack.c.bf16 %v3353_v25, %v3352_v3  ;;  %v7434_v42 = vld [vmem:[%s10951_s18 + $0x20] sm:$0xff] }
 0x3c6   : > { %v7438_v52 = vld [vmem:[#allocation3] ss:$0 sm:$0xff] }
 0x3c8   : > { %8051 = vmatmul.mubr.msk.f32.gmra.mrb[6].mxu0 %vm1745_vm10, %v8044_v40 }
 0x3c9   : > { %8077 = vmatprep.mubr.msk.f32.mxu0 %vm1745_vm10, %v2874_v44 }
 0x3cc   : > { %8078 = vmatmul.mubr.msk.f32.vlgmr.msra.gmra.mrb[4].mxu0 %vm1745_vm10, %v8071_v43  ;;  %v7435_v43 = vld [vmem:[%s10951_s18 + $0x28] sm:$0xff] }
 0x3cd   : > { %8080 = vmatprep.mubr.msk.f32.mxu0 %vm1745_vm10, %v2884_v47  ;;  %v8674_v47 = vpack.c.bf16 %v7435_v43, %v7434_v42  ;;  %v4294_v43 = vld [vmem:[%s10954_s15] sm:$0x1] }
 0x3d0   : > { %8081 = vmatmul.mubr.msk.f32.gmra.mrb[6].mxu0 %vm1745_vm10, %v8074_v46 }
 0x3d1   : > { %8102 = vmatprep.mubr.msk.f32.mxu0 %vm3020_vm15, %v10291_v48 }
 0x49f   : > { %v8079_v57 = vpop.f32.mrb[4].mxu0 }
 0x4a0   : > { %v3003_v58 = vmul.f32 %v8079_v57, %v7414_v55  ;;  %v2973_v59 = vpop.f32.mrb[5].mxu0 }
 0x4a1   : > { %v3002_v60 = vmul.f32 %v7414_v55, %v2973_v59 }
 0x4a2   : > { %v3013_v61 = vadd.f32 %v7415_v56, %v3003_v58 }
 0x4a3   : > { %v3012_v62 = vadd.f32 %v7415_v56, %v3002_v60  ;;  %v8082_v63 = vpop.f32.mrb[6].mxu0 }
 0x4a4   : > { %v3017_v0 = vmax.f32 %v3013_v61, 0.0  ;;  %v3005_v1 = vmul.f32 %v8082_v63, %v7414_v55  ;;  %v2983_v5 = vpop.f32.mrb[7].mxu0  ;;  %v3950_v63 = vld [vmem:[#allocation8 + $0x10] sm:$0xff] }
 0x4a5   : > { %v3016_v6 = vmax.f32 %v3012_v62, 0.0  ;;  %v3004_v7 = vmul.f32 %v7414_v55, %v2983_v5  ;;  %v3872_v5 = vld [vmem:[#allocation8] sm:$0xff] }
 0x4a6   : > { %v3015_v8 = vadd.f32 %v7415_v56, %v3005_v1 }
 0x4a7   : > { %v8630_v9 = vpack.c.bf16 %v3017_v0, %v3016_v6  ;;  %v3014_v11 = vadd.f32 %v7415_v56, %v3004_v7  ;;  %v3951_v0 = vld [vmem:[#allocation8 + $0x18] sm:$0xff]  ;;  %v3873_v6 = vld [vmem:[#allocation8 + $0x8] sm:$0xff] }
 0x4a8   : > { %v3019_v14 = vmax.f32 %v3015_v8, 0.0  ;;  %v8686_v1 = vpack.c.bf16 %v3951_v0, %v3950_v63  ;;  %v8690_v7 = vpack.c.bf16 %v3873_v6, %v3872_v5 }
 0x4a9   : > { %v3018_v15 = vmax.f32 %v3014_v11, 0.0  ;;  %8631 = vmatprep.subr.bf16.mxu1 %v8630_v9  ;;  %8639 = vmatprep.subr.bf16.mxu0 %v8630_v9  ;;  %v4190_v11 = vld [vmem:[#allocation8 + $0x20] sm:$0xff] }
 0x4aa   : > { %8633 = vmatpush3.bf16.msra.mxu1 %v8630_v9  ;;  %8641 = vmatpush3.bf16.msra.mxu0 %v8630_v9 }
 0x4ab   : > { %v8634_v16 = vpack.c.bf16 %v3019_v14, %v3018_v15  ;;  %v4191_v14 = vld [vmem:[#allocation8 + $0x28] sm:$0xff] }
 0x4ac   : > { %v8698_v18 = vpack.c.bf16 %v4191_v14, %v4190_v11  ;;  %v7460_v11 = vld [vmem:[%s10956_s23 + $0x18] sm:$0xff] }
 0x4ad   : > { %8635 = vmatprep.subr.bf16.mxu1 %v8634_v16  ;;  %8643 = vmatprep.subr.bf16.mxu0 %v8634_v16 }
 0x4ae   : > { %8637 = vmatpush3.bf16.msra.mxu1 %v8634_v16  ;;  %8645 = vmatpush3.bf16.msra.mxu0 %v8634_v16 }
 0x4af   : > { %8647 = vmatprep.subr.bf16.mxu1 %v8630_v9 }
 0x4b1   : > { %8092 = vmatmul.mubr.msk.f32.vlgmr.msra.gmra.mrb[20].mxu1 %vm3020_vm15, %v10277_v45  ;;  %8103 = vmatmul.mubr.msk.f32.vlgmr.msra.gmra.mrb[12].mxu0 %vm3020_vm15, %v10306_v49 }
 0x4b2   : > { %8649 = vmatpush3.bf16.msra.mxu1 %v8630_v9  ;;  %8113 = vmatprep.mubr.msk.f32.mxu1 %vm3020_vm15, %v10388_v37 }
 0x4b3   : > { %8651 = vmatprep.subr.bf16.mxu1 %v8634_v16 }
 0x4b6   : > { %8653 = vmatpush3.bf16.msra.mxu1 %v8634_v16 }
 0x4b9   : > { %8114 = vmatmul.mubr.msk.f32.vlgmr.msra.gmra.mrb[22].mxu1 %vm3020_vm15, %v10406_v39  ;;  %v7426_v39 = vld [vmem:[%s10951_s18 + $0x10] sm:$0xff] }
 0x4ba   : > { %8120 = vmatprep.mubr.msk.f32.mxu1 %vm3270_vm2, %v10446_v21  ;;  %v8662_v19 = vpack.c.bf16 %v7427_v20, %v7426_v39 }
 0x4bc   : > { %8663 = vmatprep.subr.bf16.mxu0 %v8662_v19 }
 0x4bd   : > { %8665 = vmatpush3.bf16.msra.mxu0 %v8662_v19 }
 0x4be   : > { %8667 = vmatprep.subr.bf16.mxu0 %v8666_v26 }
 0x584   : > { %v8093_v45 = vpop.f32.mrb[20].mxu1  ;;  %v8104_v49 = vpop.f32.mrb[12].mxu0 }
 0x585   : > { %v3259_v22 = vmax.f32 %v8093_v45, %v8104_v49  ;;  %v3091_v23 = vpop.f32.mrb[21].mxu1  ;;  %v3170_v24 = vpop.f32.mrb[13].mxu0 }
 0x586   : > { %v3258_v27 = vmax.f32 %v3091_v23, %v3170_v24  ;;  %v4292_v23 = vld [vmem:[%s10953_s29 + $0x8] sm:$0xff] }
 0x58c   : > { %v8115_v29 = vpop.f32.mrb[22].mxu1 }
 0x58d   : > { %v10451_v31 = vmax.f32 %v3259_v22, %v8115_v29  ;;  %v3249_v32 = vpop.f32.mrb[23].mxu1  ;;  %v4291_v22 = vld [vmem:[%s10952_s24] sm:$0xff]  ;;  %v7452_v29 = vld [vmem:[#allocation9] ss:$0 sm:$0xff]  ;;  %s10962_s24 = sld [smem:[#allocation56_spill]] }
 0x58e   : > { %v10453_v33 = vmax.f32 %v3258_v27, %v3249_v32  ;;  %v8703_v24 = vpack.c.bf16 %v4292_v23, %v4291_v22  ;;  %v9684_v27 = vmov 0.0|0.0   ;;  %v7465_v22 = vld [vmem:[%s10956_s23 + $0x28] sm:$0xff] }
 0x590   : > { %v8654_v34 = vpack.c.bf16 %v10451_v31, %v10453_v33 }
 0x592   : > { %8655 = vmatprep.subr.bf16.mxu1 %v8654_v34 }
 0x593   : > { %8657 = vmatpush3.bf16.msra.mxu1 %v8654_v34  ;;  %s10963_s15 = smov %s10962_s24 }
 0x594   : > { %8659 = vmatprep.subr.bf16.mxu1 %v8654_v34 }
 0x596   : > { %8121 = vmatmul.mubr.msk.f32.vlgmr.msra.gmra.mrb[24].mxu1 %vm3270_vm2, %v3269_v36 }
 0x597   : > { %8661 = vmatpush3.bf16.msra.mxu1 %v8654_v34  ;;  %8127 = vmatprep.mubr.msk.f32.mxu1 %vm3270_vm2, %v10463_v4 }
 0x598   : > { %8671 = vmatprep.subr.bf16.mxu1 %v8654_v34 }
 0x59a   : > { %8128 = vmatmul.mubr.msk.f32.vlgmr.msra.gmra.mrb[26].mxu1 %vm3270_vm2, %v3357_v38 }
 0x59b   : > { %8673 = vmatpush3.bf16.msra.mxu1 %v8654_v34  ;;  %8148 = vmatprep.mubr.msk.f32.mxu1 %vm3270_vm2, %v10474_v13 }
 0x59e   : > { %8149 = vmatmul.mubr.msk.f32.vlgmr.msra.gmra.mrb[28].mxu1 %vm3270_vm2, %v3609_v12 }
 0x59f   : > { %8162 = vmatprep.mubr.msk.f32.mxu1 %vm3270_vm2, %v10446_v21 }
 0x669   : > { %v8122_v28 = vpop.f32.mrb[24].mxu1 }
 0x66a   : > { %v3343_v40 = vpop.f32.mrb[25].mxu1 }
 0x66d   : > { %v8129_v44 = vpop.f32.mrb[26].mxu1 }
 0x66e   : > { %v3430_v46 = vpop.f32.mrb[27].mxu1 }
 0x66f   : > { %8134 = vmatprep.mubr.msk.f32.mxu0 %vm3270_vm2, %v3430_v46 }
 0x670   : > { %8135 = vmatmul.mubr.msk.f32.vlgmr.msra.gmra.mrb[14].mxu0 %vm3270_vm2, %v8129_v44  ;;  %v4293_v44 = vld [vmem:[#allocation2] sm:$0x1] }
 0x671   : > { %8141 = vmatprep.mubr.msk.f32.mxu0 %vm3270_vm2, %v3343_v40  ;;  %8669 = vmatpush3.bf16.msra.mxu0 %v8666_v26  ;;  %v8150_v50 = vpop.f32.mrb[28].mxu1 }
 0x672   : > { %8675 = vmatprep.subr.bf16.mxu0 %v8674_v47  ;;  %v3682_v51 = vpop.f32.mrb[29].mxu1 }
 0x678   : > { %8142 = vmatmul.mubr.msk.f32.vlgmr.msra.gmra.mrb[14].mxu0 %vm3270_vm2, %v8122_v28 }
 0x679   : > { %8677 = vmatpush3.bf16.msra.mxu0 %v8674_v47  ;;  %8155 = vmatprep.mubr.msk.f32.mxu0 %vm3270_vm2, %v3682_v51 }
 0x67a   : > { %8687 = vmatprep.subr.bf16.mxu0 %v8686_v1 }
 0x680   : > { %8156 = vmatmul.mubr.msk.f32.vlgmr.msra.gmra.mrb[14].mxu0 %vm3270_vm2, %v8150_v50 }
 0x681   : > { %8689 = vmatpush3.bf16.msra.mxu0 %v8686_v1 }
 0x682   : > { %8691 = vmatprep.subr.bf16.mxu0 %v8690_v7 }
 0x753   : > { %v8157_v54 = vpop.f32.mrb[14].mxu0 }
 0x754   : > { %v3784_v55 = vmul.f32 %v8157_v54, %v7438_v52  ;;  %v3766_v56 = vpop.f32.mrb[15].mxu0 }
 0x755   : > { %v3783_v57 = vmul.f32 %v7438_v52, %v3766_v56  ;;  %v4295_v52 = vld [vmem:[%s10955_s11] sm:$0x1]  ;;  %s10964_s11 = sld [smem:[#allocation51_spill]] }
 0x756   : > { %v3792_v58 = vadd.f32 %v7439_v53, %v3784_v55 }
 0x757   : > { %v3791_v59 = vadd.f32 %v7439_v53, %v3783_v57 }
 0x758   : > { %v3794_v60 = vmax.f32 %v3792_v58, 0.0 }
 0x759   : > { %v3793_v61 = vmax.f32 %v3791_v59, 0.0 }
 0x75b   : > { %v8678_v62 = vpack.c.bf16 %v3794_v60, %v3793_v61  ;;  %v10529_v60 = vsub.s32 0, %v10180_v2 }
 0x75d   : > { %8679 = vmatprep.subr.bf16.mxu1 %v8678_v62 }
 0x75e   : > { %8681 = vmatpush3.bf16.msra.mxu1 %v8678_v62 }
 0x75f   : > { %8683 = vmatprep.subr.bf16.mxu1 %v8678_v62 }
 0x761   : > { %8163 = vmatmul.mubr.msk.f32.vlgmr.msra.gmra.mrb[30].mxu1 %vm3270_vm2, %v3269_v36 }
 0x762   : > { %8685 = vmatpush3.bf16.msra.mxu1 %v8678_v62  ;;  %8169 = vmatprep.mubr.msk.f32.mxu1 %vm3270_vm2, %v10463_v4 }
 0x763   : > { %8695 = vmatprep.subr.bf16.mxu1 %v8678_v62 }
 0x765   : > { %8170 = vmatmul.mubr.msk.f32.vlgmr.msra.gmra.mrb[32].mxu1 %vm3270_vm2, %v3357_v38 }
 0x766   : > { %8697 = vmatpush3.bf16.msra.mxu1 %v8678_v62  ;;  %8190 = vmatprep.mubr.msk.f32.mxu1 %vm3270_vm2, %v10474_v13 }
 0x767   : > { %8702 = vmatprep.subr.bf16.mxu1 %v9684_v27 }
 0x769   : > { %8191 = vmatmul.mubr.msk.f32.vlgmr.msra.gmra.mrb[34].mxu1 %vm3270_vm2, %v3609_v12 }
 0x76a   : > { %8704 = vmatpush3.bf16.msra.mxu1 %v8703_v24  ;;  %8204 = vmatprep.mubr.msk.f32.mxu1 %vm9685_vm8, %v9683_v17 }
 0x76b   : > { %8207 = vmatprep.subr.mxu1 %v9683_v17 }
 0x834   : > { %v8164_v8 = vpop.f32.mrb[30].mxu1 }
 0x835   : > { %v3863_v9 = vpop.f32.mrb[31].mxu1 }
 0x838   : > { %v8171_v15 = vpop.f32.mrb[32].mxu1 }
 0x839   : > { %v3940_v16 = vpop.f32.mrb[33].mxu1 }
 0x83a   : > { %8176 = vmatprep.mubr.msk.f32.mxu0 %vm3270_vm2, %v3940_v16 }
 0x83b   : > { %8177 = vmatmul.mubr.msk.f32.vlgmr.msra.gmra.mrb[16].mxu0 %vm3270_vm2, %v8171_v15 }
 0x83c   : > { %8183 = vmatprep.mubr.msk.f32.mxu0 %vm3270_vm2, %v3863_v9  ;;  %8693 = vmatpush3.bf16.msra.mxu0 %v8690_v7  ;;  %v8192_v45 = vpop.f32.mrb[34].mxu1  ;;  %v7459_v9 = vld [vmem:[%s10956_s23 + $0x10] sm:$0xff] }
 0x83d   : > { %8699 = vmatprep.subr.bf16.mxu0 %v8698_v18  ;;  %v4180_v49 = vpop.f32.mrb[35].mxu1  ;;  %v8712_v2 = vpack.c.bf16 %v7460_v11, %v7459_v9  ;;  %v5493_v9 = vld [vmem:[%s10963_s15 + $0x18] sm:$0xff] }
 0x843   : > { %8184 = vmatmul.mubr.msk.f32.vlgmr.msra.gmra.mrb[16].mxu0 %vm3270_vm2, %v8164_v8 }
 0x844   : > { %8701 = vmatpush3.bf16.msra.mxu0 %v8698_v18  ;;  %8197 = vmatprep.mubr.msk.f32.mxu0 %vm3270_vm2, %v4180_v49  ;;  %v7464_v49 = vld [vmem:[%s10956_s23 + $0x20] sm:$0xff] }
 0x845   : > { %8705 = vmatprep.subr.bf16.mxu0 %v9684_v27 }
 0x84b   : > { %8198 = vmatmul.mubr.msk.f32.vlgmr.msra.gmra.mrb[16].mxu0 %vm3270_vm2, %v8192_v45 }
 0x84c   : > { %8216 = vmatprep.mubr.msk.f32.mxu0 %vm9685_vm8, %v9683_v17 }
 0x91e   : > { %v8199_v32 = vpop.f32.mrb[16].mxu0 }
 0x91f   : > { %v4282_v34 = vmul.f32 %v8199_v32, %v7452_v29  ;;  %v4264_v35 = vpop.f32.mrb[17].mxu0  ;;  %v7472_v32 = vld [vmem:[%s10958_s26 + $0x28] sm:$0xff] }
 0x920   : > { %v4281_v36 = vmul.f32 %v7452_v29, %v4264_v35  ;;  %v8721_v29 = vpack.c.bf16 %v7465_v22, %v7464_v49  ;;  %v7467_v35 = vld [vmem:[%s10959_s7] ss:$0 sm:$0xff]  ;;  %s10966_s7 = sld [smem:[#allocation58_spill]] }
 0x921   : > { %v4290_v10 = vadd.f32 %v7453_v30, %v4282_v34 }
 0x922   : > { %v4289_v38 = vadd.f32 %v7453_v30, %v4281_v36  ;;  %v7471_v30 = vld [vmem:[%s10957_s2 + $0x20] sm:$0xff]  ;;  %s10965_s2 = sld [smem:[#allocation52_spill]] }
 0x923   : > { %v4297_v12 = vsel %vm3270_vm2, %v4290_v10, 0.0  ;;  %v8724_v34 = vpack.c.bf16 %v7472_v32, %v7471_v30  ;;  %v7468_v36 = vld [vmem:[%s10960_s8] ss:$0 sm:$0xff]  ;;  %s10967_s8 = sld [smem:[#allocation57_spill]] }
 0x924   : > { %v4296_v39 = vsel %vm3270_vm2, %v4289_v38, 0.0 }
 0x925   : > { %v4298_v20 = vadd.f32 %v4297_v12, %v4296_v39 }
 0x926   : > { %v5495_v32 = vld [vmem:[%s10966_s7] sm:$0x3]  ;;  %s10971_s7 = sld [smem:[#allocation60_spill]] }
 0x927   : > { %v4299_v19 = vrot.slane %v4298_v20, 4 }
 0x929   : > { %v4300_v3 = vadd.f32 %v4299_v19, %v4298_v20  ;;  %v5404_v19 = vld [vmem:[%s10961_s20] sm:$0xff] }
 0x92b   : > { %v4301_v25 = vrot.slane %v4300_v3, 2 }
 0x92d   : > { %v4302_v26 = vadd.f32 %v4301_v25, %v4300_v3  ;;  %v5405_v3 = vld [vmem:[%s10961_s20 + $0x8] sm:$0xff] }
 0x92e   : > { %v8742_v25 = vpack.c.bf16 %v5405_v3, %v5404_v19 }
 0x92f   : > { %v4303_v28 = vrot.slane %v4302_v26, 1 }
 0x931   : > { %v4304_v40 = vadd.f32 %v4303_v28, %v4302_v26  ;;  %v7473_v26 = vld [vmem:[%s10958_s26 + $0x30] sm:$0xff]  ;;  %v7474_v28 = vld [vmem:[%s10958_s26 + $0x38] sm:$0xff] }
 0x933   : > { %v4306_v42 = vmul.f32 0.0625, %v4304_v40  ;;  %v8727_v40 = vpack.c.bf16 %v7474_v28, %v7473_v26 }
 0x935   : > { %8205 = vmatmul.mubr.msk.f32.vlgmr.msra.gmra.mrb[36].mxu1 %vm3270_vm2, %v4306_v42  ;;  %v5010_v42 = vld [vmem:[%s10958_s26] sm:$0xff] }
 0x936   : > { %8209 = vmatprep.mubr.msk.f32.mxu1 %vm9685_vm8, %v9683_v17  ;;  %8208 = vmatpush3.msk.msra.mxu1 %vm4385_vm9, %v4294_v43  ;;  %v5011_v43 = vld [vmem:[%s10958_s26 + $0x8] sm:$0xff] }
 0x937   : > { %8708 = vmatprep.subr.bf16.mxu1 %v9684_v27 }
 0xa08   : > { %v4376_v46 = vpop.f32.mrb[36].mxu1 }
 0xa09   : > { %v4377_v47 = vadd.f32 %v4376_v46, %v4293_v44  ;;  %v8206_v50 = vpop.f32.mrb[37].mxu1 }
 0xa0a   : > { %v5012_v50 = vld [vmem:[%s10958_s26 + $0x10] sm:$0xff] }
 0xa0b   : > { %v4380_v51 = vmax.f32 %v4377_v47, 0.0  ;;  %v8730_v47 = vpack.c.bf16 %v5011_v43, %v5010_v42 }
 0xa0d   : > { %8210 = vmatmul.mubr.msk.f32.vlgmr.msra.gmra.mrb[38].mxu1 %vm4381_vm11, %v4380_v51  ;;  %v5013_v51 = vld [vmem:[%s10958_s26 + $0x18] sm:$0xff] }
 0xa0e   : > { %8223 = vmatprep.mubr.msk.f32.mxu1 %vm9685_vm8, %v9683_v17 }
 0xae0   : > { %v4455_v53 = vpop.f32.mrb[38].mxu1 }
 0xae1   : > { %v4456_v54 = vadd.f32 %v4455_v53, %v4295_v52  ;;  %v8211_v55 = vpop.f32.mrb[39].mxu1 }
 0xae2   : > { %v7478_v55 = vld [vmem:[%s10958_s26 + $0x40] sm:$0xff] }
 0xae3   : > { %v4459_v56 = vsub.f32 0.0, %v4456_v54  ;;  %v8733_v54 = vpack.c.bf16 %v5013_v51, %v5012_v50 }
 0xae5   : > { %v4460_v57 = vmul.f32 1.442695, %v4459_v56  ;;  %v7479_v56 = vld [vmem:[%s10958_s26 + $0x48] sm:$0xff] }
 0xae7   : > { %9123 = vpow2.f32 %v4460_v57 }
 0xaf1   : > { %v9124_v58 = vpop.eup %9123 }
 0xaf2   : > { %v4462_v59 = vadd.f32 1.0, %v9124_v58 }
 0xaf4   : > { %9125 = vrcp.f32 %v4462_v59  ;;  %v8736_v59 = vpack.c.bf16 %v7479_v56, %v7478_v55  ;;  %v7495_v56 = vld [vmem:[%s10971_s7 + $0x30] sm:$0xff] }
 0xafe   : > { %v9126_v61 = vpop.eup %9125 }
 0xaff   : > { %v4468_v62 = vrot.slane %v9126_v61, %v10529_v60  ;;  %v7480_v61 = vld [vmem:[%s10958_s26 + $0x50] sm:$0xff] }
 0xb01   : > { %v4469_v63 = vmul.f32 %v4468_v62, %v4289_v38  ;;  %v4470_v0 = vmul.f32 %v4468_v62, %v4290_v10  ;;  %v7481_v62 = vld [vmem:[%s10958_s26 + $0x58] sm:$0xff] }
 0xb03   : > { %v4471_v1 = vadd.f32 %v4469_v63, %v10453_v33  ;;  %v4472_v5 = vadd.f32 %v4470_v0, %v10451_v31  ;;  %v4549_v31 = vld [vmem:[%s10956_s23] sm:$0xff]  ;;  %v4550_v33 = vld [vmem:[%s10956_s23 + $0x8] sm:$0xff] }
 0xb04   : > { %v8715_v14 = vpack.c.bf16 %v4550_v33, %v4549_v31  ;;  %v7484_v31 = vld [vmem:[%s10965_s2] ss:$0 sm:$0xff]  ;;  %s10970_s2 = sld [smem:[#allocation55_spill]] }
 0xb05   : > { %v4473_v6 = vmax.f32 %v4471_v1, 0.0  ;;  %v4474_v7 = vmax.f32 %v4472_v5, 0.0  ;;  %v8739_v1 = vpack.c.bf16 %v7481_v62, %v7480_v61  ;;  %v5490_v5 = vld [vmem:[%s10962_s24] sm:$0xff]  ;;  %s10968_s24 = sld [smem:[#allocation59_spill]]  ;;  %v5747_v61 = vld [vmem:[%s10971_s7 + $0x10] sm:$0xff]  ;;  %v5748_v62 = vld [vmem:[%s10971_s7 + $0x18] sm:$0xff] }
 0xb07   : > { %v8706_v8 = vpack.c.bf16 %v4474_v7, %v4473_v6  ;;  %v5491_v6 = vld [vmem:[%s10963_s15 + $0x8] sm:$0xff] }
 0xb08   : > { %v8745_v7 = vpack.c.bf16 %v5491_v6, %v5490_v5  ;;  %v7500_v6 = vld [vmem:[%s10971_s7 + $0x40] sm:$0xff] }
 0xb09   : > { %8707 = vmatpush3.bf16.msra.mxu0 %v8706_v8  ;;  %8710 = vmatpush3.bf16.msra.mxu1 %v8706_v8 }
 0xb0a   : > { %8717 = vmatprep.subr.bf16.mxu1 %v9684_v27  ;;  %8711 = vmatprep.subr.bf16.mxu0 %v9684_v27 }
 0xb0c   : > { %8224 = vmatmul.mubr.msk.f32.vlgmr.msra.gmra.mrb[40].mxu1 %vm3270_vm2, %v10291_v48  ;;  %8217 = vmatmul.mubr.msk.f32.vlgmr.msra.gmra.mrb[18].mxu0 %vm3270_vm2, %v10260_v41 }
 0xb0d   : > { %8719 = vmatpush3.bf16.msra.mxu1 %v8706_v8  ;;  %8244 = vmatprep.mubr.msk.f32.mxu1 %vm9685_vm8, %v9683_v17  ;;  %v5492_v8 = vld [vmem:[%s10963_s15 + $0x10] sm:$0xff] }
 0xb0e   : > { %8713 = vmatpush3.bf16.msra.mxu0 %v8712_v2  ;;  %8230 = vmatprep.mubr.msk.f32.mxu0 %vm9685_vm8, %v9683_v17  ;;  %v8748_v11 = vpack.c.bf16 %v5493_v9, %v5492_v8  ;;  %v7483_v2 = vld [vmem:[%s10964_s11] ss:$0 sm:$0xff]  ;;  %s10969_s11 = sld [smem:[#allocation54_spill]] }
 0xb0f   : > { %8714 = vmatprep.subr.bf16.mxu0 %v9684_v27  ;;  %8254 = vmatprep.subr.mxu1 %v9683_v17 }
 0xb10   : > { %8245 = vmatmul.mubr.msk.f32.vlgmr.msra.gmra.mrb[42].mxu1 %vm3270_vm2, %v10388_v37 }
 0xb11   : > { %8256 = vmatprep.mubr.msk.f32.mxu1 %vm9685_vm8, %v9683_v17 }
 0xbdf   : > { %v4619_v15 = vpop.f32.mrb[40].mxu1  ;;  %v4545_v16 = vpop.f32.mrb[18].mxu0 }
 0xbe0   : > { %v8225_v18 = vpop.f32.mrb[41].mxu1  ;;  %8231 = vmatmul.mubr.msk.f32.vlgmr.msra.gmra.mrb[20].mxu0 %vm3270_vm2, %v4619_v15  ;;  %v8218_v45 = vpop.f32.mrb[19].mxu0 }
 0xbe1   : > { %8716 = vmatpush3.bf16.msra.mxu0 %v8715_v14  ;;  %8237 = vmatprep.mubr.msk.f32.mxu0 %vm9685_vm8, %v9683_v17 }
 0xbe2   : > { %8720 = vmatprep.subr.bf16.mxu0 %v9684_v27 }
 0xbe3   : > { %v4840_v23 = vpop.f32.mrb[42].mxu1 }
 0xbe4   : > { %v8246_v24 = vpop.f32.mrb[43].mxu1 }
 0xbe8   : > { %8238 = vmatmul.mubr.msk.f32.vlgmr.msra.gmra.mrb[20].mxu0 %vm3270_vm2, %v4545_v16 }
 0xbe9   : > { %8722 = vmatpush3.bf16.msra.mxu0 %v8721_v29  ;;  %8251 = vmatprep.mubr.msk.f32.mxu0 %vm9685_vm8, %v9683_v17 }
 0xbea   : > { %8723 = vmatprep.subr.bf16.mxu0 %v9684_v27 }
 0xbf0   : > { %8252 = vmatmul.mubr.msk.f32.vlgmr.msra.gmra.mrb[20].mxu0 %vm3270_vm2, %v4840_v23 }
 0xbf1   : > { %8272 = vmatprep.mubr.msk.f32.mxu0 %vm9685_vm8, %v9683_v17  ;;  %8725 = vmatpush3.bf16.msra.mxu0 %v8724_v34  ;;  %v5494_v34 = vld [vmem:[%s10967_s8] sm:$0x1]  ;;  %s10972_s8 = sld [smem:[#allocation61_spill]] }
 0xbf2   : > { %8726 = vmatprep.subr.bf16.mxu0 %v9684_v27 }
 0xbf5   : > { %8728 = vmatpush3.bf16.msra.mxu0 %v8727_v40  ;;  %v7486_v40 = vld [vmem:[%s10969_s11] ss:$0 sm:$0xff]  ;;  %s10974_s11 = sld [smem:[#allocation63_spill]] }
 0xbf6   : > { %8729 = vmatprep.subr.bf16.mxu0 %v9684_v27 }
 0xcc3   : > { %v4916_v10 = vpop.f32.mrb[20].mxu0 }
 0xcc4   : > { %v4927_v38 = vmul.f32 %v7467_v35, %v4916_v10  ;;  %v8253_v12 = vpop.f32.mrb[21].mxu0 }
 0xcc5   : > { %v5496_v12 = vld [vmem:[%s10968_s24] sm:$0x1]  ;;  %s10973_s24 = sld [smem:[#allocation62_spill]] }
 0xcc6   : > { %v4934_v39 = vadd.f32 %v7468_v36, %v4927_v38 }
 0xcc8   : > { %v4935_v20 = vmax.f32 %v4934_v39, 0.0 }
 0xcca   : > { %8255 = vmatpush3.msra.mxu1 %v4935_v20 }
 0xccb   : > { %8257 = vmatmul.mubr.msk.f32.vlgmr.msra.gmra.mrb[44].mxu1 %vm1745_vm10, %v10446_v21  ;;  %8259 = vmatprep.subr.mxu1 %v9683_v17 }
 0xccc   : > { %8260 = vmatpush3.msra.mxu1 %v4935_v20  ;;  %8261 = vmatprep.mubr.msk.f32.mxu1 %vm9685_vm8, %v9683_v17 }
 0xccd   : > { %8286 = vmatprep.subr.mxu1 %v9683_v17 }
 0xccf   : > { %8262 = vmatmul.mubr.msk.f32.vlgmr.msra.gmra.mrb[46].mxu1 %vm1745_vm10, %v10463_v4 }
 0xcd0   : > { %8287 = vmatpush3.msra.mxu1 %v4935_v20  ;;  %8288 = vmatprep.mubr.msk.f32.mxu1 %vm9685_vm8, %v9683_v17 }
 0xcd1   : > { %8741 = vmatprep.subr.bf16.mxu1 %v9684_v27 }
 0xcd3   : > { %8289 = vmatmul.mubr.msk.f32.vlgmr.msra.gmra.mrb[48].mxu1 %vm1745_vm10, %v10474_v13 }
 0xcd4   : > { %8743 = vmatpush3.bf16.msra.mxu1 %v8742_v25  ;;  %8306 = vmatprep.mubr.msk.f32.mxu1 %vm9685_vm8, %v9683_v17 }
 0xcd5   : > { %8744 = vmatprep.subr.bf16.mxu1 %v9684_v27 }
 0xcd7   : > { %8307 = vmatmul.mubr.msk.f32.vlgmr.msra.gmra.mrb[50].mxu1 %vm3270_vm2, %v4619_v15 }
 0xcd8   : > { %8317 = vmatprep.mubr.msk.f32.mxu1 %vm9685_vm8, %v9683_v17  ;;  %8746 = vmatpush3.bf16.msra.mxu1 %v8745_v7  ;;  %v7501_v7 = vld [vmem:[%s10971_s7 + $0x48] sm:$0xff] }
 0xcd9   : > { %8747 = vmatprep.subr.bf16.mxu1 %v9684_v27 }
 0xcdc   : > { %8749 = vmatpush3.bf16.msra.mxu1 %v8748_v11  ;;  %v8763_v11 = vpack.c.bf16 %v7501_v7, %v7500_v6  ;;  %v7529_v7 = vld [vmem:[%s10974_s11 + $0xb0] sm:$0xff] }
 0xcdd   : > { %8320 = vmatprep.subr.mxu1 %v9683_v17 }
 0xd9e   : > { %v5006_v44 = vpop.f32.mrb[44].mxu1 }
 0xd9f   : > { %v8258_v46 = vpop.f32.mrb[45].mxu1 }
 0xda2   : > { %v5082_v52 = vpop.f32.mrb[46].mxu1 }
 0xda3   : > { %v8263_v53 = vpop.f32.mrb[47].mxu1  ;;  %8273 = vmatmul.mubr.msk.f32.vlgmr.msra.gmra.mrb[22].mxu0 %vm3020_vm15, %v5082_v52  ;;  %v7493_v52 = vld [vmem:[%s10971_s7 + $0x20] sm:$0xff] }
 0xda4   : > { %8731 = vmatpush3.bf16.msra.mxu0 %v8730_v47  ;;  %8283 = vmatprep.mubr.msk.f32.mxu0 %vm9685_vm8, %v9683_v17  ;;  %v7494_v53 = vld [vmem:[%s10971_s7 + $0x28] sm:$0xff] }
 0xda5   : > { %8732 = vmatprep.subr.bf16.mxu0 %v9684_v27  ;;  %v8751_v55 = vpack.c.bf16 %v7494_v53, %v7493_v52  ;;  %v6221_v53 = vld [vmem:[%s10974_s11 + $0x20] sm:$0xff] }
 0xda6   : > { %v5305_v57 = vpop.f32.mrb[48].mxu1 }
 0xda7   : > { %v8290_v58 = vpop.f32.mrb[49].mxu1 }
 0xda8   : > { %8734 = vmatpush3.bf16.msra.mxu0 %v8733_v54 }
 0xda9   : > { %8735 = vmatprep.subr.bf16.mxu0 %v9684_v27 }
 0xdaa   : > { %v5472_v63 = vpop.f32.mrb[50].mxu1 }
 0xdab   : > { %8284 = vmatmul.mubr.msk.f32.vlgmr.msra.gmra.mrb[22].mxu0 %vm3020_vm15, %v5006_v44  ;;  %v8308_v0 = vpop.f32.mrb[51].mxu1  ;;  %v5482_v42 = vmul.f32 %v7486_v40, %v5472_v63  ;;  %v7487_v44 = vld [vmem:[%s10970_s2] ss:$0 sm:$0xff]  ;;  %s10975_s2 = sld [smem:[#allocation66_spill]] }
 0xdac   : > { %8737 = vmatpush3.bf16.msra.mxu0 %v8736_v59  ;;  %8299 = vmatprep.mubr.msk.f32.mxu0 %vm9685_vm8, %v9683_v17 }
 0xdad   : > { %8738 = vmatprep.subr.bf16.mxu0 %v9684_v27  ;;  %v5489_v47 = vadd.f32 %v7487_v44, %v5482_v42 }
 0xdb0   : > { %8740 = vmatpush3.bf16.msra.mxu0 %v8739_v1  ;;  %v8760_v1 = vpack.c.bf16 %v5748_v62, %v5747_v61  ;;  %v7524_v61 = vld [vmem:[%s10974_s11 + $0x88] sm:$0xff] }
 0xdb1   : > { %8330 = vmatprep.subr.mxu0 %v9683_v17 }
 0xdb3   : > { %8300 = vmatmul.mubr.msk.f32.vlgmr.msra.gmra.mrb[22].mxu0 %vm3020_vm15, %v5305_v57  ;;  %v7496_v57 = vld [vmem:[%s10971_s7 + $0x38] sm:$0xff] }
 0xdb4   : > { %8332 = vmatprep.mubr.msk.f32.mxu0 %vm9685_vm8, %v9683_v17  ;;  %v8754_v58 = vpack.c.bf16 %v7496_v57, %v7495_v56 }
 0xe86   : > { %v5383_v33 = vpop.f32.mrb[22].mxu0 }
 0xe87   : > { %v5394_v14 = vmul.f32 %v7483_v2, %v5383_v33  ;;  %v8301_v15 = vpop.f32.mrb[23].mxu0  ;;  %v7502_v2 = vld [vmem:[%s10971_s7 + $0x50] sm:$0xff] }
 0xe88   : > { %v7506_v15 = vld [vmem:[%s10973_s24] ss:$0 sm:$0xff]  ;;  %s10977_s24 = sld [smem:[#allocation67_spill]] }
 0xe89   : > { %v5401_v16 = vadd.f32 %v7484_v31, %v5394_v14  ;;  %v7503_v31 = vld [vmem:[%s10971_s7 + $0x58] sm:$0xff]  ;;  %v7505_v14 = vld [vmem:[%s10972_s8] ss:$0 sm:$0xff]  ;;  %s10976_s8 = smov %s10975_s2 }
 0xe8a   : > { %v8766_v33 = vpack.c.bf16 %v7503_v31, %v7502_v2  ;;  %v6712_v2 = vld [vmem:[%s10976_s8 + $0x8] sm:$0xff] }
 0xe8b   : > { %v5497_v18 = vsel %vm3020_vm15, %v5401_v16, 0.0 }
 0xe8c   : > { %v5498_v45 = vrot.slane %v5497_v18, 4 }
 0xe8e   : > { %v5499_v49 = vadd.f32 %v5498_v45, %v5497_v18 }
 0xe90   : > { %v5500_v22 = vrot.slane %v5499_v49, 2 }
 0xe92   : > { %v5501_v23 = vadd.f32 %v5500_v22, %v5499_v49  ;;  %v6623_v22 = vld [vmem:[#allocation15] sm:$0xff] }
 0xe94   : > { %v5502_v24 = vrot.slane %v5501_v23, 1 }
 0xe96   : > { %v5503_v29 = vadd.f32 %v5502_v24, %v5501_v23  ;;  %v6624_v23 = vld [vmem:[#allocation15 + $0x8] sm:$0xff] }
 0xe98   : > { %v5505_v30 = vmul.f32 0.125, %v5503_v29  ;;  %v8805_v29 = vpack.c.bf16 %v6624_v23, %v6623_v22  ;;  %v6718_v22 = vld [vmem:[%s10976_s8 + $0x38] sm:$0xff] }
 0xe9a   : > { %8318 = vmatmul.mubr.msk.f32.vlgmr.msra.gmra.mrb[52].mxu1 %vm3020_vm15, %v5505_v30  ;;  %v7511_v30 = vld [vmem:[%s10974_s11 + $0x40] sm:$0xff] }
 0xe9b   : > { %8322 = vmatprep.mubr.msk.f32.mxu1 %vm9685_vm8, %v9683_v17  ;;  %8321 = vmatpush3.msk.msra.mxu1 %vm5584_vm12, %v5495_v32  ;;  %v7512_v32 = vld [vmem:[%s10974_s11 + $0x48] sm:$0xff] }
 0xe9c   : > { %8325 = vmatprep.subr.mxu1 %v9683_v17 }
 0xf6d   : > { %v5575_v35 = vpop.f32.mrb[52].mxu1 }
 0xf6e   : > { %v5576_v36 = vadd.f32 %v5575_v35, %v5494_v34  ;;  %v8319_v10 = vpop.f32.mrb[53].mxu1  ;;  %v6625_v34 = vld [vmem:[#allocation15 + $0x10] sm:$0xff]  ;;  %v6626_v35 = vld [vmem:[#allocation15 + $0x18] sm:$0xff] }
 0xf6f   : > { %v8808_v10 = vpack.c.bf16 %v6626_v35, %v6625_v34 }
 0xf70   : > { %v5579_v38 = vmax.f32 %v5576_v36, 0.0  ;;  %v8769_v36 = vpack.c.bf16 %v7512_v32, %v7511_v30 }
 0xf72   : > { %8323 = vmatmul.mubr.msk.f32.vlgmr.msra.gmra.mrb[54].mxu1 %vm5580_vm13, %v5579_v38  ;;  %v7514_v38 = vld [vmem:[%s10974_s11 + $0x58] sm:$0xff] }
 0xf73   : > { %8327 = vmatprep.mubr.msk.f32.mxu1 %vm9685_vm8, %v9683_v17 }
0x1045   : > { %v5654_v39 = vpop.f32.mrb[54].mxu1 }
0x1046   : > { %v5655_v20 = vadd.f32 %v5654_v39, %v5496_v12  ;;  %v8324_v19 = vpop.f32.mrb[55].mxu1  ;;  %v7515_v12 = vld [vmem:[%s10974_s11 + $0x60] sm:$0xff]  ;;  %v7516_v39 = vld [vmem:[%s10974_s11 + $0x68] sm:$0xff] }
0x1047   : > { %v7518_v19 = vld [vmem:[%s10974_s11 + $0x78] sm:$0xff] }
0x1048   : > { %v5658_v3 = vsub.f32 0.0, %v5655_v20  ;;  %v7517_v20 = vld [vmem:[%s10974_s11 + $0x70] sm:$0xff] }
0x104a   : > { %v5659_v25 = vmul.f32 1.442695, %v5658_v3  ;;  %v8778_v3 = vpack.c.bf16 %v7518_v19, %v7517_v20  ;;  %v6720_v20 = vld [vmem:[%s10977_s24] sm:$0xf]  ;;  %s1495_s24 = sand.u32 1, %s9613_s1  }
0x104b   : > { %v6719_v19 = vld [vmem:[#allocation20] sm:$0x1] }
0x104c   : > { %9127 = vpow2.f32 %v5659_v25  ;;  %v6217_v25 = vld [vmem:[%s10974_s11] sm:$0xff] }
0x1056   : > { %v9128_v26 = vpop.eup %9127 }
0x1057   : > { %v5661_v28 = vadd.f32 1.0, %v9128_v26  ;;  %v6218_v26 = vld [vmem:[%s10974_s11 + $0x8] sm:$0xff] }
0x1058   : > { %v8781_v42 = vpack.c.bf16 %v6218_v26, %v6217_v25 }
0x1059   : > { %9129 = vrcp.f32 %v5661_v28 }
0x1063   : > { %v9130_v43 = vpop.eup %9129 }
0x1064   : > { %v5667_v46 = vrot.slane %v9130_v43, %v10529_v60 }
0x1066   : > { %v5668_v50 = vmul.f32 %v5667_v46, %v5401_v16  ;;  %v6219_v46 = vld [vmem:[%s10974_s11 + $0x10] sm:$0xff] }
0x1068   : > { %v5669_v51 = vadd.f32 %v5668_v50, %v5489_v47  ;;  %v6220_v47 = vld [vmem:[%s10974_s11 + $0x18] sm:$0xff] }
0x1069   : > { %v8784_v52 = vpack.c.bf16 %v6220_v47, %v6219_v46 }
0x106a   : > { %v5670_v54 = vmax.f32 %v5669_v51, 0.0 }
0x106c   : > { %8326 = vmatpush3.msra.mxu1 %v5670_v54  ;;  %8331 = vmatpush3.msra.mxu0 %v5670_v54 }
0x106d   : > { %8333 = vmatmul.mubr.msk.f32.vlgmr.msra.gmra.mrb[24].mxu0 %vm1745_vm10, %v10291_v48  ;;  %8357 = vmatprep.subr.mxu0 %v9683_v17  ;;  %v5746_v48 = vld [vmem:[%s10971_s7 + $0x8] sm:$0xff] }
0x106e   : > { %8358 = vmatpush3.msra.mxu0 %v5670_v54  ;;  %8328 = vmatmul.mubr.msk.f32.vlgmr.msra.gmra.mrb[56].mxu1 %vm1745_vm10, %v10260_v41  ;;  %v5745_v41 = vld [vmem:[%s10971_s7] sm:$0xff]  ;;  %v6222_v54 = vld [vmem:[%s10974_s11 + $0x28] sm:$0xff]  ;;  %s7071_s7 = scalar_lea.sflag [#allocation5], %s1495_s24 }
0x106f   : > { %8359 = vmatprep.mubr.msk.f32.mxu0 %vm9685_vm8, %v9683_v17  ;;  %8750 = vmatprep.subr.bf16.mxu1 %v9684_v27  ;;  %v8757_v59 = vpack.c.bf16 %v5746_v48, %v5745_v41  ;;  %v8787_v56 = vpack.c.bf16 %v6222_v54, %v6221_v53  ;;  %v6224_v41 = vld [vmem:[%s10974_s11 + $0x38] sm:$0xff] }
0x1070   : > { %8752 = vmatpush3.bf16.msra.mxu1 %v8751_v55  ;;  %8343 = vmatprep.mubr.msk.f32.mxu1 %vm9685_vm8, %v9683_v17 }
0x1071   : > { %8360 = vmatmul.mubr.msk.f32.vlgmr.msra.gmra.mrb[26].mxu0 %vm1745_vm10, %v10388_v37  ;;  %8753 = vmatprep.subr.bf16.mxu1 %v9684_v27  ;;  %vm6143_vm10 = vcmask 1043456  }
0x1072   : > { %8373 = vmatprep.subr.mxu0 %v9683_v17  ;;  %8375 = vmatprep.mubr.msk.f32.mxu0 %vm9685_vm8, %v9683_v17 }
0x1074   : > { %8755 = vmatpush3.bf16.msra.mxu1 %v8754_v58  ;;  %v6223_v58 = vld [vmem:[%s10974_s11 + $0x30] sm:$0xff] }
0x1075   : > { %8756 = vmatprep.subr.bf16.mxu1 %v9684_v27  ;;  %v8790_v48 = vpack.c.bf16 %v6224_v41, %v6223_v58  ;;  %v6988_v58 = vld [vmem:[%s9903_s19 + $0x10] sm:$0xff] }
0x1140   : > { %v10663_v63 = vpop.f32.mrb[24].mxu0 }
0x1141   : > { %v8334_v37 = vpop.f32.mrb[25].mxu0  ;;  %8344 = vmatmul.mubr.msk.f32.vlgmr.msra.gmra.mrb[58].mxu1 %vm3020_vm15, %v10663_v63  ;;  %v5741_v0 = vpop.f32.mrb[56].mxu1 }
0x1142   : > { %8758 = vmatpush3.bf16.msra.mxu1 %v8757_v59  ;;  %v8329_v5 = vpop.f32.mrb[57].mxu1  ;;  %8354 = vmatprep.mubr.msk.f32.mxu1 %vm9685_vm8, %v9683_v17  ;;  %v7523_v59 = vld [vmem:[%s10974_s11 + $0x80] sm:$0xff]  ;;  %v7526_v37 = vld [vmem:[%s10974_s11 + $0x98] sm:$0xff] }
0x1143   : > { %8759 = vmatprep.subr.bf16.mxu1 %v9684_v27  ;;  %v8793_v62 = vpack.c.bf16 %v7524_v61, %v7523_v59  ;;  %v7528_v5 = vld [vmem:[%s10974_s11 + $0xa8] sm:$0xff]  ;;  %v6990_v61 = vld [vmem:[%s9903_s19 + $0x20] sm:$0xff] }
0x1144   : > { %v6040_v8 = vpop.f32.mrb[26].mxu0 }
0x1145   : > { %v8361_v9 = vpop.f32.mrb[27].mxu0 }
0x1146   : > { %8761 = vmatpush3.bf16.msra.mxu1 %v8760_v1  ;;  %v7527_v1 = vld [vmem:[%s10974_s11 + $0xa0] sm:$0xff] }
0x1147   : > { %8762 = vmatprep.subr.bf16.mxu1 %v9684_v27  ;;  %v8799_v6 = vpack.c.bf16 %v7528_v5, %v7527_v1 }
0x1149   : > { %8355 = vmatmul.mubr.msk.f32.vlgmr.msra.gmra.mrb[58].mxu1 %vm3020_vm15, %v5741_v0 }
0x114a   : > { %8764 = vmatpush3.bf16.msra.mxu1 %v8763_v11  ;;  %8370 = vmatprep.mubr.msk.f32.mxu1 %vm9685_vm8, %v9683_v17  ;;  %v6711_v11 = vld [vmem:[%s10975_s2] sm:$0xff]  ;;  %s10978_s2 = sld [smem:[#allocation68_spill]] }
0x114b   : > { %8765 = vmatprep.subr.bf16.mxu1 %v9684_v27  ;;  %v8811_v31 = vpack.c.bf16 %v6712_v2, %v6711_v11  ;;  %v7535_v11 = vld [vmem:[#allocation17] ss:$0 sm:$0xff] }
0x114e   : > { %8767 = vmatpush3.bf16.msra.mxu1 %v8766_v33  ;;  %v6713_v33 = vld [vmem:[%s10976_s8 + $0x10] sm:$0xff] }
0x114f   : > { %8421 = vmatprep.subr.mxu1 %v9683_v17 }
0x1150   : > { %s10979_s3 = smov %s10978_s2 }
0x1151   : > { %8371 = vmatmul.mubr.msk.f32.vlgmr.msra.gmra.mrb[58].mxu1 %vm3020_vm15, %v6040_v8  ;;  %v7530_v8 = vld [vmem:[%s10974_s11 + $0xb8] sm:$0xff] }
0x1152   : > { %8423 = vmatprep.mubr.msk.f32.mxu1 %vm9685_vm8, %v9683_v17  ;;  %v8802_v9 = vpack.c.bf16 %v7530_v8, %v7529_v7  ;;  %v6906_v46 = vld [vmem:[%s10979_s3 + $0x18] sm:$0xff] }
0x1153   : > { %v6910_v53 = vld [vmem:[%s10979_s3 + $0x38] sm:$0xff] }
0x1224   : > { %v6118_v16 = vpop.f32.mrb[58].mxu1 }
0x1225   : > { %v6129_v18 = vmul.f32 %v7505_v14, %v6118_v16  ;;  %v8372_v45 = vpop.f32.mrb[59].mxu1  ;;  %v6714_v14 = vld [vmem:[%s10976_s8 + $0x18] sm:$0xff]  ;;  %v6715_v16 = vld [vmem:[%s10976_s8 + $0x20] sm:$0xff] }
0x1227   : > { %v6136_v49 = vadd.f32 %v7506_v15, %v6129_v18  ;;  %v8814_v15 = vpack.c.bf16 %v6714_v14, %v6713_v33  ;;  %v6716_v18 = vld [vmem:[%s10976_s8 + $0x28] sm:$0xff]  ;;  %v7536_v33 = vld [vmem:[#allocation18] ss:$0 sm:$0xff] }
0x1228   : > { %v8817_v45 = vpack.c.bf16 %v6716_v18, %v6715_v16 }
0x1229   : > { %v6137_v24 = vmax.f32 %v6136_v49, 0.0  ;;  %v6717_v49 = vld [vmem:[%s10976_s8 + $0x30] sm:$0xff] }
0x122a   : > { %v8820_v23 = vpack.c.bf16 %v6718_v22, %v6717_v49 }
0x122b   : > { %8374 = vmatpush3.msk.msra.mxu0 %vm6143_vm10, %v6137_v24  ;;  %8422 = vmatpush3.msk.msra.mxu1 %vm6143_vm10, %v6137_v24 }
0x122c   : > { %8376 = vmatmul.mubr.msk.f32.vlgmr.msra.gmra.mrb[28].mxu0 %vm6140_vm14, %v10446_v21  ;;  %8378 = vmatprep.subr.mxu0 %v9683_v17  ;;  %v7513_v21 = vld [vmem:[%s10974_s11 + $0x50] sm:$0xff] }
0x122d   : > { %8804 = vmatprep.subr.bf16.mxu1 %v9684_v27  ;;  %8379 = vmatpush3.msk.msra.mxu0 %vm6143_vm10, %v6137_v24  ;;  %v7532_v24 = vld [vmem:[#allocation12] ss:$0 sm:$0xff] }
0x122e   : > { %8424 = vmatmul.mubr.msk.f32.vlgmr.msra.gmra.mrb[60].mxu1 %vm6140_vm14, %v10474_v13  ;;  %8380 = vmatprep.mubr.msk.f32.mxu0 %vm9685_vm8, %v9683_v17  ;;  %v8772_v13 = vpack.c.bf16 %v7514_v38, %v7513_v21 }
0x122f   : > { %8806 = vmatpush3.bf16.msra.mxu1 %v8805_v29  ;;  %8453 = vmatprep.mubr.msk.f32.mxu1 %vm9685_vm8, %v9683_v17  ;;  %v7533_v29 = vld [vmem:[#allocation14] ss:$0 sm:$0xff] }
0x1230   : > { %8381 = vmatmul.mubr.msk.f32.vlgmr.msra.gmra.mrb[30].mxu0 %vm6140_vm14, %v10463_v4  ;;  %8807 = vmatprep.subr.bf16.mxu1 %v9684_v27  ;;  %v8775_v4 = vpack.c.bf16 %v7516_v39, %v7515_v12 }
0x1231   : > { %8768 = vmatprep.subr.bf16.mxu0 %v9684_v27  ;;  %8399 = vmatprep.mubr.msk.f32.mxu0 %vm9685_vm8, %v9683_v17 }
0x1232   : > { %8770 = vmatpush3.bf16.msra.mxu0 %v8769_v36 }
0x1233   : > { %8809 = vmatpush3.bf16.msra.mxu1 %v8808_v10  ;;  %8771 = vmatprep.subr.bf16.mxu0 %v9684_v27 }
0x1234   : > { %8810 = vmatprep.subr.bf16.mxu1 %v9684_v27 }
0x1236   : > { %8454 = vmatmul.mubr.msk.f32.vlgmr.msra.gmra.mrb[62].mxu1 %vm3020_vm15, %v10663_v63  ;;  %8773 = vmatpush3.bf16.msra.mxu0 %v8772_v13  ;;  %v7525_v63 = vld [vmem:[%s10974_s11 + $0x90] sm:$0xff]  ;;  %vm6722_vm15 = vcmask 519168  }
0x1237   : > { %8774 = vmatprep.subr.bf16.mxu0 %v9684_v27  ;;  %8472 = vmatprep.mubr.msk.f32.mxu1 %vm9685_vm8, %v9683_v17  ;;  %v8796_v0 = vpack.c.bf16 %v7526_v37, %v7525_v63  ;;  %v6721_v37 = vld [vmem:[#allocation21] sm:$0x1] }
0x1238   : > { %8812 = vmatpush3.bf16.msra.mxu1 %v8811_v31 }
0x1239   : > { %8813 = vmatprep.subr.bf16.mxu1 %v9684_v27 }
0x123a   : > { %8776 = vmatpush3.bf16.msra.mxu0 %v8775_v4 }
0x123b   : > { %8777 = vmatprep.subr.bf16.mxu0 %v9684_v27 }
0x123c   : > { %8815 = vmatpush3.bf16.msra.mxu1 %v8814_v15 }
0x123d   : > { %8816 = vmatprep.subr.bf16.mxu1 %v9684_v27 }
0x123e   : > { %8779 = vmatpush3.bf16.msra.mxu0 %v8778_v3 }
0x123f   : > { %8780 = vmatprep.subr.bf16.mxu0 %v9684_v27 }
0x1240   : > { %8818 = vmatpush3.bf16.msra.mxu1 %v8817_v45 }
0x1241   : > { %8819 = vmatprep.subr.bf16.mxu1 %v9684_v27 }
0x1244   : > { %8821 = vmatpush3.bf16.msra.mxu1 %v8820_v23 }
0x1245   : > { %8475 = vmatprep.subr.mxu1 %v9683_v17 }
0x12ff   : > { %v6213_v28 = vpop.f32.mrb[28].mxu0 }
0x1300   : > { %v8377_v40 = vpop.f32.mrb[29].mxu0 }
0x1301   : > { %v6520_v43 = vpop.f32.mrb[60].mxu1  ;;  %v6903_v40 = vld [vmem:[%s10978_s2] sm:$0xff]  ;;  %s7542_s2 = sshll.u32 %s9936_s0, 4  ;;  %s9686_s0 = smov [#allocation26]  }
0x1302   : > { %v8425_v44 = vpop.f32.mrb[61].mxu1  ;;  %s10812_s5 = scalar_lea.hbm %s9913_s6, %s7542_s2  ;;  %s9531_s9 = sshll.u32 %s9686_s0, 4  ;;  %s9532_s9 = int_to_ptr.vmem [resolvable:$false] %s9531_s9 }
0x1303   : > { %v6293_v50 = vpop.f32.mrb[30].mxu0  ;;  %s9533_s10 = scalar_lea.vmem %s9532_s9, 32 }
0x1304   : > { %8400 = vmatmul.mubr.msk.f32.vlgmr.msra.gmra.mrb[32].mxu0 %vm1535_vm1, %v6293_v50  ;;  %v8382_v51 = vpop.f32.mrb[31].mxu0  ;;  %v6907_v50 = vld [vmem:[%s10979_s3 + $0x20] sm:$0xff] }
0x1305   : > { %8782 = vmatpush3.bf16.msra.mxu0 %v8781_v42  ;;  %8418 = vmatprep.mubr.msk.f32.mxu0 %vm9685_vm8, %v9683_v17  ;;  %v6904_v42 = vld [vmem:[%s10979_s3 + $0x8] sm:$0xff] }
0x1306   : > { %8783 = vmatprep.subr.bf16.mxu0 %v9684_v27  ;;  %v8823_v44 = vpack.c.bf16 %v6904_v42, %v6903_v40  ;;  %v6908_v51 = vld [vmem:[%s10979_s3 + $0x28] sm:$0xff] }
0x1309   : > { %v10731_v55 = vpop.f32.mrb[62].mxu1  ;;  %8785 = vmatpush3.bf16.msra.mxu0 %v8784_v52  ;;  %v8829_v52 = vpack.c.bf16 %v6908_v51, %v6907_v50 }
0x130a   : > { %v8455_v57 = vpop.f32.mrb[63].mxu1  ;;  %8786 = vmatprep.subr.bf16.mxu0 %v9684_v27  ;;  %v6703_v2 = vmul.f32 %v7535_v11, %v10731_v55 }
0x130b   : > { %v6987_v57 = vld [vmem:[%s9903_s19 + $0x8] sm:$0xff] }
0x130d   : > { %8788 = vmatpush3.bf16.msra.mxu0 %v8787_v56  ;;  %v6986_v56 = vld [vmem:[%s9903_s19] sm:$0xff] }
0x130e   : > { %8789 = vmatprep.subr.bf16.mxu0 %v9684_v27  ;;  %v8835_v41 = vpack.c.bf16 %v6987_v57, %v6986_v56 }
0x1311   : > { %8791 = vmatpush3.bf16.msra.mxu0 %v8790_v48  ;;  %v6989_v48 = vld [vmem:[%s9903_s19 + $0x18] sm:$0xff] }
0x1312   : > { %8792 = vmatprep.subr.bf16.mxu0 %v9684_v27  ;;  %v8838_v59 = vpack.c.bf16 %v6989_v48, %v6988_v58 }
0x1314   : > { %8419 = vmatmul.mubr.msk.f32.vlgmr.msra.gmra.mrb[32].mxu0 %vm1535_vm1, %v6213_v28 }
0x1315   : > { %8794 = vmatpush3.bf16.msra.mxu0 %v8793_v62  ;;  %8442 = vmatprep.mubr.msk.f32.mxu0 %vm9685_vm8, %v9683_v17  ;;  %v6991_v62 = vld [vmem:[%s9903_s19 + $0x28] sm:$0xff] }
0x1316   : > { %8795 = vmatprep.subr.bf16.mxu0 %v9684_v27  ;;  %v8841_v63 = vpack.c.bf16 %v6991_v62, %v6990_v61 }
0x1319   : > { %8797 = vmatpush3.bf16.msra.mxu0 %v8796_v0 }
0x131a   : > { %8798 = vmatprep.subr.bf16.mxu0 %v9684_v27 }
0x131d   : > { %8800 = vmatpush3.bf16.msra.mxu0 %v8799_v6 }
0x131e   : > { %8801 = vmatprep.subr.bf16.mxu0 %v9684_v27 }
0x1321   : > { %8803 = vmatpush3.bf16.msra.mxu0 %v8802_v9 }
0x1322   : > { %8834 = vmatprep.subr.bf16.mxu0 %v9684_v27 }
0x1324   : > { %8443 = vmatmul.mubr.msk.f32.vlgmr.msra.gmra.mrb[32].mxu0 %vm1535_vm1, %v6520_v43  ;;  %v6905_v43 = vld [vmem:[%s10979_s3 + $0x10] sm:$0xff] }
0x1325   : > { %8515 = vmatprep.mubr.msk.f32.mxu0 %vm9685_vm8, %v9683_v17  ;;  %v8826_v47 = vpack.c.bf16 %v6906_v46, %v6905_v43  ;;  %8836 = vmatpush3.bf16.msra.mxu0 %v8835_v41 }
0x1326   : > { %8837 = vmatprep.subr.bf16.mxu0 %v9684_v27 }
0x1329   : > { %8839 = vmatpush3.bf16.msra.mxu0 %v8838_v59 }
0x132a   : > { %8840 = vmatprep.subr.bf16.mxu0 %v9684_v27 }
0x132d   : > { %8842 = vmatpush3.bf16.msra.mxu0 %v8841_v63 }
0x132e   : > { %8843 = vmatprep.subr.bf16.mxu0 %v9684_v27 }
0x13f7   : > { %v6602_v30 = vpop.f32.mrb[32].mxu0 }
0x13f8   : > { %v6613_v32 = vmul.f32 %v7532_v24, %v6602_v30  ;;  %v8444_v34 = vpop.f32.mrb[33].mxu0 }
0x13fa   : > { %v10768_v35 = vadd.f32 %v7533_v29, %v6613_v32  ;;  %v6992_v32 = vld [vmem:[%s9903_s19 + $0x30] sm:$0xff] }
0x13fc   : > { %v6723_v36 = vsel %vm6722_vm15, %v10768_v35, 0.0 }
0x13fd   : > { %v6724_v10 = vrot.slane %v6723_v36, 4 }
0x13ff   : > { %v6725_v21 = vadd.f32 %v6724_v10, %v6723_v36 }
0x1401   : > { %v6726_v38 = vrot.slane %v6725_v21, 2 }
0x1403   : > { %v6727_v13 = vadd.f32 %v6726_v38, %v6725_v21 }
0x1405   : > { %v6728_v12 = vrot.slane %v6727_v13, 1 }
0x1407   : > { %v6729_v39 = vadd.f32 %v6728_v12, %v6727_v13  ;;  %v6994_v13 = vld [vmem:[#allocation24] sm:$0x1] }
0x1409   : > { %v6731_v4 = vmul.f32 0.25, %v6729_v39 }
0x140b   : > { %8473 = vmatmul.mubr.msk.f32.vlgmr.msra.gmra.mrb[64].mxu1 %vm1535_vm1, %v6731_v4 }
0x140c   : > { %8477 = vmatprep.mubr.msk.f32.mxu1 %vm9685_vm8, %v9683_v17  ;;  %8476 = vmatpush3.msk.msra.mxu1 %vm6143_vm10, %v6720_v20 }
0x140d   : > { %8822 = vmatprep.subr.bf16.mxu1 %v9684_v27 }
0x14de   : > { %v6801_v3 = vpop.f32.mrb[64].mxu1 }
0x14df   : > { %v6802_v25 = vadd.f32 %v6801_v3, %v6719_v19  ;;  %v8474_v26 = vpop.f32.mrb[65].mxu1 }
0x14e1   : > { %v6805_v28 = vmax.f32 %v6802_v25, 0.0 }
0x14e3   : > { %8478 = vmatmul.mubr.msk.f32.vlgmr.msra.gmra.mrb[66].mxu1 %vm6140_vm14, %v6805_v28 }
0x14e4   : > { %8496 = vmatprep.mubr.msk.f32.mxu1 %vm9685_vm8, %v9683_v17  ;;  %8824 = vmatpush3.bf16.msra.mxu1 %v8823_v44  ;;  %v6909_v17 = vld [vmem:[%s10979_s3 + $0x30] sm:$0xff]  ;;  %s1496_s3 = scalar_lea.vmem [#allocation26], %s1495_s24 }
0x14e5   : > { %8825 = vmatprep.subr.bf16.mxu1 %v9684_v27  ;;  %v8832_v54 = vpack.c.bf16 %v6910_v53, %v6909_v17  ;;  %s7083_s4 = sshll.u32 %s1496_s3, 4  ;;  %s10814_s4 = int_to_ptr.vmem [resolvable:$true] %s7083_s4 }
0x14e6   : > { %s9527_s8 = scalar_lea.vmem %s10814_s4, 16  ;;  %p9534_p6 = scmp.lt.s32.totalorder %s10814_s4, %s9532_s9 }
0x14e7   : > { %p9528_p3 = scmp.ne.s32.totalorder %s10814_s4, %s9527_s8  ;;  %p9535_p9 = scmp.lt.s32.totalorder %s9533_s10, %s9527_s8 }
0x14e8   : > { %8827 = vmatpush3.bf16.msra.mxu1 %v8826_v47 }
0x14e9   : > { %8828 = vmatprep.subr.bf16.mxu1 %v9684_v27  ;;  %p9529_p12 = pnand %p9528_p3, %p10980_p4  ;;  %p9536_p10 = por %p9535_p9, %p9534_p6 }
0x14eb   : > { %p9530_p5 = pneg %p9529_p12 }
0x14ec   : > { %8830 = vmatpush3.bf16.msra.mxu1 %v8829_v52 }
0x14ed   : > { %8831 = vmatprep.subr.bf16.mxu1 %v9684_v27  ;;  %v6710_v27 = vadd.f32 %v7536_v33, %v6703_v2  ;;  %p9537_p7 = pnand %p9536_p10, %p9530_p5 }
0x14f0   : > { %8833 = vmatpush3.bf16.msra.mxu1 %v8832_v54 }
0x15b6   : > { %v6878_v0 = vpop.f32.mrb[66].mxu1 }
0x15b7   : > { %v6879_v1 = vadd.f32 %v6878_v0, %v6721_v37  ;;  %v8479_v5 = vpop.f32.mrb[67].mxu1 }
0x15b9   : > { %v6882_v6 = vsub.f32 0.0, %v6879_v1 }
0x15bb   : > { %v6883_v7 = vmul.f32 1.442695, %v6882_v6 }
0x15bd   : > { %9131 = vpow2.f32 %v6883_v7 }
0x15c7   : > { %v9132_v8 = vpop.eup %9131 }
0x15c8   : > { %v6885_v9 = vadd.f32 1.0, %v9132_v8 }
0x15ca   : > { %9133 = vrcp.f32 %v6885_v9 }
0x15d4   : > { %v9134_v31 = vpop.eup %9133 }
0x15d5   : > { %v6891_v14 = vrot.slane %v9134_v31, %v10529_v60  ;;  %v6993_v60 = vld [vmem:[%s9903_s19 + $0x38] sm:$0xff] }
0x15d6   : > { %v8844_v34 = vpack.c.bf16 %v6993_v60, %v6992_v32 }
0x15d7   : > { %v6892_v15 = vmul.f32 %v6891_v14, %v10768_v35  ;;  %v6911_v35 = vld [vmem:[#allocation23] sm:$0x1] }
0x15d8   : > { %8845 = vmatpush3.bf16.msra.mxu0 %v8844_v34 }
0x15d9   : > { %v6893_v16 = vadd.f32 %v6892_v15, %v6710_v27 }
0x15db   : > { %v6894_v18 = vmax.f32 %v6893_v16, 0.0 }
0x15dd   : > { %v6895_v45 = vsel %vm6722_vm15, %v6894_v18, 0.0 }
0x15de   : > { %v6896_v49 = vrot.slane %v6895_v45, 4 }
0x15e0   : > { %v6897_v22 = vadd.f32 %v6896_v49, %v6895_v45 }
0x15e2   : > { %v6898_v23 = vrot.slane %v6897_v22, 2 }
0x15e4   : > { %v6899_v24 = vadd.f32 %v6898_v23, %v6897_v22 }
0x15e6   : > { %v6900_v29 = vrot.slane %v6899_v24, 1 }
0x15e8   : > { %v6901_v55 = vadd.f32 %v6900_v29, %v6899_v24 }
0x15ea   : > { %v6902_v30 = vmul.f32 0.25, %v6901_v55 }
0x15ec   : > { %8497 = vmatmul.mubr.msk.f32.vlgmr.msra.gmra.mrb[68].mxu1 %vm1535_vm1, %v6902_v30 }
0x16bf   : > { %v6981_v36 = vpop.f32.mrb[68].mxu1 }
0x16c0   : > { %v6982_v10 = vadd.f32 %v6981_v36, %v6911_v35  ;;  %v8498_v21 = vpop.f32.mrb[69].mxu1 }
0x16c2   : > { %v6985_v38 = vmax.f32 %v6982_v10, 0.0 }
0x16c4   : > { %8516 = vmatmul.mubr.msk.f32.vlgmr.msra.gmra.mrb[34].mxu0 %vm1535_vm1, %v6985_v38 }
0x1797   : > { %v7064_v12 = vpop.f32.mrb[34].mxu0 }
0x1798   : > { %v7065_v39 = vadd.f32 %v7064_v12, %v6994_v13  ;;  %v8517_v4 = vpop.f32.mrb[35].mxu0 }
0x179a   : > { %7069 = vst.msk [vmem:[%s1496_s3] sm:$0x1] %vm7068_vm0, %v7065_v39 }
0x179b   : > { %9540 = shalt.err (!%p9537_p7)
}
0x179c   : > { %s9541_s3 = scalar_lea.hbm %s10812_s5, 16  ;;  %s9545_s24 = scalar_lea.hbm %s9913_s6, 32 }
0x179d   : > { %p9542_p8 = scmp.ne.s32.totalorder %s10812_s5, %s9541_s3  ;;  %p9546_p1 = scmp.lt.u32.totalorder %s10812_s5, %s9913_s6 }
0x179e   : > { %p9547_p2 = scmp.lt.u32.totalorder %s9545_s24, %s9541_s3  ;;  %p9549_p3 = scmp.lt.u32.totalorder %s9541_s3, %s10812_s5 }
0x179f   : > { %p9543_p11 = pnand %p9542_p8, %p10980_p4 }
0x17a0   : > { %p9548_p0 = por %p9547_p2, %p9546_p1 }
0x17a1   : > { %p9544_p13 = pneg %p9543_p11 }
0x17a2   : > { %p9550_p12 = por %p9549_p3, %p9548_p0 }
0x17a4   : > { %p9551_p5 = pnand %p9550_p12, %p9544_p13 }
0x17a6   : > { %9554 = shalt.err (!%p9551_p5)
}
0x17a7   : > { %8950 = dma.vmem_to_hbm [thread:$0]  (%p10980_p4), %s10814_s4, 16, %s10812_s5, %s7071_s7  }
0x17a8 PF: > { %s10981_s9 = sld [smem:[#allocation69_spill]]  ;;  %s10982_s10 = sld [smem:[#allocation73_spill]] }
0x17a9   : > { %p9027_p6 = scmp.ge.s32.totalorder %s9621_s16, 2 }
0x17ae   : > { %s7095_s8 = sand.u32 1, %s10981_s9   ;;  %p10983_p9 = scmp.ne.s32.totalorder %s10982_s10, 0 }
0x17af   : > { %s7096_s2 = scalar_lea.sflag [#allocation5], %s7095_s8 }
0x17b0   : > { %p8996_p10 = pnand %p9027_p6, %p10983_p9 }
0x17b2   : > { %9604 = dma.done.wait (!%p8996_p10), %s7096_s2, 16  }
0x17b3   : > { %9606 = vsyncadd (!%p8996_p10), %s7096_s2, 4294967280  ;;  %s10984_s16 = sld [smem:[#allocation71_spill]]  ;;  %s10985_s0 = sld [smem:[#allocation70_spill]] }
0x17b4   : > { %s10986_s2 = sld [smem:[#allocation72_spill]]  ;;  %s10987_s24 = smov %s9613_s1 }
0x17b9   : > { %p109_p7 = scmp.ge.s32.totalorder %s10984_s16, 4   ;;  %s10988_s1 = smov %s10985_s0 }
0x17bb   :  { %111 = sbr.rel (!%p109_p7) target bundleno = 96 (0x60), region = 350 }
0x17c2   :  { %7100 = vsyncpa [#allocation4], 1 }
0x17c3   :  { %7102 = vsyncpa [#allocation4 + $0x1], 1 }
0x17c4   :  { %7103 = vsyncpa [#allocation7], 1 }
0x17c5   :  { %7104 = vsyncpa [#allocation10], 1 }
0x17c6   :  { %7105 = vsyncpa [#allocation13], 1 }
0x17c7   :  { %7106 = vsyncpa [#allocation16], 1 }
0x17c8   :  { %7107 = vsyncpa [#allocation19], 1 }
0x17c9   :  { %7108 = vsyncpa [#allocation22], 1 }
0x17ca   :  { %7109 = vsyncpa [#allocation25], 1 }
0x17cb   :  { %7110 = vsyncpa [#allocation5], 1 }
0x17cc   :  { %7112 = vsyncpa [#allocation5 + $0x1], 1 }

</bundles_post_ra>
